<compile_context>
chip_gen: v6e
topology: v6e:2x2x1
jax: 0.10.0
libtpu: 0.0.40
codegen_flags: <defaults>
</compile_context>

<pallas_src>
import functools

import jax
import jax.numpy as jnp
from jax.experimental import pallas as pl
from jax.experimental.pallas import tpu as pltpu

_IOU_EPS = 1e-6


def _pse_loss_kernel(thresh_ref,                       # SMEM scalar prefetch: [B] f32
                     maps_ref, gt_ref, gtk_ref, tm_ref,  # inputs
                     out_ref,                            # (1, 8, 128) f32 output
                     *, alpha, eps, num_kernels, lr_h, lr_w):
    K = num_kernels
    H, W = lr_h, lr_w
    H4, W4 = 4 * H, 4 * W

    b = pl.program_id(0)
    thresh = thresh_ref[b]                     # per-batch OHEM threshold (-inf => fallback)

    # ---- low-res predictions (sigmoid on the 16x smaller maps only) ----
    text = maps_ref[0, 0]                      # (H, W) pre-sigmoid text map, f32
    s_text = jax.nn.sigmoid(text)
    cond = (text >= thresh).astype(jnp.float32)    # OHEM "keep negative" condition
    pp = (text > 0.0).astype(jnp.float32)          # == (sigmoid(text) > 0.5)

    # ---- high-res binary labels (bf16 transport, f32 compute) ----
    G = gt_ref[0].astype(jnp.float32)          # (4H, 4W) gt_text
    M = tm_ref[0].astype(jnp.float32)          # (4H, 4W) training_mask
    GM = G * M

    # ---- 4x4 block-sum pooling matrices (built from iota, used on the MXU) ----
    r_lo = jax.lax.broadcasted_iota(jnp.int32, (H, H4), 0)
    r_hi = jax.lax.broadcasted_iota(jnp.int32, (H, H4), 1)
    p_row = jnp.logical_and(r_hi >= 4 * r_lo, r_hi < 4 * (r_lo + 1)).astype(jnp.float32)
    c_hi = jax.lax.broadcasted_iota(jnp.int32, (W4, W), 0)
    c_lo = jax.lax.broadcasted_iota(jnp.int32, (W4, W), 1)
    p_col = jnp.logical_and(c_hi >= 4 * c_lo, c_hi < 4 * (c_lo + 1)).astype(jnp.float32)

    def pool4(x):                              # (4H, 4W) -> (H, W) block sum
        y = jnp.dot(p_row, x, preferred_element_type=jnp.float32)
        return jnp.dot(y, p_col, preferred_element_type=jnp.float32)

    PM = pool4(M)                              # pooled(training_mask)
    PGM = pool4(GM)                            # pooled(gt_text * training_mask)
    sum_PM = jnp.sum(PM)
    sum_PGM = jnp.sum(PGM)

    # ---- text dice loss with OHEM-selected mask (folded) ----
    # selected_mask per hi-res pixel = (cond OR gt) AND tm  ->  pooled form:
    pooled_sel = cond * PM + (1.0 - cond) * PGM
    a_t = jnp.sum(s_text * PGM)                        # sum(p * t)
    b_t = jnp.sum(s_text * s_text * pooled_sel) + eps  # sum(p * p) + eps
    c_t = sum_PGM + eps                                # sum(t * t) + eps  (binary gt)
    loss_text = 1.0 - 2.0 * a_t / (b_t + c_t)

    # ---- iou_text: 2-class masked IoU, mask = training_mask ----
    it1 = jnp.sum(pp * PGM)
    ut1 = jnp.sum(pp * PM + (1.0 - pp) * PGM)
    it0 = jnp.sum((1.0 - pp) * (PM - PGM))
    ut0 = sum_PM - it1
    iou_text = 0.5 * (it1 / (ut1 + _IOU_EPS) + it0 / (ut0 + _IOU_EPS))

    # ---- kernel dice losses; sample mask = (text > 0) * training_mask ----
    pp_PM = pp * PM
    lk = 0.0
    for i in range(K):                                  # static, unrolled
        ki = maps_ref[0, 1 + i]                         # (H, W) low-res kernel map
        sk = jax.nn.sigmoid(ki)
        PKMi = pool4(gtk_ref[0, i].astype(jnp.float32) * M)
        a_i = jnp.sum(sk * pp * PKMi)
        b_i = jnp.sum(sk * sk * pp_PM) + eps
        c_i = jnp.sum(pp * PKMi) + eps
        lk = lk + (1.0 - 2.0 * a_i / (b_i + c_i))
    loss_kernels = lk / K

    # ---- iou_kernel: pred = last kernel > 0, tgt = last gt kernel, mask = tm*gt ----
    kpp = (maps_ref[0, K] > 0.0).astype(jnp.float32)
    PKGM = pool4(gtk_ref[0, K - 1].astype(jnp.float32) * GM)
    ik1 = jnp.sum(kpp * PKGM)
    uk1 = jnp.sum(kpp * PGM + (1.0 - kpp) * PKGM)
    ik0 = jnp.sum((1.0 - kpp) * (PGM - PKGM))
    uk0 = sum_PGM - ik1
    iou_kernel = 0.5 * (ik1 / (uk1 + _IOU_EPS) + ik0 / (uk0 + _IOU_EPS))

    loss = alpha * loss_text + (1.0 - alpha) * loss_kernels

    # ---- single lane-dense writeback: rows 0..4 carry the 5 scalars ----
    row = jax.lax.broadcasted_iota(jnp.int32, (1, 8, 128), 1)
    out = (jnp.where(row == 0, loss_text, 0.0)
           + jnp.where(row == 1, iou_text, 0.0)
           + jnp.where(row == 2, loss_kernels, 0.0)
           + jnp.where(row == 3, iou_kernel, 0.0)
           + jnp.where(row == 4, loss, 0.0))
    out_ref[...] = out.astype(jnp.float32)


def pse_loss_forward(outputs, labels, *, alpha=0.7, ohem_ratio=3,
                     kernel_sample_mask='pred', reduction='sum', eps=1e-6):
    assert kernel_sample_mask == 'pred'
    assert reduction in ('sum', 'mean', 'none')

    maps = outputs['maps'].astype(jnp.float32)          # [B, 1+K, H, W]
    gt_texts, gt_kernels, training_masks = labels[1], labels[2], labels[3]
    B, C, H, W = maps.shape
    K = C - 1
    H4, W4 = 4 * H, 4 * W

    # Binary 0/1 maps: bf16 is exact for {0,1} and halves label DMA volume.
    gt_b16 = gt_texts.astype(jnp.bfloat16)
    gtk_b16 = gt_kernels.astype(jnp.bfloat16)
    tm_b16 = training_masks.astype(jnp.bfloat16)

    # ---- OHEM threshold selection (plain JAX) ----
    # TODO(synk): the neg_num-th order statistic (dynamic k) has no clean
    # Pallas TPU equivalent; it is computed here.  Because the 4x-upsampled
    # score is constant over each 4x4 block, it suffices to sort the LOW-RES
    # scores together with per-block negative-pixel counts (exact, 16x cheaper
    # than sorting the high-res map).
    gt_f = gt_texts.astype(jnp.float32)
    tm_f = training_masks.astype(jnp.float32)
    pos_num = jnp.sum(jnp.logical_and(gt_f > 0.5, tm_f > 0.5),
                      axis=(1, 2)).astype(jnp.int32)
    neg_hr = (gt_f <= 0.5)
    neg_total = jnp.sum(neg_hr, axis=(1, 2)).astype(jnp.int32)
    neg_num = jnp.minimum(pos_num * ohem_ratio, neg_total)
    fallback = jnp.logical_or(pos_num == 0, neg_num == 0)   # -> selected_mask = tm

    neg_cnt = (neg_hr.astype(jnp.int32)
               .reshape(B, H, 4, W, 4).sum(axis=(2, 4)))    # negatives per 4x4 block
    scores = maps[:, 0].reshape(B, H * W)
    counts = neg_cnt.reshape(B, H * W)
    order = jnp.argsort(-scores, axis=1)                    # descending by score
    s_sorted = jnp.take_along_axis(scores, order, axis=1)
    c_sorted = jnp.take_along_axis(counts, order, axis=1)
    csum = jnp.cumsum(c_sorted, axis=1)
    idx = jnp.argmax(csum >= neg_num[:, None], axis=1)      # first block reaching rank
    thresh = jnp.take_along_axis(s_sorted, idx[:, None], axis=1)[:, 0]
    # Fallback: threshold = -inf makes the in-kernel OHEM mask degrade to the
    # plain training mask, matching the reference behaviour.
    thresh = jnp.where(fallback, -jnp.inf, thresh).astype(jnp.float32)

    kernel = functools.partial(_pse_loss_kernel, alpha=float(alpha),
                               eps=float(eps), num_kernels=K, lr_h=H, lr_w=W)
    grid_spec = pltpu.PrefetchScalarGridSpec(
        num_scalar_prefetch=1,                               # thresh -> SMEM
        grid=(B,),
        in_specs=[
            pl.BlockSpec((1, C, H, W), lambda b, *p: (b, 0, 0, 0)),       # low-res maps
            pl.BlockSpec((1, H4, W4), lambda b, *p: (b, 0, 0)),           # gt_texts
            pl.BlockSpec((1, K, H4, W4), lambda b, *p: (b, 0, 0, 0)),     # gt_kernels
            pl.BlockSpec((1, H4, W4), lambda b, *p: (b, 0, 0)),           # training_masks
        ],
        out_specs=pl.BlockSpec((1, 8, 128), lambda b, *p: (b, 0, 0)),
    )
    out = pl.pallas_call(
        kernel,
        out_shape=jax.ShapeDtypeStruct((B, 8, 128), jnp.float32),
        grid_spec=grid_spec,
        compiler_params=pltpu.CompilerParams(dimension_semantics=("parallel",)),
    )(thresh, maps, gt_b16, gtk_b16, tm_b16)

    losses = dict(loss_text=out[:, 0, 0], iou_text=out[:, 1, 0],
                  loss_kernels=out[:, 2, 0], iou_kernel=out[:, 3, 0],
                  loss=out[:, 4, 0])
    if reduction == 'sum':
        losses = {k: jnp.sum(v) for k, v in losses.items()}
    elif reduction == 'mean':
        losses = {k: jnp.mean(v) for k, v in losses.items()}
    return losses


if __name__ == "__main__":
    key = jax.random.PRNGKey(0)
    B, K, H, W = 2, 3, 32, 32            # maps: [B, 1+K, H, W]; labels at 4x resolution
    k1, k2, k3, k4 = jax.random.split(key, 4)
    maps = jax.random.normal(k1, (B, 1 + K, H, W), dtype=jnp.float32)
    H4, W4 = 4 * H, 4 * W
    gt_texts = (jax.random.uniform(k2, (B, H4, W4)) > 0.7).astype(jnp.float32)
    gt_kernels = (jax.random.uniform(k3, (B, K, H4, W4)) > 0.8).astype(jnp.float32)
    training_masks = (jax.random.uniform(k4, (B, H4, W4)) > 0.1).astype(jnp.float32)
    imgs = jnp.zeros((B, 3, H4, W4), jnp.float32)   # labels[0] is unused by forward()

    outputs = {'maps': maps}
    labels = [imgs, gt_texts, gt_kernels, training_masks]

    losses = pse_loss_forward(outputs, labels, alpha=0.7, ohem_ratio=3,
                              kernel_sample_mask='pred', reduction='sum')
    jax.block_until_ready(losses)
    print("KERNEL_OK")
</pallas_src>

<mosaic_0001>
module attributes {stable_mosaic.version = 11 : i64} {
  func.func @_pse_loss_kernel(%arg0: i32, %arg1: memref<2xf32, #tpu.memory_space<smem>>, %arg2: memref<1x4x32x32xf32, #tpu.memory_space<vmem>>, %arg3: memref<1x128x128xbf16, #tpu.memory_space<vmem>>, %arg4: memref<1x3x128x128xbf16, #tpu.memory_space<vmem>>, %arg5: memref<1x128x128xbf16, #tpu.memory_space<vmem>>, %arg6: memref<1x8x128xf32, #tpu.memory_space<vmem>>) attributes {dimension_semantics = [#tpu.dimension_semantics<parallel>], iteration_bounds = array<i64: 2>, scalar_prefetch = 1 : i64, scratch_operands = 0 : i64, tpu.core_type = #tpu.core_type<tc>, window_params = [{transform_indices = @transform_0, window_bounds = array<i64: 1, 4, 32, 32>}, {transform_indices = @transform_1, window_bounds = array<i64: 1, 128, 128>}, {transform_indices = @transform_2, window_bounds = array<i64: 1, 3, 128, 128>}, {transform_indices = @transform_3, window_bounds = array<i64: 1, 128, 128>}, {transform_indices = @transform_4, window_bounds = array<i64: 1, 8, 128>}]} {
    %0 = arith.index_cast %arg0 : i32 to index
    %1 = memref.load %arg1[%0] : memref<2xf32, #tpu.memory_space<smem>>
    %c0 = arith.constant 0 : index
    %c0_0 = arith.constant 0 : index
    %c0_1 = arith.constant 0 : index
    %c0_2 = arith.constant 0 : index
    %2 = vector.load %arg2[%c0, %c0_0, %c0_1, %c0_2] : memref<1x4x32x32xf32, #tpu.memory_space<vmem>>, vector<1x1x32x32xf32>
    %3 = vector.shape_cast %2 : vector<1x1x32x32xf32> to vector<32x32xf32>
    %4 = arith.negf %3 : vector<32x32xf32>
    %5 = math.exp %4 : vector<32x32xf32>
    %cst = arith.constant 1.000000e+00 : f32
    %6 = vector.broadcast %cst : f32 to vector<32x32xf32>
    %7 = arith.addf %6, %5 : vector<32x32xf32>
    %8 = arith.divf %6, %7 : vector<32x32xf32>
    %9 = vector.broadcast %1 : f32 to vector<32x32xf32>
    %10 = arith.cmpf oge, %3, %9 : vector<32x32xf32>
    %11 = arith.extui %10 : vector<32x32xi1> to vector<32x32xi32>
    %12 = arith.sitofp %11 : vector<32x32xi32> to vector<32x32xf32>
    %cst_3 = arith.constant 0.000000e+00 : f32
    %13 = vector.broadcast %cst_3 : f32 to vector<32x32xf32>
    %14 = arith.cmpf ogt, %3, %13 : vector<32x32xf32>
    %15 = arith.extui %14 : vector<32x32xi1> to vector<32x32xi32>
    %16 = arith.sitofp %15 : vector<32x32xi32> to vector<32x32xf32>
    %c0_4 = arith.constant 0 : index
    %c0_5 = arith.constant 0 : index
    %c0_6 = arith.constant 0 : index
    %17 = vector.load %arg3[%c0_4, %c0_5, %c0_6] : memref<1x128x128xbf16, #tpu.memory_space<vmem>>, vector<1x128x128xbf16>
    %18 = vector.shape_cast %17 : vector<1x128x128xbf16> to vector<128x128xbf16>
    %19 = arith.extf %18 : vector<128x128xbf16> to vector<128x128xf32>
    %c0_7 = arith.constant 0 : index
    %c0_8 = arith.constant 0 : index
    %c0_9 = arith.constant 0 : index
    %20 = vector.load %arg5[%c0_7, %c0_8, %c0_9] : memref<1x128x128xbf16, #tpu.memory_space<vmem>>, vector<1x128x128xbf16>
    %21 = vector.shape_cast %20 : vector<1x128x128xbf16> to vector<128x128xbf16>
    %22 = arith.extf %21 : vector<128x128xbf16> to vector<128x128xf32>
    %23 = arith.mulf %19, %22 : vector<128x128xf32>
    %24 = tpu.iota {dimensions = array<i32: 0>} : vector<32x128xi32>
    %25 = tpu.iota {dimensions = array<i32: 1>} : vector<32x128xi32>
    %c4_i32 = arith.constant 4 : i32
    %26 = vector.broadcast %c4_i32 : i32 to vector<32x128xi32>
    %27 = arith.muli %26, %24 : vector<32x128xi32>
    %28 = arith.cmpi sge, %25, %27 : vector<32x128xi32>
    %c1_i32 = arith.constant 1 : i32
    %29 = vector.broadcast %c1_i32 : i32 to vector<32x128xi32>
    %30 = arith.addi %24, %29 : vector<32x128xi32>
    %c4_i32_10 = arith.constant 4 : i32
    %31 = vector.broadcast %c4_i32_10 : i32 to vector<32x128xi32>
    %32 = arith.muli %31, %30 : vector<32x128xi32>
    %33 = arith.cmpi slt, %25, %32 : vector<32x128xi32>
    %34 = arith.andi %28, %33 : vector<32x128xi1>
    %35 = arith.extui %34 : vector<32x128xi1> to vector<32x128xi32>
    %36 = arith.sitofp %35 : vector<32x128xi32> to vector<32x128xf32>
    %37 = tpu.iota {dimensions = array<i32: 0>} : vector<128x32xi32>
    %38 = tpu.iota {dimensions = array<i32: 1>} : vector<128x32xi32>
    %c4_i32_11 = arith.constant 4 : i32
    %39 = vector.broadcast %c4_i32_11 : i32 to vector<128x32xi32>
    %40 = arith.muli %39, %38 : vector<128x32xi32>
    %41 = arith.cmpi sge, %37, %40 : vector<128x32xi32>
    %c1_i32_12 = arith.constant 1 : i32
    %42 = vector.broadcast %c1_i32_12 : i32 to vector<128x32xi32>
    %43 = arith.addi %38, %42 : vector<128x32xi32>
    %c4_i32_13 = arith.constant 4 : i32
    %44 = vector.broadcast %c4_i32_13 : i32 to vector<128x32xi32>
    %45 = arith.muli %44, %43 : vector<128x32xi32>
    %46 = arith.cmpi slt, %37, %45 : vector<128x32xi32>
    %47 = arith.andi %41, %46 : vector<128x32xi1>
    %48 = arith.extui %47 : vector<128x32xi1> to vector<128x32xi32>
    %49 = arith.sitofp %48 : vector<128x32xi32> to vector<128x32xf32>
    %cst_14 = arith.constant dense<0.000000e+00> : vector<32x128xf32>
    %50 = tpu.matmul %36, %22, %cst_14 {dimension_numbers = #tpu.dot_dimension_numbers<[1], [0], [0], [1], [0, 0, 1, 1], [], []>} : vector<32x128xf32>, vector<128x128xf32>, vector<32x128xf32> -> vector<32x128xf32>
    %cst_15 = arith.constant dense<0.000000e+00> : vector<32x32xf32>
    %51 = tpu.matmul %50, %49, %cst_15 {dimension_numbers = #tpu.dot_dimension_numbers<[1], [0], [0], [1], [0, 0, 1, 1], [], []>} : vector<32x128xf32>, vector<128x32xf32>, vector<32x32xf32> -> vector<32x32xf32>
    %cst_16 = arith.constant dense<0.000000e+00> : vector<32x128xf32>
    %52 = tpu.matmul %36, %23, %cst_16 {dimension_numbers = #tpu.dot_dimension_numbers<[1], [0], [0], [1], [0, 0, 1, 1], [], []>} : vector<32x128xf32>, vector<128x128xf32>, vector<32x128xf32> -> vector<32x128xf32>
    %cst_17 = arith.constant dense<0.000000e+00> : vector<32x32xf32>
    %53 = tpu.matmul %52, %49, %cst_17 {dimension_numbers = #tpu.dot_dimension_numbers<[1], [0], [0], [1], [0, 0, 1, 1], [], []>} : vector<32x128xf32>, vector<128x32xf32>, vector<32x32xf32> -> vector<32x32xf32>
    %54 = vector.shape_cast %51 : vector<32x32xf32> to vector<1x32x32xf32>
    %cst_18 = arith.constant dense<0.000000e+00> : vector<1xf32>
    %55 = vector.multi_reduction <add>, %54, %cst_18 [1, 2] : vector<1x32x32xf32> to vector<1xf32>
    %56 = vector.shape_cast %55 : vector<1xf32> to vector<1x1x1xf32>
    %57 = vector.extract %56[0, 0, 0] : f32 from vector<1x1x1xf32>
    %58 = vector.shape_cast %53 : vector<32x32xf32> to vector<1x32x32xf32>
    %cst_19 = arith.constant dense<0.000000e+00> : vector<1xf32>
    %59 = vector.multi_reduction <add>, %58, %cst_19 [1, 2] : vector<1x32x32xf32> to vector<1xf32>
    %60 = vector.shape_cast %59 : vector<1xf32> to vector<1x1x1xf32>
    %61 = vector.extract %60[0, 0, 0] : f32 from vector<1x1x1xf32>
    %62 = arith.mulf %12, %51 : vector<32x32xf32>
    %cst_20 = arith.constant 1.000000e+00 : f32
    %63 = vector.broadcast %cst_20 : f32 to vector<32x32xf32>
    %64 = arith.subf %63, %12 : vector<32x32xf32>
    %65 = arith.mulf %64, %53 : vector<32x32xf32>
    %66 = arith.addf %62, %65 : vector<32x32xf32>
    %67 = arith.mulf %8, %53 : vector<32x32xf32>
    %68 = vector.shape_cast %67 : vector<32x32xf32> to vector<1x32x32xf32>
    %cst_21 = arith.constant dense<0.000000e+00> : vector<1xf32>
    %69 = vector.multi_reduction <add>, %68, %cst_21 [1, 2] : vector<1x32x32xf32> to vector<1xf32>
    %70 = vector.shape_cast %69 : vector<1xf32> to vector<1x1x1xf32>
    %71 = vector.extract %70[0, 0, 0] : f32 from vector<1x1x1xf32>
    %72 = arith.mulf %8, %8 : vector<32x32xf32>
    %73 = arith.mulf %72, %66 : vector<32x32xf32>
    %74 = vector.shape_cast %73 : vector<32x32xf32> to vector<1x32x32xf32>
    %cst_22 = arith.constant dense<0.000000e+00> : vector<1xf32>
    %75 = vector.multi_reduction <add>, %74, %cst_22 [1, 2] : vector<1x32x32xf32> to vector<1xf32>
    %76 = vector.shape_cast %75 : vector<1xf32> to vector<1x1x1xf32>
    %77 = vector.extract %76[0, 0, 0] : f32 from vector<1x1x1xf32>
    %cst_23 = arith.constant 9.99999997E-7 : f32
    %78 = arith.addf %77, %cst_23 : f32
    %cst_24 = arith.constant 9.99999997E-7 : f32
    %79 = arith.addf %61, %cst_24 : f32
    %cst_25 = arith.constant 2.000000e+00 : f32
    %80 = arith.mulf %cst_25, %71 : f32
    %81 = arith.addf %78, %79 : f32
    %82 = arith.divf %80, %81 : f32
    %cst_26 = arith.constant 1.000000e+00 : f32
    %83 = arith.subf %cst_26, %82 : f32
    %84 = arith.mulf %16, %53 : vector<32x32xf32>
    %85 = vector.shape_cast %84 : vector<32x32xf32> to vector<1x32x32xf32>
    %cst_27 = arith.constant dense<0.000000e+00> : vector<1xf32>
    %86 = vector.multi_reduction <add>, %85, %cst_27 [1, 2] : vector<1x32x32xf32> to vector<1xf32>
    %87 = vector.shape_cast %86 : vector<1xf32> to vector<1x1x1xf32>
    %88 = vector.extract %87[0, 0, 0] : f32 from vector<1x1x1xf32>
    %89 = arith.mulf %16, %51 : vector<32x32xf32>
    %cst_28 = arith.constant 1.000000e+00 : f32
    %90 = vector.broadcast %cst_28 : f32 to vector<32x32xf32>
    %91 = arith.subf %90, %16 : vector<32x32xf32>
    %92 = arith.mulf %91, %53 : vector<32x32xf32>
    %93 = arith.addf %89, %92 : vector<32x32xf32>
    %94 = vector.shape_cast %93 : vector<32x32xf32> to vector<1x32x32xf32>
    %cst_29 = arith.constant dense<0.000000e+00> : vector<1xf32>
    %95 = vector.multi_reduction <add>, %94, %cst_29 [1, 2] : vector<1x32x32xf32> to vector<1xf32>
    %96 = vector.shape_cast %95 : vector<1xf32> to vector<1x1x1xf32>
    %97 = vector.extract %96[0, 0, 0] : f32 from vector<1x1x1xf32>
    %cst_30 = arith.constant 1.000000e+00 : f32
    %98 = vector.broadcast %cst_30 : f32 to vector<32x32xf32>
    %99 = arith.subf %98, %16 : vector<32x32xf32>
    %100 = arith.subf %51, %53 : vector<32x32xf32>
    %101 = arith.mulf %99, %100 : vector<32x32xf32>
    %102 = vector.shape_cast %101 : vector<32x32xf32> to vector<1x32x32xf32>
    %cst_31 = arith.constant dense<0.000000e+00> : vector<1xf32>
    %103 = vector.multi_reduction <add>, %102, %cst_31 [1, 2] : vector<1x32x32xf32> to vector<1xf32>
    %104 = vector.shape_cast %103 : vector<1xf32> to vector<1x1x1xf32>
    %105 = vector.extract %104[0, 0, 0] : f32 from vector<1x1x1xf32>
    %106 = arith.subf %57, %88 : f32
    %cst_32 = arith.constant 9.99999997E-7 : f32
    %107 = arith.addf %97, %cst_32 : f32
    %108 = arith.divf %88, %107 : f32
    %cst_33 = arith.constant 9.99999997E-7 : f32
    %109 = arith.addf %106, %cst_33 : f32
    %110 = arith.divf %105, %109 : f32
    %111 = arith.addf %108, %110 : f32
    %cst_34 = arith.constant 5.000000e-01 : f32
    %112 = arith.mulf %cst_34, %111 : f32
    %113 = arith.mulf %16, %51 : vector<32x32xf32>
    %c0_35 = arith.constant 0 : index
    %c1 = arith.constant 1 : index
    %c0_36 = arith.constant 0 : index
    %c0_37 = arith.constant 0 : index
    %114 = vector.load %arg2[%c0_35, %c1, %c0_36, %c0_37] : memref<1x4x32x32xf32, #tpu.memory_space<vmem>>, vector<1x1x32x32xf32>
    %115 = vector.shape_cast %114 : vector<1x1x32x32xf32> to vector<32x32xf32>
    %116 = arith.negf %115 : vector<32x32xf32>
    %117 = math.exp %116 : vector<32x32xf32>
    %cst_38 = arith.constant 1.000000e+00 : f32
    %118 = vector.broadcast %cst_38 : f32 to vector<32x32xf32>
    %119 = arith.addf %118, %117 : vector<32x32xf32>
    %120 = arith.divf %118, %119 : vector<32x32xf32>
    %c0_39 = arith.constant 0 : index
    %c0_40 = arith.constant 0 : index
    %c0_41 = arith.constant 0 : index
    %c0_42 = arith.constant 0 : index
    %121 = vector.load %arg4[%c0_39, %c0_40, %c0_41, %c0_42] : memref<1x3x128x128xbf16, #tpu.memory_space<vmem>>, vector<1x1x128x128xbf16>
    %122 = vector.shape_cast %121 : vector<1x1x128x128xbf16> to vector<128x128xbf16>
    %123 = arith.extf %122 : vector<128x128xbf16> to vector<128x128xf32>
    %124 = arith.mulf %123, %22 : vector<128x128xf32>
    %cst_43 = arith.constant dense<0.000000e+00> : vector<32x128xf32>
    %125 = tpu.matmul %36, %124, %cst_43 {dimension_numbers = #tpu.dot_dimension_numbers<[1], [0], [0], [1], [0, 0, 1, 1], [], []>} : vector<32x128xf32>, vector<128x128xf32>, vector<32x128xf32> -> vector<32x128xf32>
    %cst_44 = arith.constant dense<0.000000e+00> : vector<32x32xf32>
    %126 = tpu.matmul %125, %49, %cst_44 {dimension_numbers = #tpu.dot_dimension_numbers<[1], [0], [0], [1], [0, 0, 1, 1], [], []>} : vector<32x128xf32>, vector<128x32xf32>, vector<32x32xf32> -> vector<32x32xf32>
    %127 = arith.mulf %120, %16 : vector<32x32xf32>
    %128 = arith.mulf %127, %126 : vector<32x32xf32>
    %129 = vector.shape_cast %128 : vector<32x32xf32> to vector<1x32x32xf32>
    %cst_45 = arith.constant dense<0.000000e+00> : vector<1xf32>
    %130 = vector.multi_reduction <add>, %129, %cst_45 [1, 2] : vector<1x32x32xf32> to vector<1xf32>
    %131 = vector.shape_cast %130 : vector<1xf32> to vector<1x1x1xf32>
    %132 = vector.extract %131[0, 0, 0] : f32 from vector<1x1x1xf32>
    %133 = arith.mulf %120, %120 : vector<32x32xf32>
    %134 = arith.mulf %133, %113 : vector<32x32xf32>
    %135 = vector.shape_cast %134 : vector<32x32xf32> to vector<1x32x32xf32>
    %cst_46 = arith.constant dense<0.000000e+00> : vector<1xf32>
    %136 = vector.multi_reduction <add>, %135, %cst_46 [1, 2] : vector<1x32x32xf32> to vector<1xf32>
    %137 = vector.shape_cast %136 : vector<1xf32> to vector<1x1x1xf32>
    %138 = vector.extract %137[0, 0, 0] : f32 from vector<1x1x1xf32>
    %cst_47 = arith.constant 9.99999997E-7 : f32
    %139 = arith.addf %138, %cst_47 : f32
    %140 = arith.mulf %16, %126 : vector<32x32xf32>
    %141 = vector.shape_cast %140 : vector<32x32xf32> to vector<1x32x32xf32>
    %cst_48 = arith.constant dense<0.000000e+00> : vector<1xf32>
    %142 = vector.multi_reduction <add>, %141, %cst_48 [1, 2] : vector<1x32x32xf32> to vector<1xf32>
    %143 = vector.shape_cast %142 : vector<1xf32> to vector<1x1x1xf32>
    %144 = vector.extract %143[0, 0, 0] : f32 from vector<1x1x1xf32>
    %cst_49 = arith.constant 9.99999997E-7 : f32
    %145 = arith.addf %144, %cst_49 : f32
    %cst_50 = arith.constant 2.000000e+00 : f32
    %146 = arith.mulf %cst_50, %132 : f32
    %147 = arith.addf %139, %145 : f32
    %148 = arith.divf %146, %147 : f32
    %cst_51 = arith.constant 1.000000e+00 : f32
    %149 = arith.subf %cst_51, %148 : f32
    %cst_52 = arith.constant 0.000000e+00 : f32
    %150 = arith.addf %cst_52, %149 : f32
    %c0_53 = arith.constant 0 : index
    %c2 = arith.constant 2 : index
    %c0_54 = arith.constant 0 : index
    %c0_55 = arith.constant 0 : index
    %151 = vector.load %arg2[%c0_53, %c2, %c0_54, %c0_55] : memref<1x4x32x32xf32, #tpu.memory_space<vmem>>, vector<1x1x32x32xf32>
    %152 = vector.shape_cast %151 : vector<1x1x32x32xf32> to vector<32x32xf32>
    %153 = arith.negf %152 : vector<32x32xf32>
    %154 = math.exp %153 : vector<32x32xf32>
    %cst_56 = arith.constant 1.000000e+00 : f32
    %155 = vector.broadcast %cst_56 : f32 to vector<32x32xf32>
    %156 = arith.addf %155, %154 : vector<32x32xf32>
    %157 = arith.divf %155, %156 : vector<32x32xf32>
    %c0_57 = arith.constant 0 : index
    %c1_58 = arith.constant 1 : index
    %c0_59 = arith.constant 0 : index
    %c0_60 = arith.constant 0 : index
    %158 = vector.load %arg4[%c0_57, %c1_58, %c0_59, %c0_60] : memref<1x3x128x128xbf16, #tpu.memory_space<vmem>>, vector<1x1x128x128xbf16>
    %159 = vector.shape_cast %158 : vector<1x1x128x128xbf16> to vector<128x128xbf16>
    %160 = arith.extf %159 : vector<128x128xbf16> to vector<128x128xf32>
    %161 = arith.mulf %160, %22 : vector<128x128xf32>
    %cst_61 = arith.constant dense<0.000000e+00> : vector<32x128xf32>
    %162 = tpu.matmul %36, %161, %cst_61 {dimension_numbers = #tpu.dot_dimension_numbers<[1], [0], [0], [1], [0, 0, 1, 1], [], []>} : vector<32x128xf32>, vector<128x128xf32>, vector<32x128xf32> -> vector<32x128xf32>
    %cst_62 = arith.constant dense<0.000000e+00> : vector<32x32xf32>
    %163 = tpu.matmul %162, %49, %cst_62 {dimension_numbers = #tpu.dot_dimension_numbers<[1], [0], [0], [1], [0, 0, 1, 1], [], []>} : vector<32x128xf32>, vector<128x32xf32>, vector<32x32xf32> -> vector<32x32xf32>
    %164 = arith.mulf %157, %16 : vector<32x32xf32>
    %165 = arith.mulf %164, %163 : vector<32x32xf32>
    %166 = vector.shape_cast %165 : vector<32x32xf32> to vector<1x32x32xf32>
    %cst_63 = arith.constant dense<0.000000e+00> : vector<1xf32>
    %167 = vector.multi_reduction <add>, %166, %cst_63 [1, 2] : vector<1x32x32xf32> to vector<1xf32>
    %168 = vector.shape_cast %167 : vector<1xf32> to vector<1x1x1xf32>
    %169 = vector.extract %168[0, 0, 0] : f32 from vector<1x1x1xf32>
    %170 = arith.mulf %157, %157 : vector<32x32xf32>
    %171 = arith.mulf %170, %113 : vector<32x32xf32>
    %172 = vector.shape_cast %171 : vector<32x32xf32> to vector<1x32x32xf32>
    %cst_64 = arith.constant dense<0.000000e+00> : vector<1xf32>
    %173 = vector.multi_reduction <add>, %172, %cst_64 [1, 2] : vector<1x32x32xf32> to vector<1xf32>
    %174 = vector.shape_cast %173 : vector<1xf32> to vector<1x1x1xf32>
    %175 = vector.extract %174[0, 0, 0] : f32 from vector<1x1x1xf32>
    %cst_65 = arith.constant 9.99999997E-7 : f32
    %176 = arith.addf %175, %cst_65 : f32
    %177 = arith.mulf %16, %163 : vector<32x32xf32>
    %178 = vector.shape_cast %177 : vector<32x32xf32> to vector<1x32x32xf32>
    %cst_66 = arith.constant dense<0.000000e+00> : vector<1xf32>
    %179 = vector.multi_reduction <add>, %178, %cst_66 [1, 2] : vector<1x32x32xf32> to vector<1xf32>
    %180 = vector.shape_cast %179 : vector<1xf32> to vector<1x1x1xf32>
    %181 = vector.extract %180[0, 0, 0] : f32 from vector<1x1x1xf32>
    %cst_67 = arith.constant 9.99999997E-7 : f32
    %182 = arith.addf %181, %cst_67 : f32
    %cst_68 = arith.constant 2.000000e+00 : f32
    %183 = arith.mulf %cst_68, %169 : f32
    %184 = arith.addf %176, %182 : f32
    %185 = arith.divf %183, %184 : f32
    %cst_69 = arith.constant 1.000000e+00 : f32
    %186 = arith.subf %cst_69, %185 : f32
    %187 = arith.addf %150, %186 : f32
    %c0_70 = arith.constant 0 : index
    %c3 = arith.constant 3 : index
    %c0_71 = arith.constant 0 : index
    %c0_72 = arith.constant 0 : index
    %188 = vector.load %arg2[%c0_70, %c3, %c0_71, %c0_72] : memref<1x4x32x32xf32, #tpu.memory_space<vmem>>, vector<1x1x32x32xf32>
    %189 = vector.shape_cast %188 : vector<1x1x32x32xf32> to vector<32x32xf32>
    %190 = arith.negf %189 : vector<32x32xf32>
    %191 = math.exp %190 : vector<32x32xf32>
    %cst_73 = arith.constant 1.000000e+00 : f32
    %192 = vector.broadcast %cst_73 : f32 to vector<32x32xf32>
    %193 = arith.addf %192, %191 : vector<32x32xf32>
    %194 = arith.divf %192, %193 : vector<32x32xf32>
    %c0_74 = arith.constant 0 : index
    %c2_75 = arith.constant 2 : index
    %c0_76 = arith.constant 0 : index
    %c0_77 = arith.constant 0 : index
    %195 = vector.load %arg4[%c0_74, %c2_75, %c0_76, %c0_77] : memref<1x3x128x128xbf16, #tpu.memory_space<vmem>>, vector<1x1x128x128xbf16>
    %196 = vector.shape_cast %195 : vector<1x1x128x128xbf16> to vector<128x128xbf16>
    %197 = arith.extf %196 : vector<128x128xbf16> to vector<128x128xf32>
    %198 = arith.mulf %197, %22 : vector<128x128xf32>
    %cst_78 = arith.constant dense<0.000000e+00> : vector<32x128xf32>
    %199 = tpu.matmul %36, %198, %cst_78 {dimension_numbers = #tpu.dot_dimension_numbers<[1], [0], [0], [1], [0, 0, 1, 1], [], []>} : vector<32x128xf32>, vector<128x128xf32>, vector<32x128xf32> -> vector<32x128xf32>
    %cst_79 = arith.constant dense<0.000000e+00> : vector<32x32xf32>
    %200 = tpu.matmul %199, %49, %cst_79 {dimension_numbers = #tpu.dot_dimension_numbers<[1], [0], [0], [1], [0, 0, 1, 1], [], []>} : vector<32x128xf32>, vector<128x32xf32>, vector<32x32xf32> -> vector<32x32xf32>
    %201 = arith.mulf %194, %16 : vector<32x32xf32>
    %202 = arith.mulf %201, %200 : vector<32x32xf32>
    %203 = vector.shape_cast %202 : vector<32x32xf32> to vector<1x32x32xf32>
    %cst_80 = arith.constant dense<0.000000e+00> : vector<1xf32>
    %204 = vector.multi_reduction <add>, %203, %cst_80 [1, 2] : vector<1x32x32xf32> to vector<1xf32>
    %205 = vector.shape_cast %204 : vector<1xf32> to vector<1x1x1xf32>
    %206 = vector.extract %205[0, 0, 0] : f32 from vector<1x1x1xf32>
    %207 = arith.mulf %194, %194 : vector<32x32xf32>
    %208 = arith.mulf %207, %113 : vector<32x32xf32>
    %209 = vector.shape_cast %208 : vector<32x32xf32> to vector<1x32x32xf32>
    %cst_81 = arith.constant dense<0.000000e+00> : vector<1xf32>
    %210 = vector.multi_reduction <add>, %209, %cst_81 [1, 2] : vector<1x32x32xf32> to vector<1xf32>
    %211 = vector.shape_cast %210 : vector<1xf32> to vector<1x1x1xf32>
    %212 = vector.extract %211[0, 0, 0] : f32 from vector<1x1x1xf32>
    %cst_82 = arith.constant 9.99999997E-7 : f32
    %213 = arith.addf %212, %cst_82 : f32
    %214 = arith.mulf %16, %200 : vector<32x32xf32>
    %215 = vector.shape_cast %214 : vector<32x32xf32> to vector<1x32x32xf32>
    %cst_83 = arith.constant dense<0.000000e+00> : vector<1xf32>
    %216 = vector.multi_reduction <add>, %215, %cst_83 [1, 2] : vector<1x32x32xf32> to vector<1xf32>
    %217 = vector.shape_cast %216 : vector<1xf32> to vector<1x1x1xf32>
    %218 = vector.extract %217[0, 0, 0] : f32 from vector<1x1x1xf32>
    %cst_84 = arith.constant 9.99999997E-7 : f32
    %219 = arith.addf %218, %cst_84 : f32
    %cst_85 = arith.constant 2.000000e+00 : f32
    %220 = arith.mulf %cst_85, %206 : f32
    %221 = arith.addf %213, %219 : f32
    %222 = arith.divf %220, %221 : f32
    %cst_86 = arith.constant 1.000000e+00 : f32
    %223 = arith.subf %cst_86, %222 : f32
    %224 = arith.addf %187, %223 : f32
    %cst_87 = arith.constant 3.000000e+00 : f32
    %225 = arith.divf %224, %cst_87 : f32
    %c0_88 = arith.constant 0 : index
    %c3_89 = arith.constant 3 : index
    %c0_90 = arith.constant 0 : index
    %c0_91 = arith.constant 0 : index
    %226 = vector.load %arg2[%c0_88, %c3_89, %c0_90, %c0_91] : memref<1x4x32x32xf32, #tpu.memory_space<vmem>>, vector<1x1x32x32xf32>
    %227 = vector.shape_cast %226 : vector<1x1x32x32xf32> to vector<32x32xf32>
    %cst_92 = arith.constant 0.000000e+00 : f32
    %228 = vector.broadcast %cst_92 : f32 to vector<32x32xf32>
    %229 = arith.cmpf ogt, %227, %228 : vector<32x32xf32>
    %230 = arith.extui %229 : vector<32x32xi1> to vector<32x32xi32>
    %231 = arith.sitofp %230 : vector<32x32xi32> to vector<32x32xf32>
    %c0_93 = arith.constant 0 : index
    %c2_94 = arith.constant 2 : index
    %c0_95 = arith.constant 0 : index
    %c0_96 = arith.constant 0 : index
    %232 = vector.load %arg4[%c0_93, %c2_94, %c0_95, %c0_96] : memref<1x3x128x128xbf16, #tpu.memory_space<vmem>>, vector<1x1x128x128xbf16>
    %233 = vector.shape_cast %232 : vector<1x1x128x128xbf16> to vector<128x128xbf16>
    %234 = arith.extf %233 : vector<128x128xbf16> to vector<128x128xf32>
    %235 = arith.mulf %234, %23 : vector<128x128xf32>
    %cst_97 = arith.constant dense<0.000000e+00> : vector<32x128xf32>
    %236 = tpu.matmul %36, %235, %cst_97 {dimension_numbers = #tpu.dot_dimension_numbers<[1], [0], [0], [1], [0, 0, 1, 1], [], []>} : vector<32x128xf32>, vector<128x128xf32>, vector<32x128xf32> -> vector<32x128xf32>
    %cst_98 = arith.constant dense<0.000000e+00> : vector<32x32xf32>
    %237 = tpu.matmul %236, %49, %cst_98 {dimension_numbers = #tpu.dot_dimension_numbers<[1], [0], [0], [1], [0, 0, 1, 1], [], []>} : vector<32x128xf32>, vector<128x32xf32>, vector<32x32xf32> -> vector<32x32xf32>
    %238 = arith.mulf %231, %237 : vector<32x32xf32>
    %239 = vector.shape_cast %238 : vector<32x32xf32> to vector<1x32x32xf32>
    %cst_99 = arith.constant dense<0.000000e+00> : vector<1xf32>
    %240 = vector.multi_reduction <add>, %239, %cst_99 [1, 2] : vector<1x32x32xf32> to vector<1xf32>
    %241 = vector.shape_cast %240 : vector<1xf32> to vector<1x1x1xf32>
    %242 = vector.extract %241[0, 0, 0] : f32 from vector<1x1x1xf32>
    %243 = arith.mulf %231, %53 : vector<32x32xf32>
    %cst_100 = arith.constant 1.000000e+00 : f32
    %244 = vector.broadcast %cst_100 : f32 to vector<32x32xf32>
    %245 = arith.subf %244, %231 : vector<32x32xf32>
    %246 = arith.mulf %245, %237 : vector<32x32xf32>
    %247 = arith.addf %243, %246 : vector<32x32xf32>
    %248 = vector.shape_cast %247 : vector<32x32xf32> to vector<1x32x32xf32>
    %cst_101 = arith.constant dense<0.000000e+00> : vector<1xf32>
    %249 = vector.multi_reduction <add>, %248, %cst_101 [1, 2] : vector<1x32x32xf32> to vector<1xf32>
    %250 = vector.shape_cast %249 : vector<1xf32> to vector<1x1x1xf32>
    %251 = vector.extract %250[0, 0, 0] : f32 from vector<1x1x1xf32>
    %cst_102 = arith.constant 1.000000e+00 : f32
    %252 = vector.broadcast %cst_102 : f32 to vector<32x32xf32>
    %253 = arith.subf %252, %231 : vector<32x32xf32>
    %254 = arith.subf %53, %237 : vector<32x32xf32>
    %255 = arith.mulf %253, %254 : vector<32x32xf32>
    %256 = vector.shape_cast %255 : vector<32x32xf32> to vector<1x32x32xf32>
    %cst_103 = arith.constant dense<0.000000e+00> : vector<1xf32>
    %257 = vector.multi_reduction <add>, %256, %cst_103 [1, 2] : vector<1x32x32xf32> to vector<1xf32>
    %258 = vector.shape_cast %257 : vector<1xf32> to vector<1x1x1xf32>
    %259 = vector.extract %258[0, 0, 0] : f32 from vector<1x1x1xf32>
    %260 = arith.subf %61, %242 : f32
    %cst_104 = arith.constant 9.99999997E-7 : f32
    %261 = arith.addf %251, %cst_104 : f32
    %262 = arith.divf %242, %261 : f32
    %cst_105 = arith.constant 9.99999997E-7 : f32
    %263 = arith.addf %260, %cst_105 : f32
    %264 = arith.divf %259, %263 : f32
    %265 = arith.addf %262, %264 : f32
    %cst_106 = arith.constant 5.000000e-01 : f32
    %266 = arith.mulf %cst_106, %265 : f32
    %cst_107 = arith.constant 0.699999988 : f32
    %267 = arith.mulf %cst_107, %83 : f32
    %cst_108 = arith.constant 3.000000e-01 : f32
    %268 = arith.mulf %cst_108, %225 : f32
    %269 = arith.addf %267, %268 : f32
    %270 = tpu.iota {dimensions = array<i32: 1>} : vector<1x8x128xi32>
    %c0_i32 = arith.constant 0 : i32
    %271 = vector.broadcast %c0_i32 : i32 to vector<1x8x128xi32>
    %272 = arith.cmpi eq, %270, %271 : vector<1x8x128xi32>
    %cst_109 = arith.constant 0.000000e+00 : f32
    %273 = vector.broadcast %83 : f32 to vector<1x8x128xf32>
    %274 = vector.broadcast %cst_109 : f32 to vector<1x8x128xf32>
    %275 = arith.select %272, %273, %274 : vector<1x8x128xi1>, vector<1x8x128xf32>
    %c1_i32_110 = arith.constant 1 : i32
    %276 = vector.broadcast %c1_i32_110 : i32 to vector<1x8x128xi32>
    %277 = arith.cmpi eq, %270, %276 : vector<1x8x128xi32>
    %cst_111 = arith.constant 0.000000e+00 : f32
    %278 = vector.broadcast %112 : f32 to vector<1x8x128xf32>
    %279 = vector.broadcast %cst_111 : f32 to vector<1x8x128xf32>
    %280 = arith.select %277, %278, %279 : vector<1x8x128xi1>, vector<1x8x128xf32>
    %281 = arith.addf %275, %280 : vector<1x8x128xf32>
    %c2_i32 = arith.constant 2 : i32
    %282 = vector.broadcast %c2_i32 : i32 to vector<1x8x128xi32>
    %283 = arith.cmpi eq, %270, %282 : vector<1x8x128xi32>
    %cst_112 = arith.constant 0.000000e+00 : f32
    %284 = vector.broadcast %225 : f32 to vector<1x8x128xf32>
    %285 = vector.broadcast %cst_112 : f32 to vector<1x8x128xf32>
    %286 = arith.select %283, %284, %285 : vector<1x8x128xi1>, vector<1x8x128xf32>
    %287 = arith.addf %281, %286 : vector<1x8x128xf32>
    %c3_i32 = arith.constant 3 : i32
    %288 = vector.broadcast %c3_i32 : i32 to vector<1x8x128xi32>
    %289 = arith.cmpi eq, %270, %288 : vector<1x8x128xi32>
    %cst_113 = arith.constant 0.000000e+00 : f32
    %290 = vector.broadcast %266 : f32 to vector<1x8x128xf32>
    %291 = vector.broadcast %cst_113 : f32 to vector<1x8x128xf32>
    %292 = arith.select %289, %290, %291 : vector<1x8x128xi1>, vector<1x8x128xf32>
    %293 = arith.addf %287, %292 : vector<1x8x128xf32>
    %c4_i32_114 = arith.constant 4 : i32
    %294 = vector.broadcast %c4_i32_114 : i32 to vector<1x8x128xi32>
    %295 = arith.cmpi eq, %270, %294 : vector<1x8x128xi32>
    %cst_115 = arith.constant 0.000000e+00 : f32
    %296 = vector.broadcast %269 : f32 to vector<1x8x128xf32>
    %297 = vector.broadcast %cst_115 : f32 to vector<1x8x128xf32>
    %298 = arith.select %295, %296, %297 : vector<1x8x128xi1>, vector<1x8x128xf32>
    %299 = arith.addf %293, %298 : vector<1x8x128xf32>
    %c0_116 = arith.constant 0 : index
    %c0_117 = arith.constant 0 : index
    %c0_118 = arith.constant 0 : index
    %300 = vector.load %arg6[%c0_116, %c0_117, %c0_118] : memref<1x8x128xf32, #tpu.memory_space<vmem>>, vector<1x8x128xf32>
    tpu.vector_store %arg6[%c0_116, %c0_117, %c0_118], %299 {strides = array<i32>} : memref<1x8x128xf32, #tpu.memory_space<vmem>>, vector<1x8x128xf32>,
    return
  }
  func.func @transform_0(%arg0: i32, %arg1: memref<2xf32, #tpu.memory_space<smem>>) -> (i32, i32, i32, i32) {
    %c0_i32 = arith.constant 0 : i32
    %c0_i32_0 = arith.constant 0 : i32
    %c0_i32_1 = arith.constant 0 : i32
    %c0_i32_2 = arith.constant 0 : i32
    return %arg0, %c0_i32, %c0_i32_0, %c0_i32_1 : i32, i32, i32, i32
  }
  func.func @transform_1(%arg0: i32, %arg1: memref<2xf32, #tpu.memory_space<smem>>) -> (i32, i32, i32) {
    %c0_i32 = arith.constant 0 : i32
    %c0_i32_0 = arith.constant 0 : i32
    %c0_i32_1 = arith.constant 0 : i32
    return %arg0, %c0_i32, %c0_i32_0 : i32, i32, i32
  }
  func.func @transform_2(%arg0: i32, %arg1: memref<2xf32, #tpu.memory_space<smem>>) -> (i32, i32, i32, i32) {
    %c0_i32 = arith.constant 0 : i32
    %c0_i32_0 = arith.constant 0 : i32
    %c0_i32_1 = arith.constant 0 : i32
    %c0_i32_2 = arith.constant 0 : i32
    return %arg0, %c0_i32, %c0_i32_0, %c0_i32_1 : i32, i32, i32, i32
  }
  func.func @transform_3(%arg0: i32, %arg1: memref<2xf32, #tpu.memory_space<smem>>) -> (i32, i32, i32) {
    %c0_i32 = arith.constant 0 : i32
    %c0_i32_0 = arith.constant 0 : i32
    %c0_i32_1 = arith.constant 0 : i32
    return %arg0, %c0_i32, %c0_i32_0 : i32, i32, i32
  }
  func.func @transform_4(%arg0: i32, %arg1: memref<2xf32, #tpu.memory_space<smem>>) -> (i32, i32, i32) {
    %c0_i32 = arith.constant 0 : i32
    %c0_i32_0 = arith.constant 0 : i32
    %c0_i32_1 = arith.constant 0 : i32
    return %arg0, %c0_i32, %c0_i32_0 : i32, i32, i32
  }
}

</mosaic_0001>

<bundles_post_ra>
// kernel: tpu_custom_call.1
= control target key start
LH: loop header
LB: loop body
LE: loop exit
PB: predicated region body
PF: predicated region fallthrough
CT: control target
= control target key end

     0   :  { %s4108_s18 = smov [#allocation3]   ;;  %s5996_s0 = inlined_call_operand.hbm [shape: f32[2], index: 0, kind: input, shape index: {}]   ;;  %s5997_s1 = inlined_call_operand.hbm [shape: f32[2,4,32,32], index: 1, kind: input, shape index: {}]   ;;  %s5998_s2 = inlined_call_operand.hbm [shape: bf16[2,128,128], index: 2, kind: input, shape index: {}]   ;;  %s5999_s3 = inlined_call_operand.hbm [shape: bf16[2,3,128,128], index: 3, kind: input, shape index: {}]   ;;  %s6000_s4 = inlined_call_operand.hbm [shape: bf16[2,128,128], index: 4, kind: input, shape index: {}]   ;;  %s6001_s5 = inlined_call_operand.hbm [shape: f32[2,8,128], index: 5, kind: output, shape index: {}]  }
   0x1   :  { %6042 = sst [smem:[#allocation23_spill]] %s5997_s1 }
   0x2   :  { %6043 = sst [smem:[#allocation24_spill]] %s5998_s2 }
   0x3   :  { %11 = dma.hbm_to_smem %s5996_s0, 16, %s4108_s18, [#allocation2] }
   0x4   :  { %4074 = dma.done.wait [#allocation2], 16 }
   0x5   :  { %4075 = vsyncadd [#allocation2], 4294967280 }
   0x6   :  { %13 = sfence }
   0x7   :  { %14 = vsyncpa [#allocation5], 0 }
   0x8   :  { %16 = vsyncpa [#allocation5 + $0x1], 0 }
   0x9   :  { %17 = vsyncpa [#allocation8], 0 }
   0xa   :  { %19 = vsyncpa [#allocation8 + $0x1], 0 }
   0xb   :  { %20 = vsyncpa [#allocation11], 0 }
   0xc   :  { %22 = vsyncpa [#allocation11 + $0x1], 0 }
   0xd   :  { %23 = vsyncpa [#allocation6], 0 }
   0xe   :  { %25 = vsyncpa [#allocation6 + $0x1], 0  ;;  %s4153_s21 = smov 0   ;;  %s4155_s22 = smov 0  }
   0xf   :  { %s4157_s23 = smov 0   ;;  %s4159_s24 = smov 0  }
  0x10 LB: > { %s4174_s0 = sadd.s32 4294967295, %s4106_s24   ;;  %s2577_s25 = sadd.s32 4294967294, %s4106_s24   ;;  %s4106_s24 = sphi %s4159_s24, %s6142_s24   ;;  %s4102_s23 = sphi %s4157_s23, %s6141_s23   ;;  %s4098_s22 = sphi %s4155_s22, %s6140_s22   ;;  %s4094_s21 = sphi %s4153_s21, %s6139_s21  }
  0x11   : > { %s4178_s26 = sadd.s32 1, %s4106_s24   ;;  %s38_s27 = sadd.s32 1, %s4102_s23 }
  0x12   : > { %s35_s28 = ssub.s32 %s4106_s24, %s4178_s26  ;;  %p45_p0 = scmp.ne.s32.totalorder %s4102_s23, %s4098_s22 }
  0x13   : > { %p36_p1 = scmp.eq.s32.totalorder %s35_s28, 0  ;;  %p46_p2 = scmp.eq.s32.totalorder %s4106_s24, 0 }
  0x14   : > { %p51_p3 = scmp.ne.s32.totalorder %s4098_s22, %s4094_s21  ;;  %p52_p4 = scmp.eq.s32.totalorder %s4174_s0, 0 }
  0x15   : > { %s4190_s29 = scalar_select %p36_p1, %s4102_s23, %s38_s27  }
  0x16   : > { %p47_p5 = por %p46_p2, %p45_p0  ;;  %p4192_p6 = por %p52_p4, %p51_p3 }
  0x17   : > { %6044 = sst [smem:[#allocation18_spill]] %s4190_s29  ;;  %p153_p7 = scmp.eq.s32.totalorder %s4174_s0, 1 }
  0x18   : > { %s6045_s30 = scalar_select %p4192_p6, 1, 0 }
  0x19   : > { %p159_p8 = scmp.eq.s32.totalorder %s2577_s25, 1  ;;  %p3791_p10 = scmp.lt.s32.totalorder %s4106_s24, 2 }
  0x1a   : > { %p4199_p11 = por %p153_p7, %p45_p0  ;;  %s4208_s8 = sand.u32 1, %s4102_s23  }
  0x1b   : > { %p4203_p12 = por %p159_p8, %p51_p3  ;;  %p4210_p13 = pnand %p3791_p10, %p47_p5 }
  0x1c   : > { %s6046_s6 = scalar_select %p4199_p11, 1, 0 }
  0x1d   : > { %s6047_s7 = scalar_select %p4203_p12, 1, 0 }
  0x1e   : > { %s200_s10 = sand.u32 1, %s4106_s24   ;;  %s6004_s11 = sshll.u32 %s4208_s8, 6 }
  0x1f   : > { %s6005_s12 = sshll.u32 %s4106_s24, 10  ;;  %s6049_s2 = sld [smem:[#allocation24_spill]] }
  0x20   : > { %s204_s16 = scalar_lea.vmem [#allocation7], %s6004_s11  ;;  %s4229_s18 = scalar_lea.sflag [#allocation8], %s200_s10 }
  0x21   : > { %s211_s17 = sshll.u32 %s204_s16, 4  ;;  %p4235_p2 = pneg %p4210_p13  ;;  %s4226_s17 = int_to_ptr.vmem [resolvable:$true] %s211_s17 }
  0x25   : > { %s4222_s15 = scalar_lea.hbm %s6049_s2, %s6005_s12  ;;  %s3925_s28 = scalar_lea.hbm %s6049_s2, 2048 }
  0x26   : > { %s3920_s19 = scalar_lea.hbm %s4222_s15, 1024  ;;  %p3926_p5 = scmp.lt.s32.totalorder %s4222_s15, %s6049_s2 }
  0x27   : > { %p3921_p1 = scmp.ne.s32.totalorder %s4222_s15, %s3920_s19  ;;  %p3927_p7 = scmp.lt.s32.totalorder %s3925_s28, %s3920_s19 }
  0x29   : > { %p3923_p3 = pnand %p4235_p2, %p3921_p1  ;;  %p3928_p8 = por %p3927_p7, %p3926_p5 }
  0x2b   : > { %p3924_p4 = pneg %p3923_p3 }
  0x2d   : > { %p3929_p10 = pnand %p3928_p8, %p3924_p4 }
  0x2f   : > { %3932 = shalt.err (!%p3929_p10)
}
  0x30   : > { %s3933_s10 = scalar_lea.vmem %s4226_s17, 1024  ;;  %s4109_s16 = smov [#allocation7]  }
  0x31   : > { %p3934_p9 = scmp.ne.s32.totalorder %s4226_s17, %s3933_s10  ;;  %s3938_s25 = sshll.u32 %s4109_s16, 4  ;;  %s3939_s25 = int_to_ptr.vmem [resolvable:$false] %s3938_s25 }
  0x32   : > { %s3940_s27 = scalar_lea.vmem %s3939_s25, 2048  ;;  %p3941_p0 = scmp.lt.s32.totalorder %s4226_s17, %s3939_s25 }
  0x33   : > { %p3936_p1 = pnand %p3934_p9, %p4235_p2  ;;  %p3942_p12 = scmp.lt.s32.totalorder %s3940_s27, %s3933_s10 }
  0x35   : > { %p3937_p3 = pneg %p3936_p1  ;;  %p3943_p11 = por %p3942_p12, %p3941_p0 }
  0x37   : > { %p3944_p6 = pnand %p3943_p11, %p3937_p3 }
  0x39   : > { %3947 = shalt.err (!%p3944_p6)
}
  0x3a   : > { %s6006_s19 = smov 64   ;;  %s6008_s28 = smov 4  }
  0x3b   : > { %3780 = dma.hbm_to_vmem [thread:$0]  (!%p4210_p13), %s4222_s15, 1024, %s4226_s17, %s4229_s18, %s6006_s19, %s6006_s19, %s6008_s28  }
  0x3c   : > { %p261_p9 = scmp.lt.s32.totalorder %s4106_s24, 3  ;;  %s2580_s13 = sshll.u32 %s4208_s8, 7 }
  0x3d   : > { %s2811_s14 = sshll.u32 %s4106_s24, 11  ;;  %p6051_p6 = scmp.ge.s32.totalorder %s4106_s24, 1 }
  0x3e   : > { %s6053_s1 = sld [smem:[#allocation23_spill]]  ;;  %s183_s11 = scalar_lea.vmem [#allocation4], %s2580_s13 }
  0x3f   : > { %p4266_p11 = pnand %p6051_p6, %p261_p9  ;;  %s190_s12 = sshll.u32 %s183_s11, 4  ;;  %s4275_s12 = int_to_ptr.vmem [resolvable:$true] %s190_s12 }
  0x40   : > { %s3707_s15 = smul.u32 192, %s4208_s8  ;;  %s180_s17 = scalar_lea.sflag [#allocation5], %s4208_s8 }
  0x41   : > { %s6052_s10 = scalar_select %p4266_p11, 1, 0 }
  0x44   : > { %s4273_s27 = scalar_lea.hbm %s6053_s1, %s2811_s14  ;;  %s3953_s16 = scalar_lea.hbm %s6053_s1, 4096 }
  0x45   : > { %s3948_s19 = scalar_lea.hbm %s4273_s27, 2048  ;;  %p3954_p5 = scmp.lt.s32.totalorder %s4273_s27, %s6053_s1 }
  0x46   : > { %p3949_p12 = scmp.ne.s32.totalorder %s4273_s27, %s3948_s19  ;;  %p3955_p7 = scmp.lt.s32.totalorder %s3953_s16, %s3948_s19 }
  0x48   : > { %p3951_p0 = pnand %p3949_p12, %p4235_p2  ;;  %p3956_p8 = por %p3955_p7, %p3954_p5 }
  0x4a   : > { %p3952_p4 = pneg %p3951_p0 }
  0x4c   : > { %p3957_p10 = pnand %p3956_p8, %p3952_p4 }
  0x4e   : > { %3960 = shalt.err (!%p3957_p10)
}
  0x4f   : > { %s3961_s11 = scalar_lea.vmem %s4275_s12, 2048  ;;  %s4112_s13 = smov [#allocation4]  }
  0x50   : > { %p3962_p1 = scmp.ne.s32.totalorder %s4275_s12, %s3961_s11  ;;  %s3966_s2 = sshll.u32 %s4112_s13, 4  ;;  %s3967_s2 = int_to_ptr.vmem [resolvable:$false] %s3966_s2 }
  0x51   : > { %s3968_s28 = scalar_lea.vmem %s3967_s2, 4096  ;;  %p3969_p6 = scmp.lt.s32.totalorder %s4275_s12, %s3967_s2 }
  0x52   : > { %p3964_p3 = pnand %p3962_p1, %p4235_p2  ;;  %p3970_p12 = scmp.lt.s32.totalorder %s3968_s28, %s3961_s11 }
  0x54   : > { %p3965_p9 = pneg %p3964_p3  ;;  %p3971_p0 = por %p3970_p12, %p3969_p6 }
  0x56   : > { %p3972_p11 = pnand %p3971_p0, %p3965_p9 }
  0x58   : > { %3975 = shalt.err (!%p3972_p11)
}
  0x59   : > { %s4113_s19 = smov 128   ;;  %s4114_s16 = smov 8  }
  0x5a   : > { %3777 = dma.hbm_to_vmem [thread:$0]  (!%p4210_p13), %s4273_s27, 2048, %s4275_s12, %s180_s17, %s4113_s19, %s4113_s19, %s4114_s16  }
  0x5b   : > { %s3708_s14 = smul.u32 3072, %s4106_s24  ;;  %s225_s25 = scalar_lea.vmem [#allocation9], %s3707_s15 }
  0x5c   : > { %s232_s13 = sshll.u32 %s225_s25, 4  ;;  %s3981_s27 = scalar_lea.hbm %s5999_s3, 6144  ;;  %s233_s13 = int_to_ptr.vmem [resolvable:$true] %s232_s13 }
  0x5d   : > { %s4307_s28 = scalar_lea.hbm %s5999_s3, %s3708_s14 }
  0x5e   : > { %s3976_s1 = scalar_lea.hbm %s4307_s28, 3072  ;;  %p3982_p7 = scmp.lt.s32.totalorder %s4307_s28, %s5999_s3 }
  0x5f   : > { %p3977_p11 = scmp.ne.s32.totalorder %s4307_s28, %s3976_s1  ;;  %p3983_p8 = scmp.lt.s32.totalorder %s3981_s27, %s3976_s1 }
  0x61   : > { %p3979_p4 = pnand %p3977_p11, %p4235_p2  ;;  %p3984_p10 = por %p3983_p8, %p3982_p7 }
  0x63   : > { %p3980_p5 = pneg %p3979_p4 }
  0x65   : > { %p3985_p1 = pnand %p3984_p10, %p3980_p5 }
  0x67   : > { %3988 = shalt.err (!%p3985_p1)
}
  0x68   : > { %s3989_s19 = scalar_lea.vmem %s233_s13, 3072  ;;  %s4115_s16 = smov [#allocation9]  }
  0x69   : > { %p3990_p3 = scmp.ne.s32.totalorder %s233_s13, %s3989_s19  ;;  %s3994_s14 = sshll.u32 %s4115_s16, 4  ;;  %s3995_s14 = int_to_ptr.vmem [resolvable:$false] %s3994_s14 }
  0x6a   : > { %s3996_s25 = scalar_lea.vmem %s3995_s14, 6144  ;;  %p3997_p12 = scmp.lt.s32.totalorder %s233_s13, %s3995_s14 }
  0x6b   : > { %p3992_p9 = pnand %p3990_p3, %p4235_p2  ;;  %p3998_p0 = scmp.lt.s32.totalorder %s3996_s25, %s3989_s19 }
  0x6d   : > { %p3993_p6 = pneg %p3992_p9  ;;  %p3999_p11 = por %p3998_p0, %p3997_p12 }
  0x6f   : > { %p4000_p4 = pnand %p3999_p11, %p3993_p6 }
  0x71   : > { %4003 = shalt.err (!%p4000_p4)
}
  0x72   : > { %s6054_s1 = smov 4   ;;  %s6055_s29 = smov 64  }
  0x73   : > { %3783 = dma.hbm_to_vmem [thread:$0]  (!%p4210_p13), %s4307_s28, 3072, %s233_s13, %s4229_s18, %s6055_s29, %s6055_s29, %s6054_s1  }
  0x74   : > { %s6056_s11 = sshll.u32 %s4106_s24, 10  ;;  %s6057_s15 = sshll.u32 %s4208_s8, 6 }
  0x75   : > { %s4334_s27 = scalar_lea.hbm %s6000_s4, %s6056_s11  ;;  %s246_s17 = scalar_lea.vmem [#allocation10], %s6057_s15 }
  0x76   : > { %s253_s19 = sshll.u32 %s246_s17, 4  ;;  %s243_s16 = scalar_lea.sflag [#allocation11], %s4208_s8  ;;  %s4338_s19 = int_to_ptr.vmem [resolvable:$true] %s253_s19 }
  0x77   : > { %s4004_s14 = scalar_lea.hbm %s4334_s27, 1024  ;;  %s4009_s28 = scalar_lea.hbm %s6000_s4, 2048 }
  0x78   : > { %p4005_p5 = scmp.ne.s32.totalorder %s4334_s27, %s4004_s14  ;;  %p4010_p10 = scmp.lt.s32.totalorder %s4334_s27, %s6000_s4 }
  0x79   : > { %p4011_p1 = scmp.lt.s32.totalorder %s4009_s28, %s4004_s14 }
  0x7a   : > { %p4007_p7 = pnand %p4005_p5, %p4235_p2 }
  0x7b   : > { %p4012_p3 = por %p4011_p1, %p4010_p10 }
  0x7c   : > { %p4008_p8 = pneg %p4007_p7 }
  0x7e   : > { %p4013_p9 = pnand %p4012_p3, %p4008_p8 }
  0x80   : > { %4016 = shalt.err (!%p4013_p9)
}
  0x81   : > { %s4017_s8 = scalar_lea.vmem %s4338_s19, 1024  ;;  %s4116_s2 = smov [#allocation10]  }
  0x82   : > { %p4018_p6 = scmp.ne.s32.totalorder %s4338_s19, %s4017_s8  ;;  %s4022_s12 = sshll.u32 %s4116_s2, 4  ;;  %s4023_s12 = int_to_ptr.vmem [resolvable:$false] %s4022_s12 }
  0x83   : > { %s4024_s15 = scalar_lea.vmem %s4023_s12, 2048  ;;  %p4025_p11 = scmp.lt.s32.totalorder %s4338_s19, %s4023_s12 }
  0x84   : > { %p4020_p12 = pnand %p4018_p6, %p4235_p2  ;;  %p4026_p4 = scmp.lt.s32.totalorder %s4024_s15, %s4017_s8 }
  0x86   : > { %p4021_p0 = pneg %p4020_p12  ;;  %p4027_p5 = por %p4026_p4, %p4025_p11 }
  0x88   : > { %p4028_p7 = pnand %p4027_p5, %p4021_p0 }
  0x8a   : > { %4031 = shalt.err (!%p4028_p7)
}
  0x8b   : > { %3786 = dma.hbm_to_vmem [thread:$0]  (!%p4210_p13), %s4334_s27, 1024, %s4338_s19, %s243_s16, %s6055_s29, %s6055_s29, %s6054_s1  }
  0x8c   : > { %p6058_p2 = scmp.ne.s32.totalorder %s6052_s10, 0 }
  0x8e   : > { %265 = sbr.rel (%p6058_p2) target bundleno = 1292 (0x50c), region = 36 }
  0x93   : > { %s4367_s20 = sand.u32 1, %s4098_s22   ;;  %p6059_p8 = scmp.ne.s32.totalorder %s6045_s30, 0 }
  0x94   : > { %s2591_s17 = sshll.u32 %s4367_s20, 7  ;;  %s268_s14 = scalar_lea.sflag [#allocation5], %s4367_s20 }
  0x95   : > { %s4371_s18 = scalar_lea.vmem [#allocation4], %s2591_s17 }
  0x96   : > { %4077 = dma.done.wait (%p6059_p8), %s268_s14, 2048  }
  0x97   : > { %4079 = vsyncadd (%p6059_p8), %s268_s14, 4294965248  ;;  %s276_s9 = sand.u32 1, %s4174_s0   ;;  %s2592_s10 = sshll.u32 %s4367_s20, 6 }
  0x98   : > { %s277_s1 = scalar_lea.sflag [#allocation8], %s276_s9  ;;  %s4379_s29 = scalar_lea.vmem [#allocation7], %s2592_s10 }
  0x99   : > { %4081 = dma.done.wait (%p6059_p8), %s277_s1, 4096  }
  0x9a   : > { %4083 = vsyncadd (%p6059_p8), %s277_s1, 4294963200  ;;  %s3709_s27 = smul.u32 192, %s4367_s20  ;;  %s295_s16 = scalar_lea.sflag [#allocation11], %s4367_s20 }
  0x9b   : > { %s4389_s13 = scalar_lea.vmem [#allocation10], %s2592_s10 }
  0x9c   : > { %s4386_s19 = scalar_lea.vmem [#allocation9], %s3709_s27 }
  0x9d   : > { %4085 = dma.done.wait (%p6059_p8), %s295_s16, 1024  }
  0x9e   : > { %4087 = vsyncadd (%p6059_p8), %s295_s16, 4294966272  ;;  %v472_v0 = vlaneseq  ;;  %v2987_v8 = vld [vmem:[%s4389_s13 + $0x38] sm:$0xff]   ;;  %v2986_v9 = vld [vmem:[%s4389_s13 + $0x30] sm:$0xff]   ;;  %v6032_v20 = vmov 1.0   ;;  %v6063_v21 = vmov 0  ;;  %s338_s30 = sld [smem:[#allocation3 + %s4174_s0]] }
  0x9f   : > { %v4412_v10 = vunpack.c.h.bf16 %v2987_v8  ;;  %v4414_v11 = vunpack.c.l.bf16 %v2987_v8  ;;  %v4417_v13 = vunpack.c.h.bf16 %v2986_v9  ;;  %v2985_v15 = vld [vmem:[%s4389_s13 + $0x28] sm:$0xff]   ;;  %v4425_v16 = vunpack.c.l.bf16 %v2986_v9  ;;  %v2984_v22 = vld [vmem:[%s4389_s13 + $0x20] sm:$0xff]   ;;  %v2983_v26 = vld [vmem:[%s4389_s13 + $0x18] sm:$0xff]   ;;  %p6135_p10 = scmp.ne.s32.totalorder %s6046_s6, 0 }
  0xa0   : > { %v4395_v1 = vshrl.u32 %v472_v0, 7  ;;  %v4397_v2 = vand.u32 127, %v472_v0  ;;  %v4439_v19 = vunpack.c.h.bf16 %v2985_v15  ;;  %v4458_v23 = vunpack.c.l.bf16 %v2985_v15  ;;  %v2982_v29 = vld [vmem:[%s4389_s13 + $0x10] sm:$0xff]   ;;  %v2981_v32 = vld [vmem:[%s4389_s13 + $0x8] sm:$0xff]   ;;  %v2847_v38 = vld [vmem:[%s4389_s13] sm:$0xff]  }
  0xa1   : > { %3251 = vmatprep.subr.mxu0 %v4412_v10  ;;  %v4466_v25 = vunpack.c.h.bf16 %v2984_v22  ;;  %v4471_v27 = vunpack.c.l.bf16 %v2984_v22  ;;  %v4475_v28 = vunpack.c.h.bf16 %v2983_v26  ;;  %v4480_v30 = vunpack.c.l.bf16 %v2983_v26  ;;  %v2980_v40 = vld [vmem:[%s4379_s29 + $0x38] sm:$0xff]   ;;  %v2979_v49 = vld [vmem:[%s4379_s29 + $0x30] sm:$0xff]   ;;  %v2978_v56 = vld [vmem:[%s4379_s29 + $0x28] sm:$0xff]  }
  0xa2   : > { %6060 = vst [vmem:[#allocation19_spill] sm:$0xff] %v4395_v1  ;;  %v487_v3 = vadd.s32 1, %v4395_v1  ;;  %v4401_v4 = vmul.u32 4, %v4397_v2  ;;  %v4404_v5 = vadd.s32 8, %v4395_v1  ;;  %v479_v6 = vmul.u32 4, %v4395_v1  ;;  %3252 = vmatpush3.msra.mxu0 %v4412_v10  ;;  %v2977_v63 = vld [vmem:[%s4379_s29 + $0x20] sm:$0xff]  }
  0xa3   : > { %v540_v7 = vadd.s32 1, %v4397_v2  ;;  %3253 = vmatprep.subr.mxu0 %v4414_v11  ;;  %v4431_v17 = vadd.s32 16, %v4395_v1  ;;  %v4484_v31 = vunpack.c.h.bf16 %v2982_v29  ;;  %v4489_v33 = vunpack.c.l.bf16 %v2982_v29  ;;  %v2975_v15 = vld [vmem:[%s4379_s29 + $0x10] sm:$0xff]  }
  0xa4   : > { %vm525_vm0 = vcmp.ge.s32.totalorder %v4404_v5, %v4401_v4  ;;  %v491_v12 = vmul.u32 4, %v487_v3  ;;  %vm483_vm1 = vcmp.ge.s32.totalorder %v4397_v2, %v479_v6  ;;  %3254 = vmatpush3.msra.mxu0 %v4414_v11  ;;  %v488_v34 = vadd.s32 1, %v4404_v5  ;;  %v2976_v6 = vld [vmem:[%s4379_s29 + $0x18] sm:$0xff]  }
  0xa5   : > { %v4420_v14 = vmul.u32 4, %v540_v7  ;;  %3255 = vmatprep.subr.mxu0 %v4417_v13  ;;  %vm526_vm6 = vcmp.ge.s32.totalorder %v4431_v17, %v4401_v4  ;;  %v4493_v35 = vadd.s32 24, %v4395_v1  ;;  %v489_v36 = vadd.s32 1, %v4431_v17 }
  0xa6   : > { %vm495_vm2 = vcmp.lt.s32.totalorder %v4397_v2, %v491_v12  ;;  %3256 = vmatpush3.msra.mxu0 %v4417_v13  ;;  %v4498_v37 = vunpack.c.h.bf16 %v2981_v32  ;;  %v480_v39 = vmul.u32 4, %v4404_v5  ;;  %v4505_v41 = vunpack.c.l.bf16 %v2981_v32  ;;  %v2974_v32 = vld [vmem:[%s4379_s29 + $0x8] sm:$0xff]  }
  0xa7   : > { %vm543_vm3 = vcmp.lt.s32.totalorder %v4404_v5, %v4420_v14  ;;  %vm4434_vm4 = vmand %vm483_vm1, %vm495_vm2  ;;  %vm544_vm7 = vcmp.lt.s32.totalorder %v4431_v17, %v4420_v14  ;;  %3257 = vmatprep.subr.mxu0 %v4425_v16  ;;  %v492_v42 = vmul.u32 4, %v488_v34  ;;  %v490_v43 = vadd.s32 1, %v4493_v35 }
  0xa8   : > { %3283 = vmatprep.mubr.msk.f32.mxu0 %vm4434_vm4, %v6032_v20  ;;  %vm4447_vm5 = vmand %vm525_vm0, %vm543_vm3  ;;  %3258 = vmatpush3.msra.mxu0 %v4425_v16  ;;  %v481_v44 = vmul.u32 4, %v4431_v17  ;;  %v493_v45 = vmul.u32 4, %v489_v36  ;;  %v4511_v46 = vunpack.c.h.bf16 %v2847_v38  ;;  %v2845_v47 = vunpack.c.h.bf16 %v2980_v40 }
  0xa9   : > { %v6064_v21 = vsel %vm4447_vm5, 4294967295, %v6063_v21  ;;  %vm4460_vm8 = vmand %vm526_vm6, %vm544_vm7  ;;  %3259 = vmatprep.subr.mxu0 %v4439_v19  ;;  %v4514_v48 = vunpack.c.l.bf16 %v2847_v38  ;;  %vm484_vm9 = vcmp.ge.s32.totalorder %v4397_v2, %v480_v39  ;;  %vm496_vm10 = vcmp.lt.s32.totalorder %v4397_v2, %v492_v42 }
  0xaa   : > { %6065 = vst [vmem:[#allocation20_spill] sm:$0xff] %v6064_v21  ;;  %3260 = vmatpush3.msra.mxu0 %v4439_v19  ;;  %v2844_v50 = vunpack.c.l.bf16 %v2980_v40  ;;  %v482_v51 = vmul.u32 4, %v4493_v35  ;;  %v494_v52 = vmul.u32 4, %v490_v43  ;;  %vm485_vm11 = vcmp.ge.s32.totalorder %v4397_v2, %v481_v44  ;;  %vm4529_vm13 = vmand %vm484_vm9, %vm496_vm10  ;;  %v2815_v40 = vld [vmem:[%s4379_s29] sm:$0xff]  }
  0xab   : > { %3261 = vmatprep.subr.mxu0 %v4458_v23  ;;  %vm497_vm12 = vcmp.lt.s32.totalorder %v4397_v2, %v493_v45  ;;  %v4526_v53 = vmul.f32 %v4412_v10, %v2845_v47  ;;  %v2841_v54 = vunpack.c.h.bf16 %v2979_v49  ;;  %v2840_v59 = vunpack.c.l.bf16 %v2979_v49  ;;  %v2994_v47 = vld [vmem:[%s4386_s19 + $0x38] sm:$0xff]   ;;  %v2995_v21 = vld [vmem:[%s4386_s19 + $0x40] sm:$0xff]  }
  0xac   : > { %3262 = vmatpush3.msra.mxu0 %v4458_v23  ;;  %v4536_v57 = vmul.f32 %v4414_v11, %v2844_v50  ;;  %vm4538_vm14 = vmand %vm485_vm11, %vm497_vm12  ;;  %vm486_vm15 = vcmp.ge.s32.totalorder %v4397_v2, %v482_v51  ;;  %vm498_vm0 = vcmp.lt.s32.totalorder %v4397_v2, %v494_v52  ;;  %v2837_v61 = vunpack.c.h.bf16 %v2978_v56 }
  0xad   : > { %3263 = vmatprep.subr.mxu0 %v4466_v25  ;;  %v4550_v60 = vmul.f32 %v4417_v13, %v2841_v54  ;;  %vm4556_vm1 = vmand %vm486_vm15, %vm498_vm0  ;;  %v4563_v0 = vmul.f32 %v4425_v16, %v2840_v59  ;;  %v2836_v2 = vunpack.c.l.bf16 %v2978_v56  ;;  %v2833_v5 = vunpack.c.h.bf16 %v2977_v63  ;;  %v2993_v54 = vld [vmem:[%s4386_s19 + $0x30] sm:$0xff]  }
  0xae   : > { %3264 = vmatpush3.msra.mxu0 %v4466_v25  ;;  %v4571_v3 = vmul.f32 %v4439_v19, %v2837_v61  ;;  %v2832_v8 = vunpack.c.l.bf16 %v2977_v63  ;;  %v2829_v12 = vunpack.c.h.bf16 %v2976_v6  ;;  %v2828_v22 = vunpack.c.l.bf16 %v2976_v6 }
  0xaf   : > { %3265 = vmatprep.subr.mxu0 %v4471_v27  ;;  %v4580_v7 = vmul.f32 %v4458_v23, %v2836_v2  ;;  %v4585_v9 = vmul.f32 %v4466_v25, %v2833_v5  ;;  %v2825_v29 = vunpack.c.h.bf16 %v2975_v15  ;;  %v2824_v36 = vunpack.c.l.bf16 %v2975_v15  ;;  %v2992_v2 = vld [vmem:[%s4386_s19 + $0x28] sm:$0xff]   ;;  %v2991_v15 = vld [vmem:[%s4386_s19 + $0x20] sm:$0xff]  }
  0xb0   : > { %3266 = vmatpush3.msra.mxu0 %v4471_v27  ;;  %v4591_v17 = vmul.f32 %v4471_v27, %v2832_v8  ;;  %v4596_v26 = vmul.f32 %v4475_v28, %v2829_v12  ;;  %v4602_v34 = vmul.f32 %v4480_v30, %v2828_v22  ;;  %v2821_v39 = vunpack.c.h.bf16 %v2974_v32 }
  0xb1   : > { %3267 = vmatprep.subr.mxu0 %v4475_v28  ;;  %v4607_v38 = vmul.f32 %v4484_v31, %v2825_v29  ;;  %v4613_v42 = vmul.f32 %v4489_v33, %v2824_v36  ;;  %v2820_v43 = vunpack.c.l.bf16 %v2974_v32  ;;  %v2817_v45 = vunpack.c.h.bf16 %v2815_v40 }
  0xb2   : > { %3268 = vmatpush3.msra.mxu0 %v4475_v28  ;;  %v4618_v44 = vmul.f32 %v4498_v37, %v2821_v39  ;;  %v2816_v50 = vunpack.c.l.bf16 %v2815_v40  ;;  %v2909_v52 = vunpack.c.h.bf16 %v2994_v47  ;;  %v2908_v59 = vunpack.c.l.bf16 %v2994_v47 }
  0xb3   : > { %3269 = vmatprep.subr.mxu0 %v4480_v30  ;;  %v4624_v49 = vmul.f32 %v4505_v41, %v2820_v43  ;;  %v4629_v51 = vmul.f32 %v4511_v46, %v2817_v45  ;;  %v2905_v63 = vunpack.c.h.bf16 %v2993_v54  ;;  %v2904_v6 = vunpack.c.l.bf16 %v2993_v54  ;;  %v2990_v45 = vld [vmem:[%s4386_s19 + $0x18] sm:$0xff]  }
  0xb4   : > { %3270 = vmatpush3.msra.mxu0 %v4480_v30  ;;  %v4635_v56 = vmul.f32 %v4514_v48, %v2816_v50  ;;  %v1213_v61 = vmul.f32 %v2909_v52, %v4412_v10  ;;  %v1212_v5 = vmul.f32 %v2908_v59, %v4414_v11  ;;  %v2901_v8 = vunpack.c.h.bf16 %v2992_v2 }
  0xb5   : > { %3271 = vmatprep.subr.mxu0 %v4484_v31  ;;  %v1211_v12 = vmul.f32 %v2905_v63, %v4417_v13  ;;  %v522_v22 = vadd.s32 120, %v4395_v1  ;;  %v2900_v29 = vunpack.c.l.bf16 %v2992_v2  ;;  %v1210_v32 = vmul.f32 %v2904_v6, %v4425_v16 }
  0xb6   : > { %3272 = vmatpush3.msra.mxu0 %v4484_v31  ;;  %v521_v36 = vadd.s32 112, %v4395_v1  ;;  %v1209_v39 = vmul.f32 %v2901_v8, %v4439_v19  ;;  %v2897_v40 = vunpack.c.h.bf16 %v2991_v15  ;;  %v520_v47 = vadd.s32 104, %v4395_v1 }
  0xb7   : > { %3273 = vmatprep.subr.mxu0 %v4489_v33  ;;  %vm539_vm2 = vcmp.ge.s32.totalorder %v522_v22, %v4401_v4  ;;  %vm557_vm3 = vcmp.lt.s32.totalorder %v522_v22, %v4420_v14  ;;  %v519_v50 = vadd.s32 96, %v4395_v1  ;;  %v1208_v52 = vmul.f32 %v2900_v29, %v4458_v23 }
  0xb8   : > { %3274 = vmatpush3.msra.mxu0 %v4489_v33  ;;  %vm4659_vm6 = vmand %vm539_vm2, %vm557_vm3  ;;  %vm538_vm7 = vcmp.ge.s32.totalorder %v521_v36, %v4401_v4  ;;  %vm556_vm9 = vcmp.lt.s32.totalorder %v521_v36, %v4420_v14  ;;  %v2896_v54 = vunpack.c.l.bf16 %v2991_v15  ;;  %v6076_v59 = vmov 0  ;;  %v2989_v15 = vld [vmem:[%s4386_s19 + $0x10] sm:$0xff]  }
  0xb9   : > { %3275 = vmatprep.subr.mxu0 %v4498_v37  ;;  %vm4675_vm10 = vmand %vm538_vm7, %vm556_vm9  ;;  %3289 = vmatprep.subr.msk.mxu1 %vm4659_vm6, %v6032_v20  ;;  %vm537_vm11 = vcmp.ge.s32.totalorder %v520_v47, %v4401_v4  ;;  %vm555_vm12 = vcmp.lt.s32.totalorder %v520_v47, %v4420_v14  ;;  %vm536_vm15 = vcmp.ge.s32.totalorder %v519_v50, %v4401_v4  ;;  %v517_v63 = vadd.s32 80, %v4395_v1 }
  0xba   : > { %3276 = vmatpush3.msra.mxu0 %v4498_v37  ;;  %v6077_v59 = vsel %vm4675_vm10, 4294967295, %v6076_v59  ;;  %v2893_v2 = vunpack.c.h.bf16 %v2990_v45  ;;  %3290 = vmatpush3.msk.msra.mxu1 %vm4659_vm6, %v6032_v20  ;;  %vm4690_vm0 = vmand %vm537_vm11, %vm555_vm12  ;;  %vm554_vm2 = vcmp.lt.s32.totalorder %v519_v50, %v4420_v14  ;;  %v1207_v6 = vmul.f32 %v2897_v40, %v4466_v25 }
  0xbb   : > { %3277 = vmatprep.subr.mxu0 %v4505_v41  ;;  %3291 = vmatprep.subr.msk.mxu1 %vm4675_vm10, %v6032_v20  ;;  %v516_v8 = vadd.s32 72, %v4395_v1  ;;  %vm4709_vm9 = vmand %vm536_vm15, %vm554_vm2  ;;  %v6080_v22 = vmov 0  ;;  %v2892_v29 = vunpack.c.l.bf16 %v2990_v45  ;;  %vm552_vm12 = vcmp.lt.s32.totalorder %v517_v63, %v4420_v14  ;;  %v2988_v45 = vld [vmem:[%s4386_s19 + $0x8] sm:$0xff]  }
  0xbc   : > { %3278 = vmatpush3.msra.mxu0 %v4505_v41  ;;  %3292 = vmatpush3.msk.msra.mxu1 %vm4675_vm10, %v6032_v20  ;;  %v6081_v22 = vsel %vm4709_vm9, 4294967295, %v6080_v22  ;;  %v1205_v36 = vmul.f32 %v2893_v2, %v4475_v28  ;;  %v2889_v40 = vunpack.c.h.bf16 %v2989_v15  ;;  %v514_v47 = vadd.s32 56, %v4395_v1 }
  0xbd   : > { %3279 = vmatprep.subr.mxu0 %v4511_v46  ;;  %3293 = vmatprep.subr.msk.mxu1 %vm4690_vm0, %v6032_v20  ;;  %v2888_v50 = vunpack.c.l.bf16 %v2989_v15  ;;  %v6089_v2 = vmov 0  ;;  %v2884_v15 = vunpack.c.l.bf16 %v2988_v45 }
  0xbe   : > { %3280 = vmatpush3.msra.mxu0 %v4511_v46  ;;  %3294 = vmatpush3.msk.msra.mxu1 %vm4690_vm0, %v6032_v20 }
  0xbf   : > { %3281 = vmatprep.subr.mxu0 %v4514_v48  ;;  %3295 = vmatprep.subr.msk.mxu1 %vm4709_vm9, %v6032_v20 }
  0xc0   : > { %3282 = vmatpush3.msra.mxu0 %v4514_v48  ;;  %3296 = vmatpush3.msk.msra.mxu1 %vm4709_vm9, %v6032_v20 }
  0xc1   : > { %3284 = vmatmul.mubr.msk.f32.vlgmr.msra.gmra.mxu0 %vm4529_vm13, %v6032_v20  ;;  %3327 = vmatprep.subr.mxu0 %v4526_v53 }
  0xc2   : > { %3328 = vmatpush3.msra.mxu0 %v4526_v53  ;;  %3286 = vmatprep.mubr.msk.f32.mxu0 %vm4538_vm14, %v6032_v20 }
  0xc3   : > { %3329 = vmatprep.subr.mxu0 %v4536_v57 }
  0xc4   : > { %3330 = vmatpush3.msra.mxu0 %v4536_v57 }
  0xc5   : > { %3287 = vmatmul.mubr.msk.f32.gmra.mxu0 %vm4556_vm1, %v6032_v20  ;;  %3331 = vmatprep.subr.mxu0 %v4550_v60 }
  0xc6   : > { %3332 = vmatpush3.msra.mxu0 %v4550_v60  ;;  %3359 = vmatprep.mubr.msk.f32.mxu0 %vm4434_vm4, %v6032_v20 }
  0xc7   : > { %3333 = vmatprep.subr.mxu0 %v4563_v0 }
  0xc8   : > { %3334 = vmatpush3.msra.mxu0 %v4563_v0 }
  0xc9   : > { %3335 = vmatprep.subr.mxu0 %v4571_v3 }
  0xca   : > { %3336 = vmatpush3.msra.mxu0 %v4571_v3 }
  0xcb   : > { %3337 = vmatprep.subr.mxu0 %v4580_v7 }
  0xcc   : > { %3338 = vmatpush3.msra.mxu0 %v4580_v7 }
  0xcd   : > { %3339 = vmatprep.subr.mxu0 %v4585_v9 }
  0xce   : > { %3340 = vmatpush3.msra.mxu0 %v4585_v9 }
  0xcf   : > { %3341 = vmatprep.subr.mxu0 %v4591_v17 }
  0xd0   : > { %3342 = vmatpush3.msra.mxu0 %v4591_v17 }
  0xd1   : > { %3343 = vmatprep.subr.mxu0 %v4596_v26 }
  0xd2   : > { %3344 = vmatpush3.msra.mxu0 %v4596_v26 }
  0xd3   : > { %3345 = vmatprep.subr.mxu0 %v4602_v34 }
  0xd4   : > { %3346 = vmatpush3.msra.mxu0 %v4602_v34 }
  0xd5   : > { %3347 = vmatprep.subr.mxu0 %v4607_v38 }
  0xd6   : > { %3348 = vmatpush3.msra.mxu0 %v4607_v38 }
  0xd7   : > { %3349 = vmatprep.subr.mxu0 %v4613_v42 }
  0xd8   : > { %3350 = vmatpush3.msra.mxu0 %v4613_v42 }
  0xd9   : > { %3351 = vmatprep.subr.mxu0 %v4618_v44 }
  0xda   : > { %3352 = vmatpush3.msra.mxu0 %v4618_v44 }
  0xdb   : > { %3353 = vmatprep.subr.mxu0 %v4624_v49 }
  0xdc   : > { %3354 = vmatpush3.msra.mxu0 %v4624_v49 }
  0xdd   : > { %3355 = vmatprep.subr.mxu0 %v4629_v51 }
  0xde   : > { %3356 = vmatpush3.msra.mxu0 %v4629_v51 }
  0xdf   : > { %3357 = vmatprep.subr.mxu0 %v4635_v56 }
  0xe0   : > { %3358 = vmatpush3.msra.mxu0 %v4635_v56 }
  0xe1   : > { %3360 = vmatmul.mubr.msk.f32.vlgmr.msra.gmra.mxu0 %vm4529_vm13, %v6032_v20  ;;  %3403 = vmatprep.subr.mxu0 %v1213_v61 }
  0xe2   : > { %3404 = vmatpush3.msra.mxu0 %v1213_v61  ;;  %3362 = vmatprep.mubr.msk.f32.mxu0 %vm4538_vm14, %v6032_v20  ;;  %v518_v61 = vadd.s32 88, %v4395_v1 }
  0xe3   : > { %3405 = vmatprep.subr.mxu0 %v1212_v5 }
  0xe4   : > { %3406 = vmatpush3.msra.mxu0 %v1212_v5  ;;  %v6078_v5 = vmov 0  ;;  %vm535_vm3 = vcmp.ge.s32.totalorder %v518_v61, %v4401_v4  ;;  %vm553_vm7 = vcmp.lt.s32.totalorder %v518_v61, %v4420_v14  ;;  %v513_v61 = vadd.s32 48, %v4395_v1 }
  0xe5   : > { %3363 = vmatmul.mubr.msk.f32.gmra.mxu0 %vm4556_vm1, %v6032_v20  ;;  %3407 = vmatprep.subr.mxu0 %v1211_v12  ;;  %v6079_v5 = vsel %vm4690_vm0, 4294967295, %v6078_v5  ;;  %vm4727_vm15 = vmand %vm535_vm3, %vm553_vm7  ;;  %vm6084_vm3 = vcmp.ge.s32.totalorder %v517_v63, %v4401_v4  ;;  %v2885_v63 = vunpack.c.h.bf16 %v2988_v45 }
  0xe6   : > { %3408 = vmatpush3.msra.mxu0 %v1211_v12  ;;  %3435 = vmatprep.mubr.msk.f32.mxu0 %vm4434_vm4, %v6032_v20  ;;  %v1206_v12 = vmul.f32 %v2896_v54, %v4471_v27  ;;  %vm4745_vm7 = vmand %vm6084_vm3, %vm552_vm12  ;;  %v1204_v54 = vmul.f32 %v2892_v29, %v4480_v30  ;;  %vm6087_vm12 = vcmp.lt.s32.totalorder %v516_v8, %v4420_v14  ;;  %v6094_v29 = vmov 0 }
  0xe7   : > { %3409 = vmatprep.subr.mxu0 %v1210_v32  ;;  %3297 = vmatprep.subr.msk.mxu1 %vm4727_vm15, %v6032_v20  ;;  %vm6088_vm3 = vcmp.ge.s32.totalorder %v516_v8, %v4401_v4  ;;  %v2879_v8 = vld [vmem:[%s4386_s19] sm:$0xff]   ;;  %vm548_vm11 = vcmp.lt.s32.totalorder %v513_v61, %v4420_v14  ;;  %v1201_v45 = vmul.f32 %v2885_v63, %v4498_v37 }
  0xe8   : > { %3410 = vmatpush3.msra.mxu0 %v1210_v32  ;;  %v515_v32 = vadd.s32 64, %v4395_v1  ;;  %3298 = vmatpush3.msk.msra.mxu1 %vm4727_vm15, %v6032_v20  ;;  %vm4763_vm9 = vmand %vm6088_vm3, %vm6087_vm12  ;;  %v1200_v63 = vmul.f32 %v2884_v15, %v4505_v41  ;;  %v3001_v15 = vld [vmem:[%s4386_s19 + $0x70] sm:$0xff]  }
  0xe9   : > { %3411 = vmatprep.subr.mxu0 %v1209_v39  ;;  %v6090_v2 = vsel %vm4763_vm9, 4294967295, %v6089_v2  ;;  %3299 = vmatprep.subr.msk.mxu1 %vm4745_vm7, %v6032_v20 }
  0xea   : > { %3412 = vmatpush3.msra.mxu0 %v1209_v39  ;;  %v6082_v39 = vmov 0  ;;  %6091 = vst [vmem:[#allocation21_spill] sm:$0xff] %v6090_v2  ;;  %3300 = vmatpush3.msk.msra.mxu1 %vm4745_vm7, %v6032_v20  ;;  %vm6092_vm12 = vcmp.lt.s32.totalorder %v515_v32, %v4420_v14  ;;  %vm6093_vm3 = vcmp.ge.s32.totalorder %v515_v32, %v4401_v4  ;;  %v2880_v2 = vunpack.c.l.bf16 %v2879_v8  ;;  %v2670_v32 = vld [vmem:[%s4371_s18 + $0x38] sm:$0xff] }
  0xeb   : > { %3413 = vmatprep.subr.mxu0 %v1208_v52  ;;  %v6083_v39 = vsel %vm4727_vm15, 4294967295, %v6082_v39  ;;  %vm4782_vm15 = vmand %vm6093_vm3, %vm6092_vm12  ;;  %3301 = vmatprep.subr.msk.mxu1 %vm4763_vm9, %v6032_v20  ;;  %vm6096_vm12 = vcmp.lt.s32.totalorder %v514_v47, %v4420_v14  ;;  %vm6097_vm3 = vcmp.ge.s32.totalorder %v514_v47, %v4401_v4 }
  0xec   : > { %3414 = vmatpush3.msra.mxu0 %v1208_v52  ;;  %v6085_v52 = vmov 0  ;;  %v6095_v29 = vsel %vm4782_vm15, 4294967295, %v6094_v29  ;;  %3302 = vmatpush3.msk.msra.mxu1 %vm4763_vm9, %v6032_v20 }
  0xed   : > { %3415 = vmatprep.subr.mxu0 %v1207_v6  ;;  %v6086_v52 = vsel %vm4745_vm7, 4294967295, %v6085_v52  ;;  %vm4800_vm7 = vmand %vm6097_vm3, %vm6096_vm12  ;;  %3303 = vmatprep.subr.msk.mxu1 %vm4782_vm15, %v6032_v20  ;;  %vm6100_vm12 = vcmp.ge.s32.totalorder %v513_v61, %v4401_v4 }
  0xee   : > { %3416 = vmatpush3.msra.mxu0 %v1207_v6  ;;  %v1203_v6 = vmul.f32 %v2889_v40, %v4484_v31  ;;  %v1202_v40 = vmul.f32 %v2888_v50, %v4489_v33  ;;  %v2881_v50 = vunpack.c.h.bf16 %v2879_v8  ;;  %3304 = vmatpush3.msk.msra.mxu1 %vm4782_vm15, %v6032_v20  ;;  %vm4816_vm3 = vmand %vm6100_vm12, %vm548_vm11  ;;  %vm527_vm12 = vcmp.ge.s32.totalorder %v4493_v35, %v4401_v4 }
  0xef   : > { %3417 = vmatprep.subr.mxu0 %v1206_v12  ;;  %3305 = vmatprep.subr.msk.mxu1 %vm4800_vm7, %v6032_v20  ;;  %vm545_vm15 = vcmp.lt.s32.totalorder %v4493_v35, %v4420_v14  ;;  %v1198_v35 = vmul.f32 %v2880_v2, %v4514_v48  ;;  %v3000_v2 = vld [vmem:[%s4386_s19 + $0x68] sm:$0xff]   ;;  %v2674_v8 = vmul.f32 -1.442695, %v2670_v32 }
  0xf0   : > { %3418 = vmatpush3.msra.mxu0 %v1206_v12  ;;  %v512_v12 = vadd.s32 40, %v4395_v1  ;;  %3306 = vmatpush3.msk.msra.mxu1 %vm4800_vm7, %v6032_v20 }
  0xf1   : > { %3419 = vmatprep.subr.mxu0 %v1205_v36  ;;  %3307 = vmatprep.subr.msk.mxu1 %vm4816_vm3, %v6032_v20  ;;  %v6123_v55 = vld [vmem:[#allocation21_spill] sm:$0xff] }
  0xf2   : > { %3420 = vmatpush3.msra.mxu0 %v1205_v36  ;;  %v511_v36 = vadd.s32 32, %v4395_v1  ;;  %vm529_vm2 = vcmp.ge.s32.totalorder %v512_v12, %v4401_v4  ;;  %vm547_vm9 = vcmp.lt.s32.totalorder %v512_v12, %v4420_v14  ;;  %3308 = vmatpush3.msk.msra.mxu1 %vm4816_vm3, %v6032_v20 }
  0xf3   : > { %3421 = vmatprep.subr.mxu0 %v1204_v54  ;;  %vm4829_vm11 = vmand %vm529_vm2, %vm547_vm9 }
  0xf4   : > { %3422 = vmatpush3.msra.mxu0 %v1204_v54  ;;  %v3002_v54 = vld [vmem:[%s4386_s19 + $0x78] sm:$0xff]   ;;  %vm528_vm0 = vcmp.ge.s32.totalorder %v511_v36, %v4401_v4  ;;  %vm546_vm10 = vcmp.lt.s32.totalorder %v511_v36, %v4420_v14  ;;  %3309 = vmatprep.subr.msk.mxu1 %vm4829_vm11, %v6032_v20  ;;  %vm4853_vm2 = vmand %vm527_vm12, %vm545_vm15  ;;  %vm6122_vm12 = vnez %v6086_v52  ;;  %v2669_v52 = vld [vmem:[%s4371_s18 + $0x30] sm:$0xff] }
  0xf5   : > { %3423 = vmatprep.subr.mxu0 %v1203_v6  ;;  %v2941_v12 = vunpack.c.h.bf16 %v3002_v54  ;;  %vm4845_vm9 = vmand %vm528_vm0, %vm546_vm10  ;;  %3310 = vmatpush3.msk.msra.mxu1 %vm4829_vm11, %v6032_v20  ;;  %vm524_vm10 = vcmp.ge.s32.totalorder %v4395_v1, %v4401_v4  ;;  %vm542_vm0 = vcmp.lt.s32.totalorder %v4395_v1, %v4420_v14  ;;  %v6109_v4 = vmov 0  ;;  %v5570_v36 = vld [vmem:[%s4371_s18 + $0x8] sm:$0xff] }
  0xf6   : > { %3424 = vmatpush3.msra.mxu0 %v1203_v6  ;;  %v1199_v6 = vmul.f32 %v2881_v50, %v4511_v46  ;;  %v2937_v50 = vunpack.c.h.bf16 %v3001_v15  ;;  %3311 = vmatprep.subr.msk.mxu1 %vm4845_vm9, %v6032_v20  ;;  %vm4902_vm15 = vmand %vm524_vm10, %vm542_vm0  ;;  %vm6124_vm10 = vnez %v6123_v55  ;;  %vm6125_vm0 = vnez %v6095_v29 }
  0xf7   : > { %3425 = vmatprep.subr.mxu0 %v1202_v40  ;;  %3312 = vmatpush3.msk.msra.mxu1 %vm4845_vm9, %v6032_v20  ;;  %v6110_v4 = vsel %vm4902_vm15, 4294967295, %v6109_v4  ;;  %v2673_v61 = vmul.f32 -1.442695, %v2669_v52 }
  0xf8   : > { %3426 = vmatpush3.msra.mxu0 %v1202_v40  ;;  %v2940_v40 = vunpack.c.l.bf16 %v3002_v54  ;;  %3313 = vmatprep.subr.msk.mxu1 %vm4853_vm2, %v6032_v20  ;;  %6111 = vst [vmem:[#allocation22_spill] sm:$0xff] %v6110_v4 }
  0xf9   : > { %3427 = vmatprep.subr.mxu0 %v1201_v45  ;;  %3314 = vmatpush3.msk.msra.mxu1 %vm4853_vm2, %v6032_v20 }
  0xfa   : > { %3428 = vmatpush3.msra.mxu0 %v1201_v45  ;;  %v1539_v45 = vmul.f32 %v2941_v12, %v4412_v10  ;;  %v1538_v54 = vmul.f32 %v2940_v40, %v4414_v11  ;;  %v2933_v12 = vunpack.c.h.bf16 %v3000_v2  ;;  %v2932_v40 = vunpack.c.l.bf16 %v3000_v2  ;;  %3315 = vmatprep.subr.msk.mxu1 %vm4460_vm8, %v6032_v20  ;;  %v2998_v2 = vld [vmem:[%s4386_s19 + $0x58] sm:$0xff]  }
  0xfb   : > { %3429 = vmatprep.subr.mxu0 %v1200_v63  ;;  %3316 = vmatpush3.msk.msra.mxu1 %vm4460_vm8, %v6032_v20 }
  0xfc   : > { %3430 = vmatpush3.msra.mxu0 %v1200_v63  ;;  %v2936_v63 = vunpack.c.l.bf16 %v3001_v15  ;;  %v2999_v15 = vld [vmem:[%s4386_s19 + $0x60] sm:$0xff]   ;;  %v1534_v14 = vmul.f32 %v2932_v40, %v4458_v23  ;;  %3317 = vmatprep.subr.msk.mxu1 %vm4447_vm5, %v6032_v20 }
  0xfd   : > { %3431 = vmatprep.subr.mxu0 %v1199_v6  ;;  %3318 = vmatpush3.msk.msra.mxu1 %vm4447_vm5, %v6032_v20 }
  0xfe   : > { %3432 = vmatpush3.msra.mxu0 %v1199_v6  ;;  %v1537_v6 = vmul.f32 %v2937_v50, %v4417_v13  ;;  %v2929_v50 = vunpack.c.h.bf16 %v2999_v15  ;;  %3319 = vmatprep.subr.msk.mxu1 %vm4902_vm15, %v6032_v20 }
  0xff   : > { %3433 = vmatprep.subr.mxu0 %v1198_v35  ;;  %3320 = vmatpush3.msk.msra.mxu1 %vm4902_vm15, %v6032_v20 }
 0x100   : > { %3434 = vmatpush3.msra.mxu0 %v1198_v35  ;;  %v1536_v35 = vmul.f32 %v2936_v63, %v4425_v16  ;;  %v1533_v63 = vmul.f32 %v2929_v50, %v4466_v25  ;;  %3365 = vmatprep.subr.msk.mxu1 %vm4659_vm6, %v6032_v20 }
 0x101   : > { %3436 = vmatmul.mubr.msk.f32.vlgmr.msra.gmra.mxu0 %vm4529_vm13, %v6032_v20  ;;  %3479 = vmatprep.subr.mxu0 %v1539_v45 }
 0x102   : > { %3480 = vmatpush3.msra.mxu0 %v1539_v45  ;;  %3438 = vmatprep.mubr.msk.f32.mxu0 %vm4538_vm14, %v6032_v20  ;;  %v1535_v45 = vmul.f32 %v2933_v12, %v4439_v19  ;;  %v2997_v12 = vld [vmem:[%s4386_s19 + $0x50] sm:$0xff]  }
 0x103   : > { %3481 = vmatprep.subr.mxu0 %v1538_v54  ;;  %v2921_v50 = vunpack.c.h.bf16 %v2997_v12  ;;  %v2920_v4 = vunpack.c.l.bf16 %v2997_v12 }
 0x104   : > { %3482 = vmatpush3.msra.mxu0 %v1538_v54  ;;  %v2928_v54 = vunpack.c.l.bf16 %v2999_v15 }
 0x105   : > { %3439 = vmatmul.mubr.msk.f32.gmra.mxu0 %vm4556_vm1, %v6032_v20  ;;  %3483 = vmatprep.subr.mxu0 %v1537_v6 }
 0x106   : > { %3484 = vmatpush3.msra.mxu0 %v1537_v6  ;;  %3511 = vmatprep.mubr.msk.f32.mxu0 %vm4434_vm4, %v6032_v20  ;;  %v2925_v6 = vunpack.c.h.bf16 %v2998_v2  ;;  %v1532_v15 = vmul.f32 %v2928_v54, %v4471_v27  ;;  %v2913_v20 = vunpack.c.h.bf16 %v2995_v21 }
 0x107   : > { %3485 = vmatprep.subr.mxu0 %v1536_v35 }
 0x108   : > { %3486 = vmatpush3.msra.mxu0 %v1536_v35  ;;  %v2924_v35 = vunpack.c.l.bf16 %v2998_v2  ;;  %v1531_v40 = vmul.f32 %v2925_v6, %v4475_v28  ;;  %v1529_v2 = vmul.f32 %v2921_v50, %v4484_v31 }
 0x109   : > { %3487 = vmatprep.subr.mxu0 %v1535_v45 }
 0x10a   : > { %3488 = vmatpush3.msra.mxu0 %v1535_v45  ;;  %v2996_v45 = vld [vmem:[%s4386_s19 + $0x48] sm:$0xff]   ;;  %v1530_v1 = vmul.f32 %v2924_v35, %v4480_v30  ;;  %v4933_v35 = vld [vmem:[%s4386_s19 + $0xb8] sm:$0xff]  }
 0x10b   : > { %3489 = vmatprep.subr.mxu0 %v1534_v14  ;;  %v2917_v54 = vunpack.c.h.bf16 %v2996_v45  ;;  %v2916_v6 = vunpack.c.l.bf16 %v2996_v45  ;;  %v2972_v45 = vunpack.c.l.bf16 %v4933_v35 }
 0x10c   : > { %3490 = vmatpush3.msra.mxu0 %v1534_v14  ;;  %v1528_v14 = vmul.f32 %v2920_v4, %v4489_v33  ;;  %v2973_v4 = vunpack.c.h.bf16 %v4933_v35 }
 0x10d   : > { %3491 = vmatprep.subr.mxu0 %v1533_v63  ;;  %v1526_v12 = vmul.f32 %v2916_v6, %v4505_v41  ;;  %v6112_v6 = vmov 1.0  }
 0x10e   : > { %3492 = vmatpush3.msra.mxu0 %v1533_v63  ;;  %v1527_v63 = vmul.f32 %v2917_v54, %v4498_v37  ;;  %v1864_v54 = vmul.f32 %v2972_v45, %v4414_v11  ;;  %v4965_v11 = vld [vmem:[%s4386_s19 + $0xa0] sm:$0xff]  }
 0x10f   : > { %3493 = vmatprep.subr.mxu0 %v1532_v15 }
 0x110   : > { %3494 = vmatpush3.msra.mxu0 %v1532_v15  ;;  %v2912_v15 = vunpack.c.l.bf16 %v2995_v21  ;;  %v1865_v21 = vmul.f32 %v2973_v4, %v4412_v10 }
 0x111   : > { %3495 = vmatprep.subr.mxu0 %v1531_v40 }
 0x112   : > { %3496 = vmatpush3.msra.mxu0 %v1531_v40  ;;  %v1525_v40 = vmul.f32 %v2913_v20, %v4511_v46  ;;  %v1524_v50 = vmul.f32 %v2912_v15, %v4514_v48  ;;  %v4948_v20 = vld [vmem:[%s4386_s19 + $0xa8] sm:$0xff]  }
 0x113   : > { %3497 = vmatprep.subr.mxu0 %v1530_v1  ;;  %v2964_v15 = vunpack.c.l.bf16 %v4948_v20 }
 0x114   : > { %3498 = vmatpush3.msra.mxu0 %v1530_v1  ;;  %v4939_v1 = vld [vmem:[%s4386_s19 + $0xb0] sm:$0xff]  }
 0x115   : > { %3499 = vmatprep.subr.mxu0 %v1529_v2 }
 0x116   : > { %3500 = vmatpush3.msra.mxu0 %v1529_v2  ;;  %v2969_v2 = vunpack.c.h.bf16 %v4939_v1 }
 0x117   : > { %3501 = vmatprep.subr.mxu0 %v1528_v14 }
 0x118   : > { %3502 = vmatpush3.msra.mxu0 %v1528_v14  ;;  %v2968_v14 = vunpack.c.l.bf16 %v4939_v1  ;;  %v1863_v10 = vmul.f32 %v2969_v2, %v4417_v13 }
 0x119   : > { %3503 = vmatprep.subr.mxu0 %v1527_v63 }
 0x11a   : > { %3504 = vmatpush3.msra.mxu0 %v1527_v63  ;;  %v6034_v63 = vunpack.c.h.bf16 %v4948_v20 }
 0x11b   : > { %3505 = vmatprep.subr.mxu0 %v1526_v12 }
 0x11c   : > { %3506 = vmatpush3.msra.mxu0 %v1526_v12  ;;  %v1862_v12 = vmul.f32 %v2968_v14, %v4425_v16  ;;  %v1861_v13 = vmul.f32 %v6034_v63, %v4439_v19  ;;  %v1860_v16 = vmul.f32 %v2964_v15, %v4458_v23 }
 0x11d   : > { %3507 = vmatprep.subr.mxu0 %v1525_v40 }
 0x11e   : > { %3508 = vmatpush3.msra.mxu0 %v1525_v40  ;;  %v6035_v40 = vunpack.c.h.bf16 %v4965_v11 }
 0x11f   : > { %3509 = vmatprep.subr.mxu0 %v1524_v50 }
 0x120   : > { %3510 = vmatpush3.msra.mxu0 %v1524_v50  ;;  %v4979_v50 = vld [vmem:[%s4386_s19 + $0x98] sm:$0xff]   ;;  %v1859_v19 = vmul.f32 %v6035_v40, %v4466_v25 }
 0x121   : > { %3512 = vmatmul.mubr.msk.f32.vlgmr.msra.gmra.mxu0 %vm4529_vm13, %v6112_v6  ;;  %3555 = vmatprep.subr.mxu0 %v1865_v21  ;;  %v6037_v23 = vunpack.c.l.bf16 %v4979_v50  ;;  %v6115_v18 = vunpack.c.h.bf16 %v4979_v50 }
 0x122   : > { %3556 = vmatpush3.msra.mxu0 %v1865_v21  ;;  %3514 = vmatprep.mubr.msk.f32.mxu0 %vm4538_vm14, %v6112_v6  ;;  %v2960_v21 = vunpack.c.l.bf16 %v4965_v11 }
 0x123   : > { %3557 = vmatprep.subr.mxu0 %v1864_v54  ;;  %v1856_v40 = vmul.f32 %v6037_v23, %v4480_v30 }
 0x124   : > { %3558 = vmatpush3.msra.mxu0 %v1864_v54  ;;  %v6036_v54 = vunpack.c.h.bf16 %v4979_v50  ;;  %v1858_v63 = vmul.f32 %v2960_v21, %v4471_v27  ;;  %v2137_v35 = vmul.f32 %v2960_v21, %v4591_v17 }
 0x125   : > { %3515 = vmatmul.mubr.msk.f32.gmra.mxu0 %vm4556_vm1, %v6112_v6  ;;  %3559 = vmatprep.subr.mxu0 %v1863_v10 }
 0x126   : > { %3560 = vmatpush3.msra.mxu0 %v1863_v10  ;;  %3587 = vmatprep.mubr.msk.f32.mxu0 %vm4434_vm4, %v6112_v6  ;;  %v4993_v10 = vld [vmem:[%s4386_s19 + $0x90] sm:$0xff]  }
 0x127   : > { %3561 = vmatprep.subr.mxu0 %v1862_v12  ;;  %v6038_v25 = vunpack.c.h.bf16 %v4993_v10  ;;  %v2952_v27 = vunpack.c.l.bf16 %v4993_v10 }
 0x128   : > { %3562 = vmatpush3.msra.mxu0 %v1862_v12  ;;  %v1857_v12 = vmul.f32 %v6036_v54, %v4475_v28  ;;  %v5015_v54 = vld [vmem:[%s4386_s19 + $0x80] sm:$0xff]  }
 0x129   : > { %3563 = vmatprep.subr.mxu0 %v1861_v13  ;;  %v2945_v23 = vunpack.c.h.bf16 %v5015_v54  ;;  %v2133_v17 = vmul.f32 %v2952_v27, %v4613_v42 }
 0x12a   : > { %3564 = vmatpush3.msra.mxu0 %v1861_v13  ;;  %v5004_v13 = vld [vmem:[%s4386_s19 + $0x88] sm:$0xff]  }
 0x12b   : > { %3565 = vmatprep.subr.mxu0 %v1860_v16  ;;  %v2949_v28 = vunpack.c.h.bf16 %v5004_v13  ;;  %v2948_v30 = vunpack.c.l.bf16 %v5004_v13 }
 0x12c   : > { %3566 = vmatpush3.msra.mxu0 %v1860_v16  ;;  %v1855_v16 = vmul.f32 %v6038_v25, %v4484_v31  ;;  %v1851_v25 = vmul.f32 %v2945_v23, %v4511_v46  ;;  %v2142_v46 = vmul.f32 %v2969_v2, %v4550_v60  ;;  %v2139_v60 = vmul.f32 %v2964_v15, %v4580_v7 }
 0x12d   : > { %3567 = vmatprep.subr.mxu0 %v1859_v19  ;;  %v1852_v31 = vmul.f32 %v2948_v30, %v4505_v41  ;;  %v2143_v41 = vmul.f32 %v2972_v45, %v4536_v57  ;;  %v6116_v7 = vunpack.c.l.bf16 %v4979_v50  ;;  %v2130_v2 = vmul.f32 %v2945_v23, %v4629_v51 }
 0x12e   : > { %3568 = vmatpush3.msra.mxu0 %v1859_v19  ;;  %v1854_v19 = vmul.f32 %v2952_v27, %v4489_v33 }
 0x12f   : > { %3569 = vmatprep.subr.mxu0 %v1858_v63  ;;  %v2135_v1 = vmul.f32 %v6116_v7, %v4602_v34  ;;  %v2131_v34 = vmul.f32 %v2948_v30, %v4624_v49  ;;  %v5577_v30 = vld [vmem:[%s4371_s18] sm:$0xff] }
 0x130   : > { %3570 = vmatpush3.msra.mxu0 %v1858_v63  ;;  %v1853_v63 = vmul.f32 %v2949_v28, %v4498_v37  ;;  %v2144_v37 = vmul.f32 %v2973_v4, %v4526_v53  ;;  %v6113_v53 = vunpack.c.h.bf16 %v4948_v20  ;;  %v2136_v4 = vmul.f32 %v6115_v18, %v4596_v26 }
 0x131   : > { %3571 = vmatprep.subr.mxu0 %v1857_v12  ;;  %v2132_v26 = vmul.f32 %v2949_v28, %v4618_v44 }
 0x132   : > { %3572 = vmatpush3.msra.mxu0 %v1857_v12  ;;  %v2944_v12 = vunpack.c.l.bf16 %v5015_v54  ;;  %v2140_v57 = vmul.f32 %v6113_v53, %v4571_v3 }
 0x133   : > { %3573 = vmatprep.subr.mxu0 %v1856_v40 }
 0x134   : > { %3574 = vmatpush3.msra.mxu0 %v1856_v40  ;;  %v1850_v33 = vmul.f32 %v2944_v12, %v4514_v48  ;;  %v2141_v48 = vmul.f32 %v2968_v14, %v4563_v0  ;;  %v6114_v0 = vunpack.c.h.bf16 %v4965_v11 }
 0x135   : > { %3575 = vmatprep.subr.mxu0 %v1855_v16 }
 0x136   : > { %3576 = vmatpush3.msra.mxu0 %v1855_v16  ;;  %v2138_v3 = vmul.f32 %v6114_v0, %v4585_v9  ;;  %v6117_v9 = vunpack.c.h.bf16 %v4993_v10  ;;  %v2698_v0 = vld [vmem:[%s4371_s18 + $0x58] sm:$0xff] }
 0x137   : > { %3577 = vmatprep.subr.mxu0 %v1854_v19 }
 0x138   : > { %3578 = vmatpush3.msra.mxu0 %v1854_v19  ;;  %v2134_v45 = vmul.f32 %v6117_v9, %v4607_v38  ;;  %v2129_v38 = vmul.f32 %v2944_v12, %v4635_v56  ;;  %v2596_v19 = vmul.f32 -1.442695, %v5570_v36  ;;  %v5582_v12 = vld [vmem:[%s4371_s18 + $0x10] sm:$0xff] }
 0x139   : > { %3579 = vmatprep.subr.mxu0 %v1853_v63 }
 0x13a   : > { %3580 = vmatpush3.msra.mxu0 %v1853_v63  ;;  %v2595_v63 = vmul.f32 -1.442695, %v5577_v30 }
 0x13b   : > { %3581 = vmatprep.subr.mxu0 %v1852_v31 }
 0x13c   : > { %3582 = vmatpush3.msra.mxu0 %v1852_v31 }
 0x13d   : > { %3583 = vmatprep.subr.mxu0 %v1851_v25 }
 0x13e   : > { %3584 = vmatpush3.msra.mxu0 %v1851_v25 }
 0x13f   : > { %3585 = vmatprep.subr.mxu0 %v1850_v33 }
 0x140   : > { %3586 = vmatpush3.msra.mxu0 %v1850_v33  ;;  %v2597_v33 = vmul.f32 -1.442695, %v5582_v12 }
 0x141   : > { %3631 = vmatprep.subr.mxu0 %v2144_v37  ;;  %3588 = vmatmul.mubr.msk.f32.vlgmr.msra.gmra.mxu0 %vm4529_vm13, %v6112_v6 }
 0x142   : > { %3632 = vmatpush3.msra.mxu0 %v2144_v37  ;;  %3590 = vmatprep.mubr.msk.f32.mxu0 %vm4538_vm14, %v6112_v6  ;;  %v2696_v37 = vld [vmem:[%s4371_s18 + $0x48] sm:$0xff] }
 0x143   : > { %3633 = vmatprep.subr.mxu0 %v2143_v41 }
 0x144   : > { %3634 = vmatpush3.msra.mxu0 %v2143_v41  ;;  %v2695_v41 = vld [vmem:[%s4371_s18 + $0x40] sm:$0xff] }
 0x145   : > { %3635 = vmatprep.subr.mxu0 %v2142_v46  ;;  %3591 = vmatmul.mubr.msk.f32.gmra.mxu0 %vm4556_vm1, %v6112_v6 }
 0x146   : > { %3636 = vmatpush3.msra.mxu0 %v2142_v46  ;;  %3663 = vmatprep.mubr.msk.f32.mxu0 %vm4434_vm4, %v6112_v6  ;;  %vm6118_vm4 = vnez %v6077_v59 }
 0x147   : > { %3637 = vmatprep.subr.mxu0 %v2141_v48 }
 0x148   : > { %3638 = vmatpush3.msra.mxu0 %v2141_v48  ;;  %v2697_v48 = vld [vmem:[%s4371_s18 + $0x50] sm:$0xff] }
 0x149   : > { %3639 = vmatprep.subr.mxu0 %v2140_v57 }
 0x14a   : > { %3640 = vmatpush3.msra.mxu0 %v2140_v57  ;;  %v2700_v57 = vmul.f32 -1.442695, %v2696_v37 }
 0x14b   : > { %3641 = vmatprep.subr.mxu0 %v2139_v60 }
 0x14c   : > { %3642 = vmatpush3.msra.mxu0 %v2139_v60 }
 0x14d   : > { %3643 = vmatprep.subr.mxu0 %v2138_v3 }
 0x14e   : > { %3644 = vmatpush3.msra.mxu0 %v2138_v3  ;;  %v2699_v3 = vmul.f32 -1.442695, %v2695_v41 }
 0x14f   : > { %3645 = vmatprep.subr.mxu0 %v2137_v35 }
 0x150   : > { %3646 = vmatpush3.msra.mxu0 %v2137_v35 }
 0x151   : > { %3647 = vmatprep.subr.mxu0 %v2136_v4 }
 0x152   : > { %3648 = vmatpush3.msra.mxu0 %v2136_v4  ;;  %v2701_v4 = vmul.f32 -1.442695, %v2697_v48 }
 0x153   : > { %3649 = vmatprep.subr.mxu0 %v2135_v1 }
 0x154   : > { %3650 = vmatpush3.msra.mxu0 %v2135_v1 }
 0x155   : > { %3651 = vmatprep.subr.mxu0 %v2134_v45 }
 0x156   : > { %3652 = vmatpush3.msra.mxu0 %v2134_v45 }
 0x157   : > { %3653 = vmatprep.subr.mxu0 %v2133_v17 }
 0x158   : > { %3654 = vmatpush3.msra.mxu0 %v2133_v17 }
 0x159   : > { %3655 = vmatprep.subr.mxu0 %v2132_v26 }
 0x15a   : > { %3656 = vmatpush3.msra.mxu0 %v2132_v26  ;;  %v2702_v26 = vmul.f32 -1.442695, %v2698_v0 }
 0x15b   : > { %3657 = vmatprep.subr.mxu0 %v2131_v34 }
 0x15c   : > { %3658 = vmatpush3.msra.mxu0 %v2131_v34 }
 0x15d   : > { %3659 = vmatprep.subr.mxu0 %v2130_v2 }
 0x15e   : > { %3660 = vmatpush3.msra.mxu0 %v2130_v2 }
 0x15f   : > { %3661 = vmatprep.subr.mxu0 %v2129_v38 }
 0x160   : > { %3662 = vmatpush3.msra.mxu0 %v2129_v38 }
 0x161   : > { %3664 = vmatmul.mubr.msk.f32.vlgmr.msra.gmra.mxu0 %vm4529_vm13, %v6112_v6  ;;  %vm6119_vm13 = vnez %v6079_v5 }
 0x162   : > { %3666 = vmatprep.mubr.msk.f32.mxu0 %vm4538_vm14, %v6112_v6  ;;  %vm6120_vm14 = vnez %v6081_v22  ;;  %v2668_v22 = vld [vmem:[%s4371_s18 + $0x28] sm:$0xff] }
 0x163   : > { %v2672_v29 = vmul.f32 -1.442695, %v2668_v22 }
 0x165   : > { %3667 = vmatmul.mubr.msk.f32.gmra.mxu0 %vm4556_vm1, %v6112_v6  ;;  %vm6121_vm1 = vnez %v6083_v39  ;;  %v2667_v39 = vld [vmem:[%s4371_s18 + $0x20] sm:$0xff]  ;;  %3832 = vpow2.f32 %v2672_v29 }
 0x166   : > { %v2671_v47 = vmul.f32 -1.442695, %v2667_v39 }
 0x168   : > { %3834 = vpow2.f32 %v2671_v47 }
 0x169   : > { %3836 = vpow2.f32 %v2673_v61 }
 0x16a   : > { %3838 = vpow2.f32 %v2674_v8 }
 0x16b   : > { %3840 = vpow2.f32 %v2596_v19 }
 0x16c   : > { %3842 = vpow2.f32 %v2595_v63 }
 0x172   : > { %v3833_v53 = vpop.eup %3832 }
 0x173   : > { %v1155_v9 = vadd.f32 1.0, %v3833_v53 }
 0x175   : > { %v3835_v35 = vpop.eup %3834 }
 0x176   : > { %v3837_v7 = vpop.eup %3836  ;;  %v1154_v38 = vadd.f32 1.0, %v3835_v35 }
 0x177   : > { %v3839_v45 = vpop.eup %3838 }
 0x178   : > { %v1157_v62 = vadd.f32 1.0, %v3839_v45 }
 0x181   : > { %v3285_v42 = vpop.f32.mrf.mxu0 }
 0x183   : > { %v672_v44 = vpop.f32.mrf.mxu0 }
 0x184   : > { %3321 = vmatprep.mubr.f32.mxu1 %v672_v44 }
 0x185   : > { %v3288_v49 = vpop.f32.mrf.mxu0  ;;  %3322 = vmatmul.mubr.f32.vlgmr.msra.gmra.mxu1 %v3285_v42  ;;  %v3841_v42 = vpop.eup %3840 }
 0x186   : > { %3366 = vmatpush3.msk.msra.mxu1 %vm4659_vm6, %v6112_v6  ;;  %v3843_v55 = vpop.eup %3842 }
 0x187   : > { %v682_v51 = vpop.f32.mrf.mxu0  ;;  %3367 = vmatprep.subr.msk.mxu1 %vm6118_vm4, %v6112_v6 }
 0x188   : > { %3324 = vmatprep.mubr.f32.mxu1 %v682_v51  ;;  %3368 = vmatpush3.msk.msra.mxu1 %vm6118_vm4, %v6112_v6  ;;  %v1156_v51 = vadd.f32 1.0, %v3837_v7 }
 0x189   : > { %3325 = vmatmul.mubr.f32.gmra.mxu1 %v3288_v49  ;;  %3369 = vmatprep.subr.msk.mxu1 %vm6119_vm13, %v6112_v6 }
 0x18a   : > { %3370 = vmatpush3.msk.msra.mxu1 %vm6119_vm13, %v6112_v6 }
 0x18b   : > { %3371 = vmatprep.subr.msk.mxu1 %vm6120_vm14, %v6112_v6 }
 0x18c   : > { %3372 = vmatpush3.msk.msra.mxu1 %vm6120_vm14, %v6112_v6 }
 0x18d   : > { %3373 = vmatprep.subr.msk.mxu1 %vm6121_vm1, %v6112_v6 }
 0x18e   : > { %3374 = vmatpush3.msk.msra.mxu1 %vm6121_vm1, %v6112_v6 }
 0x18f   : > { %3375 = vmatprep.subr.msk.mxu1 %vm6122_vm12, %v6112_v6 }
 0x190   : > { %3376 = vmatpush3.msk.msra.mxu1 %vm6122_vm12, %v6112_v6 }
 0x191   : > { %3377 = vmatprep.subr.msk.mxu1 %vm6124_vm10, %v6112_v6 }
 0x192   : > { %3378 = vmatpush3.msk.msra.mxu1 %vm6124_vm10, %v6112_v6 }
 0x193   : > { %3379 = vmatprep.subr.msk.mxu1 %vm6125_vm0, %v6112_v6 }
 0x194   : > { %3380 = vmatpush3.msk.msra.mxu1 %vm6125_vm0, %v6112_v6 }
 0x195   : > { %3381 = vmatprep.subr.msk.mxu1 %vm4800_vm7, %v6112_v6 }
 0x196   : > { %3382 = vmatpush3.msk.msra.mxu1 %vm4800_vm7, %v6112_v6 }
 0x197   : > { %3383 = vmatprep.subr.msk.mxu1 %vm4816_vm3, %v6112_v6 }
 0x198   : > { %3384 = vmatpush3.msk.msra.mxu1 %vm4816_vm3, %v6112_v6 }
 0x199   : > { %3385 = vmatprep.subr.msk.mxu1 %vm4829_vm11, %v6112_v6 }
 0x19a   : > { %3386 = vmatpush3.msk.msra.mxu1 %vm4829_vm11, %v6112_v6 }
 0x19b   : > { %3387 = vmatprep.subr.msk.mxu1 %vm4845_vm9, %v6112_v6 }
 0x19c   : > { %3388 = vmatpush3.msk.msra.mxu1 %vm4845_vm9, %v6112_v6 }
 0x19d   : > { %3389 = vmatprep.subr.msk.mxu1 %vm4853_vm2, %v6112_v6 }
 0x19e   : > { %3390 = vmatpush3.msk.msra.mxu1 %vm4853_vm2, %v6112_v6 }
 0x19f   : > { %3391 = vmatprep.subr.msk.mxu1 %vm4460_vm8, %v6112_v6 }
 0x1a0   : > { %3392 = vmatpush3.msk.msra.mxu1 %vm4460_vm8, %v6112_v6 }
 0x1a1   : > { %v3361_v58 = vpop.f32.mrf.mxu0  ;;  %3393 = vmatprep.subr.msk.mxu1 %vm4447_vm5, %v6112_v6 }
 0x1a2   : > { %3394 = vmatpush3.msk.msra.mxu1 %vm4447_vm5, %v6112_v6 }
 0x1a3   : > { %v842_v56 = vpop.f32.mrf.mxu0  ;;  %3395 = vmatprep.subr.msk.mxu1 %vm4902_vm15, %v6112_v6 }
 0x1a4   : > { %3396 = vmatpush3.msk.msra.mxu1 %vm4902_vm15, %v6112_v6  ;;  %3397 = vmatprep.mubr.f32.mxu1 %v842_v56 }
 0x1a5   : > { %v3364_v14 = vpop.f32.mrf.mxu0  ;;  %3398 = vmatmul.mubr.f32.vlgmr.msra.gmra.mxu1 %v3361_v58  ;;  %3441 = vmatprep.subr.msk.mxu1 %vm4659_vm6, %v6112_v6 }
 0x1a6   : > { %3442 = vmatpush3.msk.msra.mxu1 %vm4659_vm6, %v6112_v6 }
 0x1a7   : > { %v852_v11 = vpop.f32.mrf.mxu0  ;;  %3443 = vmatprep.subr.msk.mxu1 %vm6118_vm4, %v6112_v6 }
 0x1a8   : > { %3400 = vmatprep.mubr.f32.mxu1 %v852_v11  ;;  %3444 = vmatpush3.msk.msra.mxu1 %vm6118_vm4, %v6112_v6 }
 0x1a9   : > { %3401 = vmatmul.mubr.f32.gmra.mxu1 %v3364_v14  ;;  %3445 = vmatprep.subr.msk.mxu1 %vm6119_vm13, %v6112_v6  ;;  %v356_v14 = vadd.f32 1.0, %v3841_v42 }
 0x1aa   : > { %3446 = vmatpush3.msk.msra.mxu1 %vm6119_vm13, %v6112_v6 }
 0x1ab   : > { %3447 = vmatprep.subr.msk.mxu1 %vm6120_vm14, %v6112_v6 }
 0x1ac   : > { %3448 = vmatpush3.msk.msra.mxu1 %vm6120_vm14, %v6112_v6 }
 0x1ad   : > { %3449 = vmatprep.subr.msk.mxu1 %vm6121_vm1, %v6112_v6 }
 0x1ae   : > { %3450 = vmatpush3.msk.msra.mxu1 %vm6121_vm1, %v6112_v6 }
 0x1af   : > { %3451 = vmatprep.subr.msk.mxu1 %vm6122_vm12, %v6112_v6 }
 0x1b0   : > { %3452 = vmatpush3.msk.msra.mxu1 %vm6122_vm12, %v6112_v6 }
 0x1b1   : > { %3453 = vmatprep.subr.msk.mxu1 %vm6124_vm10, %v6112_v6 }
 0x1b2   : > { %3454 = vmatpush3.msk.msra.mxu1 %vm6124_vm10, %v6112_v6 }
 0x1b3   : > { %3455 = vmatprep.subr.msk.mxu1 %vm6125_vm0, %v6112_v6 }
 0x1b4   : > { %3456 = vmatpush3.msk.msra.mxu1 %vm6125_vm0, %v6112_v6 }
 0x1b5   : > { %3457 = vmatprep.subr.msk.mxu1 %vm4800_vm7, %v6112_v6 }
 0x1b6   : > { %3458 = vmatpush3.msk.msra.mxu1 %vm4800_vm7, %v6112_v6 }
 0x1b7   : > { %3459 = vmatprep.subr.msk.mxu1 %vm4816_vm3, %v6112_v6 }
 0x1b8   : > { %3460 = vmatpush3.msk.msra.mxu1 %vm4816_vm3, %v6112_v6 }
 0x1b9   : > { %3461 = vmatprep.subr.msk.mxu1 %vm4829_vm11, %v6112_v6 }
 0x1ba   : > { %3462 = vmatpush3.msk.msra.mxu1 %vm4829_vm11, %v6112_v6 }
 0x1bb   : > { %3463 = vmatprep.subr.msk.mxu1 %vm4845_vm9, %v6112_v6 }
 0x1bc   : > { %3464 = vmatpush3.msk.msra.mxu1 %vm4845_vm9, %v6112_v6 }
 0x1bd   : > { %3465 = vmatprep.subr.msk.mxu1 %vm4853_vm2, %v6112_v6 }
 0x1be   : > { %3466 = vmatpush3.msk.msra.mxu1 %vm4853_vm2, %v6112_v6 }
 0x1bf   : > { %3467 = vmatprep.subr.msk.mxu1 %vm4460_vm8, %v6112_v6 }
 0x1c0   : > { %3468 = vmatpush3.msk.msra.mxu1 %vm4460_vm8, %v6112_v6 }
 0x1c1   : > { %v3437_v15 = vpop.f32.mrf.mxu0  ;;  %3469 = vmatprep.subr.msk.mxu1 %vm4447_vm5, %v6112_v6 }
 0x1c2   : > { %3470 = vmatpush3.msk.msra.mxu1 %vm4447_vm5, %v6112_v6 }
 0x1c3   : > { %v1280_v40 = vpop.f32.mrf.mxu0  ;;  %3471 = vmatprep.subr.msk.mxu1 %vm4902_vm15, %v6112_v6 }
 0x1c4   : > { %3472 = vmatpush3.msk.msra.mxu1 %vm4902_vm15, %v6112_v6  ;;  %3473 = vmatprep.mubr.f32.mxu1 %v1280_v40 }
 0x1c5   : > { %v3440_v50 = vpop.f32.mrf.mxu0  ;;  %3474 = vmatmul.mubr.f32.vlgmr.msra.gmra.mxu1 %v3437_v15  ;;  %3517 = vmatprep.subr.msk.mxu1 %vm4659_vm6, %v6112_v6  ;;  %v355_v15 = vadd.f32 1.0, %v3843_v55 }
 0x1c6   : > { %3518 = vmatpush3.msk.msra.mxu1 %vm4659_vm6, %v6112_v6 }
 0x1c7   : > { %v1290_v21 = vpop.f32.mrf.mxu0  ;;  %3519 = vmatprep.subr.msk.mxu1 %vm6118_vm4, %v6112_v6 }
 0x1c8   : > { %3476 = vmatprep.mubr.f32.mxu1 %v1290_v21  ;;  %3520 = vmatpush3.msk.msra.mxu1 %vm6118_vm4, %v6112_v6  ;;  %v367_v21 = vstv %s338_s30 }
 0x1c9   : > { %3477 = vmatmul.mubr.f32.gmra.mxu1 %v3440_v50  ;;  %3521 = vmatprep.subr.msk.mxu1 %vm6119_vm13, %v6112_v6 }
 0x1ca   : > { %3522 = vmatpush3.msk.msra.mxu1 %vm6119_vm13, %v6112_v6 }
 0x1cb   : > { %3523 = vmatprep.subr.msk.mxu1 %vm6120_vm14, %v6112_v6 }
 0x1cc   : > { %3524 = vmatpush3.msk.msra.mxu1 %vm6120_vm14, %v6112_v6 }
 0x1cd   : > { %3525 = vmatprep.subr.msk.mxu1 %vm6121_vm1, %v6112_v6 }
 0x1ce   : > { %3526 = vmatpush3.msk.msra.mxu1 %vm6121_vm1, %v6112_v6 }
 0x1cf   : > { %3527 = vmatprep.subr.msk.mxu1 %vm6122_vm12, %v6112_v6 }
 0x1d0   : > { %3528 = vmatpush3.msk.msra.mxu1 %vm6122_vm12, %v6112_v6 }
 0x1d1   : > { %3529 = vmatprep.subr.msk.mxu1 %vm6124_vm10, %v6112_v6 }
 0x1d2   : > { %3530 = vmatpush3.msk.msra.mxu1 %vm6124_vm10, %v6112_v6 }
 0x1d3   : > { %3531 = vmatprep.subr.msk.mxu1 %vm6125_vm0, %v6112_v6 }
 0x1d4   : > { %3532 = vmatpush3.msk.msra.mxu1 %vm6125_vm0, %v6112_v6 }
 0x1d5   : > { %3533 = vmatprep.subr.msk.mxu1 %vm4800_vm7, %v6112_v6 }
 0x1d6   : > { %3534 = vmatpush3.msk.msra.mxu1 %vm4800_vm7, %v6112_v6 }
 0x1d7   : > { %3535 = vmatprep.subr.msk.mxu1 %vm4816_vm3, %v6112_v6 }
 0x1d8   : > { %3536 = vmatpush3.msk.msra.mxu1 %vm4816_vm3, %v6112_v6 }
 0x1d9   : > { %3537 = vmatprep.subr.msk.mxu1 %vm4829_vm11, %v6112_v6 }
 0x1da   : > { %3538 = vmatpush3.msk.msra.mxu1 %vm4829_vm11, %v6112_v6 }
 0x1db   : > { %3539 = vmatprep.subr.msk.mxu1 %vm4845_vm9, %v6112_v6 }
 0x1dc   : > { %3540 = vmatpush3.msk.msra.mxu1 %vm4845_vm9, %v6112_v6 }
 0x1dd   : > { %3541 = vmatprep.subr.msk.mxu1 %vm4853_vm2, %v6112_v6 }
 0x1de   : > { %3542 = vmatpush3.msk.msra.mxu1 %vm4853_vm2, %v6112_v6 }
 0x1df   : > { %3543 = vmatprep.subr.msk.mxu1 %vm4460_vm8, %v6112_v6 }
 0x1e0   : > { %3544 = vmatpush3.msk.msra.mxu1 %vm4460_vm8, %v6112_v6 }
 0x1e1   : > { %v3513_v54 = vpop.f32.mrf.mxu0  ;;  %3545 = vmatprep.subr.msk.mxu1 %vm4447_vm5, %v6112_v6 }
 0x1e2   : > { %3546 = vmatpush3.msk.msra.mxu1 %vm4447_vm5, %v6112_v6 }
 0x1e3   : > { %v1606_v10 = vpop.f32.mrf.mxu0  ;;  %3547 = vmatprep.subr.msk.mxu1 %vm4902_vm15, %v6112_v6 }
 0x1e4   : > { %3548 = vmatpush3.msk.msra.mxu1 %vm4902_vm15, %v6112_v6  ;;  %3549 = vmatprep.mubr.f32.mxu1 %v1606_v10 }
 0x1e5   : > { %v3516_v23 = vpop.f32.mrf.mxu0  ;;  %3550 = vmatmul.mubr.f32.vlgmr.msra.gmra.mxu1 %v3513_v54  ;;  %3593 = vmatprep.subr.msk.mxu1 %vm4659_vm6, %v6112_v6 }
 0x1e6   : > { %3594 = vmatpush3.msk.msra.mxu1 %vm4659_vm6, %v6112_v6 }
 0x1e7   : > { %v1616_v25 = vpop.f32.mrf.mxu0  ;;  %3595 = vmatprep.subr.msk.mxu1 %vm6118_vm4, %v6112_v6 }
 0x1e8   : > { %3552 = vmatprep.mubr.f32.mxu1 %v1616_v25  ;;  %3596 = vmatpush3.msk.msra.mxu1 %vm6118_vm4, %v6112_v6 }
 0x1e9   : > { %3553 = vmatmul.mubr.f32.gmra.mxu1 %v3516_v23  ;;  %3597 = vmatprep.subr.msk.mxu1 %vm6119_vm13, %v6112_v6 }
 0x1ea   : > { %3598 = vmatpush3.msk.msra.mxu1 %vm6119_vm13, %v6112_v6 }
 0x1eb   : > { %3599 = vmatprep.subr.msk.mxu1 %vm6120_vm14, %v6112_v6 }
 0x1ec   : > { %3600 = vmatpush3.msk.msra.mxu1 %vm6120_vm14, %v6112_v6 }
 0x1ed   : > { %3601 = vmatprep.subr.msk.mxu1 %vm6121_vm1, %v6112_v6 }
 0x1ee   : > { %3602 = vmatpush3.msk.msra.mxu1 %vm6121_vm1, %v6112_v6 }
 0x1ef   : > { %3603 = vmatprep.subr.msk.mxu1 %vm6122_vm12, %v6112_v6 }
 0x1f0   : > { %3604 = vmatpush3.msk.msra.mxu1 %vm6122_vm12, %v6112_v6 }
 0x1f1   : > { %3605 = vmatprep.subr.msk.mxu1 %vm6124_vm10, %v6112_v6 }
 0x1f2   : > { %3606 = vmatpush3.msk.msra.mxu1 %vm6124_vm10, %v6112_v6 }
 0x1f3   : > { %3607 = vmatprep.subr.msk.mxu1 %vm6125_vm0, %v6112_v6 }
 0x1f4   : > { %3608 = vmatpush3.msk.msra.mxu1 %vm6125_vm0, %v6112_v6 }
 0x1f5   : > { %3609 = vmatprep.subr.msk.mxu1 %vm4800_vm7, %v6112_v6 }
 0x1f6   : > { %3610 = vmatpush3.msk.msra.mxu1 %vm4800_vm7, %v6112_v6 }
 0x1f7   : > { %3611 = vmatprep.subr.msk.mxu1 %vm4816_vm3, %v6112_v6 }
 0x1f8   : > { %3612 = vmatpush3.msk.msra.mxu1 %vm4816_vm3, %v6112_v6 }
 0x1f9   : > { %3613 = vmatprep.subr.msk.mxu1 %vm4829_vm11, %v6112_v6 }
 0x1fa   : > { %3614 = vmatpush3.msk.msra.mxu1 %vm4829_vm11, %v6112_v6 }
 0x1fb   : > { %3615 = vmatprep.subr.msk.mxu1 %vm4845_vm9, %v6112_v6 }
 0x1fc   : > { %3616 = vmatpush3.msk.msra.mxu1 %vm4845_vm9, %v6112_v6 }
 0x1fd   : > { %3617 = vmatprep.subr.msk.mxu1 %vm4853_vm2, %v6112_v6 }
 0x1fe   : > { %3618 = vmatpush3.msk.msra.mxu1 %vm4853_vm2, %v6112_v6 }
 0x1ff   : > { %3619 = vmatprep.subr.msk.mxu1 %vm4460_vm8, %v6112_v6 }
 0x200   : > { %3620 = vmatpush3.msk.msra.mxu1 %vm4460_vm8, %v6112_v6 }
 0x201   : > { %3621 = vmatprep.subr.msk.mxu1 %vm4447_vm5, %v6112_v6  ;;  %v3589_v13 = vpop.f32.mrf.mxu0 }
 0x202   : > { %3622 = vmatpush3.msk.msra.mxu1 %vm4447_vm5, %v6112_v6 }
 0x203   : > { %3623 = vmatprep.subr.msk.mxu1 %vm4902_vm15, %v6112_v6  ;;  %v1932_v27 = vpop.f32.mrf.mxu0 }
 0x204   : > { %3624 = vmatpush3.msk.msra.mxu1 %vm4902_vm15, %v6112_v6  ;;  %3625 = vmatprep.mubr.f32.mxu1 %v1932_v27 }
 0x205   : > { %3669 = vmatprep.subr.msk.mxu1 %vm4659_vm6, %v6112_v6  ;;  %3626 = vmatmul.mubr.f32.vlgmr.msra.gmra.mxu1 %v3589_v13  ;;  %v3592_v16 = vpop.f32.mrf.mxu0  ;;  %v6039_v13 = vmov 0.0  }
 0x206   : > { %3670 = vmatpush3.msk.msra.mxu1 %vm4659_vm6, %v6112_v6  ;;  %vm369_vm6 = vcmp.ge.f32.partialorder %v5570_v36, %v367_v21 }
 0x207   : > { %3671 = vmatprep.subr.msk.mxu1 %vm6118_vm4, %v6112_v6  ;;  %v1942_v28 = vpop.f32.mrf.mxu0 }
 0x208   : > { %3672 = vmatpush3.msk.msra.mxu1 %vm6118_vm4, %v6112_v6  ;;  %3628 = vmatprep.mubr.f32.mxu1 %v1942_v28  ;;  %v2600_v28 = vsel %vm369_vm6, 1.0, %v6039_v13 }
 0x209   : > { %3673 = vmatprep.subr.msk.mxu1 %vm6119_vm13, %v6112_v6  ;;  %3629 = vmatmul.mubr.f32.gmra.mxu1 %v3592_v16  ;;  %v984_v47 = vsub.f32 1.0, %v2600_v28 }
 0x20a   : > { %3674 = vmatpush3.msk.msra.mxu1 %vm6119_vm13, %v6112_v6 }
 0x20b   : > { %3675 = vmatprep.subr.msk.mxu1 %vm6120_vm14, %v6112_v6 }
 0x20c   : > { %3676 = vmatpush3.msk.msra.mxu1 %vm6120_vm14, %v6112_v6 }
 0x20d   : > { %3677 = vmatprep.subr.msk.mxu1 %vm6121_vm1, %v6112_v6 }
 0x20e   : > { %3678 = vmatpush3.msk.msra.mxu1 %vm6121_vm1, %v6112_v6 }
 0x20f   : > { %3679 = vmatprep.subr.msk.mxu1 %vm6122_vm12, %v6112_v6 }
 0x210   : > { %3680 = vmatpush3.msk.msra.mxu1 %vm6122_vm12, %v6112_v6 }
 0x211   : > { %3681 = vmatprep.subr.msk.mxu1 %vm6124_vm10, %v6112_v6 }
 0x212   : > { %3682 = vmatpush3.msk.msra.mxu1 %vm6124_vm10, %v6112_v6 }
 0x213   : > { %3683 = vmatprep.subr.msk.mxu1 %vm6125_vm0, %v6112_v6 }
 0x214   : > { %3684 = vmatpush3.msk.msra.mxu1 %vm6125_vm0, %v6112_v6 }
 0x215   : > { %3685 = vmatprep.subr.msk.mxu1 %vm4800_vm7, %v6112_v6 }
 0x216   : > { %3686 = vmatpush3.msk.msra.mxu1 %vm4800_vm7, %v6112_v6  ;;  %vm380_vm7 = vcmp.gt.f32.partialorder %v5577_v30, 0.0 }
 0x217   : > { %3687 = vmatprep.subr.msk.mxu1 %vm4816_vm3, %v6112_v6 }
 0x218   : > { %3688 = vmatpush3.msk.msra.mxu1 %vm4816_vm3, %v6112_v6  ;;  %vm368_vm3 = vcmp.ge.f32.partialorder %v5577_v30, %v367_v21 }
 0x219   : > { %3689 = vmatprep.subr.msk.mxu1 %vm4829_vm11, %v6112_v6  ;;  %v2599_v52 = vsel %vm368_vm3, 1.0, %v6039_v13 }
 0x21a   : > { %3690 = vmatpush3.msk.msra.mxu1 %vm4829_vm11, %v6112_v6  ;;  %v983_v61 = vsub.f32 1.0, %v2599_v52 }
 0x21b   : > { %3691 = vmatprep.subr.msk.mxu1 %vm4845_vm9, %v6112_v6 }
 0x21c   : > { %3692 = vmatpush3.msk.msra.mxu1 %vm4845_vm9, %v6112_v6 }
 0x21d   : > { %3693 = vmatprep.subr.msk.mxu1 %vm4853_vm2, %v6112_v6 }
 0x21e   : > { %3694 = vmatpush3.msk.msra.mxu1 %vm4853_vm2, %v6112_v6  ;;  %vm370_vm2 = vcmp.ge.f32.partialorder %v5582_v12, %v367_v21 }
 0x21f   : > { %3695 = vmatprep.subr.msk.mxu1 %vm4460_vm8, %v6112_v6  ;;  %v5647_v30 = vsel %vm370_vm2, 1.0, %v6039_v13 }
 0x220   : > { %3696 = vmatpush3.msk.msra.mxu1 %vm4460_vm8, %v6112_v6  ;;  %vm381_vm8 = vcmp.gt.f32.partialorder %v5570_v36, 0.0 }
 0x221   : > { %v3665_v43 = vpop.f32.mrf.mxu0  ;;  %3697 = vmatprep.subr.msk.mxu1 %vm4447_vm5, %v6112_v6  ;;  %v5612_v27 = vsel %vm381_vm8, 1.0, %v6039_v13 }
 0x222   : > { %3698 = vmatpush3.msk.msra.mxu1 %vm4447_vm5, %v6112_v6  ;;  %vm946_vm5 = vcmask 261120   ;;  %v6041_v7 = vsub.f32 1.0, %v5612_v27 }
 0x223   : > { %v2211_v59 = vpop.f32.mrf.mxu0  ;;  %3699 = vmatprep.subr.msk.mxu1 %vm4902_vm15, %v6112_v6 }
 0x224   : > { %3700 = vmatpush3.msk.msra.mxu1 %vm4902_vm15, %v6112_v6  ;;  %3701 = vmatprep.mubr.f32.mxu1 %v2211_v59  ;;  %v5573_v6 = vld [vmem:[%s4371_s18 + $0x18] sm:$0xff]  ;;  %v5621_v59 = vsel %vm380_vm7, 1.0, %v6039_v13  ;;  %vm382_vm15 = vcmp.gt.f32.partialorder %v5582_v12, 0.0 }
 0x225   : > { %v3668_v24 = vpop.f32.mrf.mxu0  ;;  %3702 = vmatmul.mubr.f32.vlgmr.msra.gmra.mxu1 %v3665_v43  ;;  %v2598_v31 = vmul.f32 -1.442695, %v5573_v6  ;;  %vm371_vm11 = vcmp.ge.f32.partialorder %v5573_v6, %v367_v21  ;;  %vm383_vm9 = vcmp.gt.f32.partialorder %v5573_v6, 0.0  ;;  %v5652_v12 = vsel %vm382_vm15, 1.0, %v6039_v13 }
 0x226   : > { %v2602_v8 = vsel %vm371_vm11, 1.0, %v6039_v13  ;;  %v5640_v36 = vsel %vm383_vm9, 1.0, %v6039_v13 }
 0x227   : > { %v2221_v5 = vpop.f32.mrf.mxu0  ;;  %3844 = vpow2.f32 %v2598_v31  ;;  %v986_v19 = vsub.f32 1.0, %v2602_v8 }
 0x228   : > { %3704 = vmatprep.mubr.f32.mxu1 %v2221_v5  ;;  %3846 = vpow2.f32 %v2597_v33  ;;  %v985_v33 = vsub.f32 1.0, %v5647_v30 }
 0x229   : > { %3705 = vmatmul.mubr.f32.gmra.mxu1 %v3668_v24  ;;  %3848 = vpow2.f32 %v2700_v57 }
 0x22a   : > { %3850 = vpow2.f32 %v2699_v3 }
 0x22b   : > { %3852 = vpow2.f32 %v2701_v4 }
 0x22c   : > { %3854 = vrcp.f32 %v1155_v9 }
 0x22d   : > { %3856 = vpow2.f32 %v2702_v26  ;;  %v1072_v26 = vsub.f32 1.0, %v5621_v59 }
 0x22e   : > { %3858 = vrcp.f32 %v1154_v38 }
 0x22f   : > { %3860 = vrcp.f32 %v1156_v51 }
 0x230   : > { %3862 = vrcp.f32 %v1157_v62 }
 0x231   : > { %3864 = vrcp.f32 %v356_v14 }
 0x232   : > { %3866 = vrcp.f32 %v355_v15 }
 0x234   : > { %v3845_v56 = vpop.eup %3844 }
 0x235   : > { %v3847_v20 = vpop.eup %3846  ;;  %v358_v40 = vadd.f32 1.0, %v3845_v56 }
 0x236   : > { %v357_v50 = vadd.f32 1.0, %v3847_v20  ;;  %v3849_v54 = vpop.eup %3848 }
 0x237   : > { %3868 = vrcp.f32 %v358_v40  ;;  %v3851_v10 = vpop.eup %3850  ;;  %v5624_v5 = vadd.f32 1.0, %v3849_v54 }
 0x238   : > { %3870 = vrcp.f32 %v357_v50  ;;  %v3853_v23 = vpop.eup %3852  ;;  %v1479_v24 = vadd.f32 1.0, %v3851_v10 }
 0x239   : > { %v5609_v25 = vpop.eup %3854  ;;  %v5655_v37 = vadd.f32 1.0, %v3853_v23 }
 0x23a   : > { %v3857_v16 = vpop.eup %3856  ;;  %v1409_v29 = vmul.f32 %v5609_v25, %v5609_v25  ;;  %3872 = vrcp.f32 %v1479_v24 }
 0x23b   : > { %v5618_v43 = vpop.eup %3858  ;;  %v5662_v0 = vadd.f32 1.0, %v3857_v16  ;;  %3874 = vrcp.f32 %v5624_v5  ;;  %v5799_v5 = vld [vmem:[%s4371_s18 + $0x70] sm:$0xff] }
 0x23c   : > { %v5626_v22 = vpop.eup %3860  ;;  %v1408_v63 = vmul.f32 %v5618_v43, %v5618_v43  ;;  %3876 = vrcp.f32 %v5655_v37  ;;  %vm2119_vm1 = vcmp.gt.f32.partialorder %v5799_v5, 0.0 }
 0x23d   : > { %v5636_v32 = vpop.eup %3862  ;;  %v1410_v48 = vmul.f32 %v5626_v22, %v5626_v22  ;;  %3878 = vrcp.f32 %v5662_v0  ;;  %v1384_v0 = vmul.f32 %v5618_v43, %v5621_v59 }
 0x23e   : > { %v3865_v31 = vpop.eup %3864  ;;  %v1411_v53 = vmul.f32 %v5636_v32, %v5636_v32 }
 0x23f   : > { %v3867_v41 = vpop.eup %3866  ;;  %v1016_v4 = vmul.f32 %v3865_v31, %v3865_v31 }
 0x244   : > { %v3869_v3 = vpop.eup %3868 }
 0x245   : > { %v5587_v46 = vpop.f32.mrf.mxu1  ;;  %v3871_v9 = vpop.eup %3870 }
 0x246   : > { %v948_v17 = vsel %vm946_vm5, %v5587_v46, 0.0  ;;  %v5630_v39 = vmul.f32 %v5587_v46, %v5612_v27  ;;  %v980_v38 = vmul.f32 %v5587_v46, %v2600_v28  ;;  %v1017_v42 = vmul.f32 %v3871_v9, %v3871_v9 }
 0x247   : > { %v5590_v60 = vpop.f32.mrf.mxu1 }
 0x248   : > { %v947_v18 = vsel %vm946_vm5, %v5590_v60, 0.0  ;;  %v5644_v6 = vmul.f32 %v5621_v59, %v5590_v60  ;;  %v1413_v57 = vmul.f32 %v1409_v29, %v5630_v39  ;;  %v979_v51 = vmul.f32 %v2599_v52, %v5590_v60 }
 0x249   : > { %v5595_v1 = vpop.f32.mrf.mxu1  ;;  %v949_v2 = vadd.f32 %v948_v17, %v947_v18  ;;  %v1015_v18 = vmul.f32 %v3867_v41, %v3867_v41  ;;  %v5673_v17 = vmul.f32 %v3869_v3, %v3869_v3 }
 0x24a   : > { %v952_v49 = vsel %vm946_vm5, %v5595_v1, 0.0  ;;  %v5666_v35 = vmul.f32 %v5595_v1, %v5640_v36  ;;  %v982_v55 = vmul.f32 %v5595_v1, %v2602_v8  ;;  %v5687_v56 = vsel %vm946_vm5, %v1413_v57, 0.0 }
 0x24b   : > { %v5599_v34 = vpop.f32.mrf.mxu1 }
 0x24c   : > { %v950_v44 = vsel %vm946_vm5, %v5599_v34, 0.0  ;;  %v5671_v45 = vmul.f32 %v5652_v12, %v5599_v34  ;;  %v5694_v15 = vmul.f32 %v1411_v53, %v5666_v35 }
 0x24d   : > { %v951_v58 = vadd.f32 %v950_v44, %v949_v2  ;;  %v1412_v2 = vmul.f32 %v1408_v63, %v5644_v6 }
 0x24e   : > { %v5703_v54 = vmul.f32 %v1410_v48, %v5671_v45 }
 0x24f   : > { %v953_v11 = vadd.f32 %v952_v49, %v951_v58  ;;  %v981_v58 = vmul.f32 %v5647_v30, %v5599_v34  ;;  %v5706_v10 = vsel %vm946_vm5, %v1412_v2, 0.0 }
 0x251   : > { %954 = vadd.xlane.f32.xlu0 %v953_v11 }
 0x265   : > { %v5684_v62 = vpop.f32.mrf.mxu1 }
 0x266   : > { %v996_v20 = vmul.f32 %v3865_v31, %v5684_v62  ;;  %v1049_v14 = vmul.f32 %v5684_v62, %v5612_v27  ;;  %v988_v11 = vmul.f32 %v5684_v62, %v984_v47  ;;  %v964_v50 = vsel %vm946_vm5, %v5684_v62, 0.0 }
 0x267   : > { %v5696_v40 = vpop.f32.mrf.mxu1  ;;  %v1101_v21 = vsub.f32 %v5587_v46, %v5684_v62  ;;  %v1077_v24 = vmul.f32 %v5684_v62, %v6041_v7 }
 0x268   : > { %v963_v23 = vsel %vm946_vm5, %v5696_v40, 0.0  ;;  %v995_v16 = vmul.f32 %v3867_v41, %v5696_v40  ;;  %v1048_v28 = vmul.f32 %v5621_v59, %v5696_v40  ;;  %v1000_v29 = vsel %vm946_vm5, %v996_v20, 0.0 }
 0x269   : > { %v5716_v52 = vpop.f32.mrf.mxu1  ;;  %v965_v46 = vadd.f32 %v964_v50, %v963_v23  ;;  %v1053_v47 = vsel %vm946_vm5, %v1049_v14, 0.0  ;;  %v987_v8 = vmul.f32 %v983_v61, %v5696_v40  ;;  %v992_v41 = vadd.f32 %v988_v11, %v980_v38  ;;  %v5736_v38 = vpop.eup %3872 }
 0x26a   : > { %v968_v30 = vsel %vm946_vm5, %v5716_v52, 0.0  ;;  %v998_v63 = vmul.f32 %v3869_v3, %v5716_v52  ;;  %v999_v31 = vsel %vm946_vm5, %v995_v16, 0.0  ;;  %v1051_v53 = vmul.f32 %v5716_v52, %v5640_v36 }
 0x26b   : > { %v5725_v48 = vpop.f32.mrf.mxu1  ;;  %v1052_v57 = vsel %vm946_vm5, %v1048_v28, 0.0  ;;  %v990_v2 = vmul.f32 %v5716_v52, %v986_v19  ;;  %v991_v20 = vadd.f32 %v987_v8, %v979_v51  ;;  %v1001_v50 = vadd.f32 %v1000_v29, %v999_v31 }
 0x26c   : > { %v966_v61 = vsel %vm946_vm5, %v5725_v48, 0.0  ;;  %v997_v14 = vmul.f32 %v3871_v9, %v5725_v48  ;;  %v1050_v3 = vmul.f32 %v5652_v12, %v5725_v48  ;;  %v1004_v23 = vsel %vm946_vm5, %v998_v63, 0.0 }
 0x26d   : > { %v967_v11 = vadd.f32 %v966_v61, %v965_v46  ;;  %v1054_v16 = vadd.f32 %v1053_v47, %v1052_v57  ;;  %v989_v28 = vmul.f32 %v985_v33, %v5725_v48  ;;  %v994_v8 = vadd.f32 %v990_v2, %v982_v55 }
 0x26e   : > { %v1002_v19 = vsel %vm946_vm5, %v997_v14, 0.0  ;;  %v1055_v51 = vsel %vm946_vm5, %v1050_v3, 0.0  ;;  %v1019_v13 = vmul.f32 %v1015_v18, %v991_v20  ;;  %v1057_v44 = vsel %vm946_vm5, %v1051_v53, 0.0 }
 0x26f   : > { %v969_v49 = vadd.f32 %v968_v30, %v967_v11  ;;  %v1003_v9 = vadd.f32 %v1002_v19, %v1001_v50  ;;  %v1056_v29 = vadd.f32 %v1055_v51, %v1054_v16  ;;  %v993_v31 = vadd.f32 %v989_v28, %v981_v58 }
 0x270   : > { %v1020_v7 = vmul.f32 %v1016_v4, %v992_v41  ;;  %v1023_v46 = vsel %vm946_vm5, %v1019_v13, 0.0  ;;  %v1100_v47 = vsub.f32 %v5590_v60, %v5696_v40  ;;  %v1022_v57 = vmul.f32 %v5673_v17, %v994_v8 }
 0x271   : > { %970 = vadd.xlane.f32.xlu0 %v969_v49  ;;  %v1005_v33 = vadd.f32 %v1004_v23, %v1003_v9  ;;  %v1021_v63 = vmul.f32 %v1017_v42, %v993_v31  ;;  %v1102_v18 = vsub.f32 %v5599_v34, %v5725_v48  ;;  %v1058_v55 = vadd.f32 %v1057_v44, %v1056_v29 }
 0x272   : > { %v1024_v30 = vsel %vm946_vm5, %v1020_v7, 0.0  ;;  %v1103_v58 = vsub.f32 %v5595_v1, %v5716_v52  ;;  %v1104_v13 = vmul.f32 %v1100_v47, %v1072_v26  ;;  %v6128_v42 = vsub.f32 1.0, %v5612_v27 }
 0x273   : > { %1006 = vadd.xlane.f32.xlu1 %v1005_v33  ;;  %v1025_v4 = vadd.f32 %v1024_v30, %v1023_v46  ;;  %v1026_v60 = vsel %vm946_vm5, %v1021_v63, 0.0  ;;  %v6129_v17 = vsub.f32 1.0, %v5652_v12  ;;  %v6130_v34 = vsub.f32 1.0, %v5640_v36  ;;  %v5796_v30 = vld [vmem:[%s4371_s18 + $0x68] sm:$0xff] }
 0x274   : > { %v1105_v49 = vmul.f32 %v1101_v21, %v6128_v42  ;;  %v1108_v7 = vsel %vm946_vm5, %v1104_v13, 0.0  ;;  %v1076_v1 = vmul.f32 %v1072_v26, %v5696_v40  ;;  %v1028_v3 = vsel %vm946_vm5, %v1022_v57, 0.0  ;;  %v5792_v57 = vld [vmem:[%s4371_s18 + $0x60] sm:$0xff]  ;;  %v5806_v13 = vld [vmem:[%s4371_s18 + $0x78] sm:$0xff] }
 0x275   : > { %v1106_v41 = vmul.f32 %v1102_v18, %v6129_v17  ;;  %v1107_v44 = vmul.f32 %v1103_v58, %v6130_v34  ;;  %v6131_v53 = vmov %v6129_v17  ;;  %1059 = vadd.xlane.f32.xlu0 %v1058_v55  ;;  %v1027_v20 = vadd.f32 %v1026_v60, %v1025_v4 }
 0x276   : > { %v1078_v2 = vmul.f32 %v6131_v53, %v5725_v48  ;;  %v1109_v21 = vsel %vm946_vm5, %v1105_v49, 0.0  ;;  %v6132_v14 = vmov %v6130_v34  ;;  %v1080_v23 = vadd.f32 %v1076_v1, %v5644_v6  ;;  %v3875_v49 = vpop.eup %3874 }
 0x277   : > { %v1111_v61 = vsel %vm946_vm5, %v1106_v41, 0.0  ;;  %v1079_v50 = vmul.f32 %v5716_v52, %v6132_v14  ;;  %v1110_v11 = vadd.f32 %v1109_v21, %v1108_v7  ;;  %v1081_v26 = vadd.f32 %v1077_v24, %v5630_v39 }
 0x278   : > { %v1029_v16 = vadd.f32 %v1028_v3, %v1027_v20  ;;  %v1082_v28 = vadd.f32 %v1078_v2, %v5671_v45  ;;  %v1418_v19 = vadd.f32 %v5687_v56, %v5706_v10  ;;  %v1419_v51 = vsel %vm946_vm5, %v5703_v54, 0.0 }
 0x279   : > { %v1112_v8 = vadd.f32 %v1111_v61, %v1110_v11  ;;  %v1083_v9 = vadd.f32 %v1079_v50, %v5666_v35  ;;  %v1084_v29 = vsel %vm946_vm5, %v1080_v23, 0.0  ;;  %v1085_v31 = vsel %vm946_vm5, %v1081_v26, 0.0 }
 0x27a   : > { %1030 = vadd.xlane.f32.xlu1 %v1029_v16  ;;  %v1113_v24 = vsel %vm946_vm5, %v1107_v44, 0.0  ;;  %v1086_v46 = vadd.f32 %v1085_v31, %v1084_v29  ;;  %v1087_v47 = vsel %vm946_vm5, %v1082_v28, 0.0  ;;  %v1420_v54 = vadd.f32 %v1419_v51, %v1418_v19 }
 0x27b   : > { %v1114_v56 = vadd.f32 %v1113_v24, %v1112_v8  ;;  %v1421_v33 = vsel %vm946_vm5, %v5694_v15, 0.0  ;;  %v1089_v63 = vsel %vm946_vm5, %v1083_v9, 0.0  ;;  %v2743_v37 = vmul.f32 -1.442695, %v5792_v57 }
 0x27c   : > { %v1088_v10 = vadd.f32 %v1087_v47, %v1086_v46  ;;  %v1422_v55 = vadd.f32 %v1421_v33, %v1420_v54  ;;  %v2744_v58 = vmul.f32 -1.442695, %v5796_v30  ;;  %v1385_v15 = vmul.f32 %v5609_v25, %v5612_v27  ;;  %v5815_v25 = vpop.eup %3876 }
 0x27d   : > { %1115 = vadd.xlane.f32.xlu0 %v1114_v56  ;;  %v2745_v4 = vmul.f32 -1.442695, %v5799_v5  ;;  %3880 = vpow2.f32 %v2743_v37  ;;  %v2746_v42 = vmul.f32 -1.442695, %v5806_v13  ;;  %v1387_v34 = vmul.f32 %v5636_v32, %v5640_v36  ;;  %v3879_v32 = vpop.eup %3878 }
 0x27e   : > { %v1090_v18 = vadd.f32 %v1089_v63, %v1088_v10  ;;  %3882 = vpow2.f32 %v2744_v58  ;;  %v1386_v7 = vmul.f32 %v5626_v22, %v5652_v12  ;;  %v1734_v43 = vmul.f32 %v5736_v38, %v5736_v38 }
 0x27f   : > { %3884 = vpow2.f32 %v2745_v4  ;;  %v1735_v61 = vmul.f32 %v3875_v49, %v3875_v49  ;;  %v1736_v22 = vmul.f32 %v5815_v25, %v5815_v25  ;;  %v1737_v8 = vmul.f32 %v3879_v32, %v3879_v32 }
 0x280   : > { %1091 = vadd.xlane.f32.xlu1 %v1090_v18  ;;  %3886 = vpow2.f32 %v2746_v42  ;;  %v1738_v51 = vmul.f32 %v1734_v43, %v5644_v6  ;;  %vm2118_vm4 = vcmp.gt.f32.partialorder %v5796_v30, 0.0  ;;  %vm2117_vm13 = vcmp.gt.f32.partialorder %v5792_v57, 0.0 }
 0x281   : > { %1423 = vadd.xlane.f32.xlu0 %v1422_v55  ;;  %v1739_v9 = vmul.f32 %v1735_v61, %v5630_v39  ;;  %v1740_v46 = vmul.f32 %v1736_v22, %v5671_v45  ;;  %v1741_v55 = vmul.f32 %v1737_v8, %v5666_v35  ;;  %vm2120_vm14 = vcmp.gt.f32.partialorder %v5806_v13, 0.0 }
 0x282   : > { %v1742_v33 = vsel %vm946_vm5, %v1738_v51, 0.0 }
 0x283   : > { %v1743_v37 = vsel %vm946_vm5, %v1739_v9, 0.0  ;;  %v1745_v58 = vsel %vm946_vm5, %v1740_v46, 0.0 }
 0x285   : > { %v3475_v60 = vpop.f32.mrf.mxu1 }
 0x286   : > { %v1389_v17 = vmul.f32 %v3475_v60, %v1385_v15  ;;  %v1434_v41 = vmul.f32 %v3475_v60, %v5612_v27 }
 0x287   : > { %v1365_v44 = vpop.f32.mrf.mxu1 }
 0x288   : > { %v1393_v1 = vsel %vm946_vm5, %v1389_v17, 0.0  ;;  %v1438_v53 = vsel %vm946_vm5, %v1434_v41, 0.0  ;;  %v1388_v2 = vmul.f32 %v1384_v0, %v1365_v44  ;;  %v1433_v20 = vmul.f32 %v5621_v59, %v1365_v44 }
 0x289   : > { %v3478_v21 = vpop.f32.mrf.mxu1  ;;  %v1744_v0 = vadd.f32 %v1743_v37, %v1742_v33 }
 0x28a   : > { %v1392_v14 = vsel %vm946_vm5, %v1388_v2, 0.0  ;;  %v1437_v50 = vsel %vm946_vm5, %v1433_v20, 0.0  ;;  %v1391_v3 = vmul.f32 %v3478_v21, %v1387_v34  ;;  %v1436_v16 = vmul.f32 %v3478_v21, %v5640_v36  ;;  %v3881_v54 = vpop.eup %3880 }
 0x28b   : > { %v1394_v11 = vadd.f32 %v1393_v1, %v1392_v14  ;;  %v1439_v23 = vadd.f32 %v1438_v53, %v1437_v50  ;;  %v1375_v26 = vpop.f32.mrf.mxu1  ;;  %v3883_v18 = vpop.eup %3882  ;;  %v1805_v60 = vadd.f32 1.0, %v3881_v54  ;;  %v1746_v42 = vadd.f32 %v1745_v58, %v1744_v0 }
 0x28c   : > { %v1390_v28 = vmul.f32 %v1386_v7, %v1375_v26  ;;  %v1435_v19 = vmul.f32 %v5652_v12, %v1375_v26  ;;  %v1397_v24 = vsel %vm946_vm5, %v1391_v3, 0.0  ;;  %v1442_v10 = vsel %vm946_vm5, %v1436_v16, 0.0  ;;  %v3885_v15 = vpop.eup %3884 }
 0x28d   : > { %v1806_v17 = vadd.f32 1.0, %v3883_v18  ;;  %v3887_v41 = vpop.eup %3886  ;;  %v1747_v34 = vsel %vm946_vm5, %v1741_v55, 0.0  ;;  %v1807_v44 = vadd.f32 1.0, %v3885_v15  ;;  %3888 = vrcp.f32 %v1805_v60 }
 0x28e   : > { %v1395_v29 = vsel %vm946_vm5, %v1390_v28, 0.0  ;;  %v1440_v31 = vsel %vm946_vm5, %v1435_v19, 0.0  ;;  %v1748_v7 = vadd.f32 %v1747_v34, %v1746_v42  ;;  %v1808_v43 = vadd.f32 1.0, %v3887_v41 }
 0x28f   : > { %v1396_v47 = vadd.f32 %v1395_v29, %v1394_v11  ;;  %v1441_v56 = vadd.f32 %v1440_v31, %v1439_v23  ;;  %3890 = vrcp.f32 %v1806_v17  ;;  %v1711_v1 = vmul.f32 %v3875_v49, %v5612_v27 }
 0x290   : > { %3892 = vrcp.f32 %v1807_v44  ;;  %v1710_v2 = vmul.f32 %v5736_v38, %v5621_v59  ;;  %v1713_v50 = vmul.f32 %v3879_v32, %v5640_v36  ;;  %v1712_v11 = vmul.f32 %v5815_v25, %v5652_v12 }
 0x291   : > { %v1398_v63 = vadd.f32 %v1397_v24, %v1396_v47  ;;  %v1443_v4 = vadd.f32 %v1442_v10, %v1441_v56  ;;  %3894 = vrcp.f32 %v1808_v43 }
 0x293   : > { %1399 = vadd.xlane.f32.xlu1 %v1398_v63 }
 0x297   : > { %1444 = vadd.xlane.f32.xlu1 %v1443_v4 }
 0x29a   : > { %v3889_v53 = vpop.eup %3888 }
 0x29b   : > { %1749 = vadd.xlane.f32.xlu1 %v1748_v7  ;;  %v2060_v23 = vmul.f32 %v3889_v53, %v3889_v53  ;;  %v2036_v43 = vmul.f32 %v3889_v53, %v5621_v59 }
 0x29c   : > { %v3891_v21 = vpop.eup %3890 }
 0x29d   : > { %v3893_v3 = vpop.eup %3892  ;;  %v2061_v19 = vmul.f32 %v3891_v21, %v3891_v21  ;;  %v2064_v54 = vmul.f32 %v2060_v23, %v5644_v6  ;;  %v2037_v7 = vmul.f32 %v3891_v21, %v5612_v27 }
 0x29e   : > { %v3895_v51 = vpop.eup %3894  ;;  %v2062_v29 = vmul.f32 %v3893_v3, %v3893_v3 }
 0x29f   : > { %v2063_v10 = vmul.f32 %v3895_v51, %v3895_v51  ;;  %v2065_v33 = vmul.f32 %v2061_v19, %v5630_v39  ;;  %v2068_v0 = vsel %vm946_vm5, %v2064_v54, 0.0 }
 0x2a0   : > { %v2066_v37 = vmul.f32 %v2062_v29, %v5671_v45 }
 0x2a1   : > { %v2067_v6 = vmul.f32 %v2063_v10, %v5666_v35  ;;  %v2069_v42 = vsel %vm946_vm5, %v2065_v33, 0.0 }
 0x2a2   : > { %v2071_v39 = vsel %vm946_vm5, %v2066_v37, 0.0  ;;  %v2070_v41 = vadd.f32 %v2069_v42, %v2068_v0 }
 0x2a3   : > { %v2073_v44 = vsel %vm946_vm5, %v2067_v6, 0.0 }
 0x2a4   : > { %v2072_v34 = vadd.f32 %v2071_v39, %v2070_v41 }
 0x2a5   : > { %v3551_v20 = vpop.f32.mrf.mxu1 }
 0x2a6   : > { %v1715_v61 = vmul.f32 %v3551_v20, %v1711_v1  ;;  %v1760_v14 = vmul.f32 %v3551_v20, %v5612_v27  ;;  %v2074_v45 = vadd.f32 %v2073_v44, %v2072_v34  ;;  %v2039_v20 = vmul.f32 %v3895_v51, %v5640_v36 }
 0x2a7   : > { %v1691_v22 = vpop.f32.mrf.mxu1 }
 0x2a8   : > { %v1719_v26 = vsel %vm946_vm5, %v1715_v61, 0.0  ;;  %v1764_v49 = vsel %vm946_vm5, %v1760_v14, 0.0  ;;  %v1714_v16 = vmul.f32 %v1710_v2, %v1691_v22  ;;  %v1759_v38 = vmul.f32 %v5621_v59, %v1691_v22 }
 0x2a9   : > { %v3554_v28 = vpop.f32.mrf.mxu1  ;;  %v2038_v14 = vmul.f32 %v3893_v3, %v5652_v12 }
 0x2aa   : > { %v1718_v8 = vsel %vm946_vm5, %v1714_v16, 0.0  ;;  %v1763_v32 = vsel %vm946_vm5, %v1759_v38, 0.0  ;;  %v1717_v9 = vmul.f32 %v3554_v28, %v1713_v50  ;;  %v1762_v46 = vmul.f32 %v3554_v28, %v5640_v36 }
 0x2ab   : > { %v1720_v31 = vadd.f32 %v1719_v26, %v1718_v8  ;;  %v1765_v24 = vadd.f32 %v1764_v49, %v1763_v32  ;;  %v1701_v25 = vpop.f32.mrf.mxu1 }
 0x2ac   : > { %v1716_v47 = vmul.f32 %v1712_v11, %v1701_v25  ;;  %v1761_v56 = vmul.f32 %v5652_v12, %v1701_v25  ;;  %v1723_v55 = vsel %vm946_vm5, %v1717_v9, 0.0  ;;  %v1768_v4 = vsel %vm946_vm5, %v1762_v46, 0.0 }
 0x2ae   : > { %v1721_v63 = vsel %vm946_vm5, %v1716_v47, 0.0  ;;  %v1766_v18 = vsel %vm946_vm5, %v1761_v56, 0.0  ;;  %v6133_v47 = vmov 0.0  }
 0x2af   : > { %v1722_v58 = vadd.f32 %v1721_v63, %v1720_v31  ;;  %v1767_v15 = vadd.f32 %v1766_v18, %v1765_v24  ;;  %v2784_v56 = vsel %vm2118_vm4, 1.0, %v6133_v47  ;;  %v2783_v63 = vsel %vm2117_vm13, 1.0, %v6133_v47 }
 0x2b0   : > { %v2340_v10 = vsub.f32 1.0, %v2784_v56  ;;  %v2786_v18 = vsel %vm2120_vm14, 1.0, %v6133_v47  ;;  %v2336_v37 = vmul.f32 %v5684_v62, %v2784_v56  ;;  %v2335_v5 = vmul.f32 %v2783_v63, %v5696_v40 }
 0x2b1   : > { %v1724_v60 = vadd.f32 %v1723_v55, %v1722_v58  ;;  %v1769_v17 = vadd.f32 %v1768_v4, %v1767_v15  ;;  %v2339_v58 = vsub.f32 1.0, %v2783_v63  ;;  %v2785_v15 = vsel %vm2119_vm1, 1.0, %v6133_v47 }
 0x2b2   : > { %v2342_v13 = vsub.f32 1.0, %v2786_v18 }
 0x2b3   : > { %1725 = vadd.xlane.f32.xlu0 %v1724_v60 }
 0x2b7   : > { %1770 = vadd.xlane.f32.xlu0 %v1769_v17  ;;  %v2341_v17 = vsub.f32 1.0, %v2785_v15 }
 0x2bb   : > { %2075 = vadd.xlane.f32.xlu0 %v2074_v45  ;;  %v2337_v45 = vmul.f32 %v2785_v15, %v5725_v48 }
 0x2c5   : > { %v3627_v1 = vpop.f32.mrf.mxu1 }
 0x2c6   : > { %v2041_v2 = vmul.f32 %v3627_v1, %v2037_v7  ;;  %v2086_v35 = vmul.f32 %v3627_v1, %v5612_v27  ;;  %v2338_v7 = vmul.f32 %v5716_v52, %v2786_v18 }
 0x2c7   : > { %v2017_v61 = vpop.f32.mrf.mxu1 }
 0x2c8   : > { %v2045_v50 = vsel %vm946_vm5, %v2041_v2, 0.0  ;;  %v2090_v22 = vsel %vm946_vm5, %v2086_v35, 0.0  ;;  %v2040_v11 = vmul.f32 %v2036_v43, %v2017_v61  ;;  %v2085_v23 = vmul.f32 %v5621_v59, %v2017_v61 }
 0x2c9   : > { %v3630_v26 = vpop.f32.mrf.mxu1 }
 0x2ca   : > { %v2044_v21 = vsel %vm946_vm5, %v2040_v11, 0.0  ;;  %v2089_v53 = vsel %vm946_vm5, %v2085_v23, 0.0  ;;  %v2043_v49 = vmul.f32 %v3630_v26, %v2039_v20  ;;  %v2088_v28 = vmul.f32 %v3630_v26, %v5640_v36 }
 0x2cb   : > { %v2046_v16 = vadd.f32 %v2045_v50, %v2044_v21  ;;  %v2091_v27 = vadd.f32 %v2090_v22, %v2089_v53  ;;  %v2027_v38 = vpop.f32.mrf.mxu1 }
 0x2cc   : > { %v2042_v19 = vmul.f32 %v2038_v14, %v2027_v38  ;;  %v2087_v3 = vmul.f32 %v5652_v12, %v2027_v38  ;;  %v2049_v59 = vsel %vm946_vm5, %v2043_v49, 0.0  ;;  %v2094_v29 = vsel %vm946_vm5, %v2088_v28, 0.0 }
 0x2ce   : > { %v2047_v51 = vsel %vm946_vm5, %v2042_v19, 0.0  ;;  %v2092_v8 = vsel %vm946_vm5, %v2087_v3, 0.0 }
 0x2cf   : > { %v2048_v32 = vadd.f32 %v2047_v51, %v2046_v16  ;;  %v2093_v9 = vadd.f32 %v2092_v8, %v2091_v27 }
 0x2d1   : > { %v2050_v31 = vadd.f32 %v2049_v59, %v2048_v32  ;;  %v2095_v24 = vadd.f32 %v2094_v29, %v2093_v9 }
 0x2d3   : > { %2051 = vadd.xlane.f32.xlu1 %v2050_v31 }
 0x2d7   : > { %2096 = vadd.xlane.f32.xlu1 %v2095_v24 }
 0x2da   : > { %v955_v25 = vpop.xlane.xlu0 %954 }
 0x2db   : > { %v956_v46 = vrot.slane %v955_v25, 4 }
 0x2dd   : > { %v957_v36 = vadd.f32 %v956_v46, %v955_v25 }
 0x2df   : > { %v958_v12 = vrot.slane %v957_v36, 2 }
 0x2e1   : > { %v959_v54 = vadd.f32 %v958_v12, %v957_v36 }
 0x2e3   : > { %v960_v33 = vrot.slane %v959_v54, 1 }
 0x2e5   : > { %v3703_v55 = vpop.f32.mrf.mxu1  ;;  %v961_v30 = vadd.f32 %v960_v33, %v959_v54 }
 0x2e6   : > { %v2316_v4 = vmul.f32 %v3703_v55, %v2784_v56  ;;  %v2344_v0 = vmul.f32 %v3703_v55, %v2340_v10  ;;  %v2368_v57 = vsub.f32 %v5684_v62, %v3703_v55 }
 0x2e7   : > { %3710 = vpush %v961_v30  ;;  %v2296_v60 = vpop.f32.mrf.mxu1 }
 0x2e8   : > { %v2320_v6 = vsel %vm946_vm5, %v2316_v4, 0.0  ;;  %v2348_v42 = vadd.f32 %v2344_v0, %v2336_v37  ;;  %v2315_v39 = vmul.f32 %v2783_v63, %v2296_v60  ;;  %v2343_v41 = vmul.f32 %v2339_v58, %v2296_v60 }
 0x2e9   : > { %v2367_v34 = vsub.f32 %v5696_v40, %v2296_v60  ;;  %v3706_v44 = vpop.f32.mrf.mxu1  ;;  %v2372_v43 = vmul.f32 %v2368_v57, %v2340_v10 }
 0x2ea   : > { %v2319_v62 = vsel %vm946_vm5, %v2315_v39, 0.0  ;;  %v2318_v1 = vmul.f32 %v3706_v44, %v2786_v18  ;;  %v2346_v2 = vmul.f32 %v3706_v44, %v2342_v13  ;;  %v2347_v35 = vadd.f32 %v2343_v41, %v2335_v5 }
 0x2eb   : > { %v2371_v20 = vmul.f32 %v2367_v34, %v2339_v58  ;;  %v2370_v61 = vsub.f32 %v5716_v52, %v3706_v44  ;;  %v2306_v14 = vpop.f32.mrf.mxu1  ;;  %v2321_v50 = vadd.f32 %v2320_v6, %v2319_v62  ;;  %v2352_v23 = vsel %vm946_vm5, %v2348_v42, 0.0 }
 0x2ec   : > { %v2317_v22 = vmul.f32 %v2785_v15, %v2306_v14  ;;  %v2345_v11 = vmul.f32 %v2341_v17, %v2306_v14  ;;  %v2369_v40 = vsub.f32 %v5725_v48, %v2306_v14  ;;  %v2324_v26 = vsel %vm946_vm5, %v2318_v1, 0.0 }
 0x2ed   : > { %v2350_v21 = vadd.f32 %v2346_v2, %v2338_v7  ;;  %v2351_v53 = vsel %vm946_vm5, %v2347_v35, 0.0  ;;  %v2375_v49 = vsel %vm946_vm5, %v2371_v20, 0.0  ;;  %v2374_v19 = vmul.f32 %v2370_v61, %v2342_v13 }
 0x2ee   : > { %v2322_v16 = vsel %vm946_vm5, %v2317_v22, 0.0  ;;  %v2349_v27 = vadd.f32 %v2345_v11, %v2337_v45  ;;  %v2373_v38 = vmul.f32 %v2369_v40, %v2341_v17  ;;  %v2353_v52 = vadd.f32 %v2352_v23, %v2351_v53 }
 0x2ef   : > { %v2323_v28 = vadd.f32 %v2322_v16, %v2321_v50  ;;  %v2376_v3 = vsel %vm946_vm5, %v2372_v43, 0.0  ;;  %v2356_v9 = vsel %vm946_vm5, %v2350_v21, 0.0  ;;  %v2380_v24 = vsel %vm946_vm5, %v2374_v19, 0.0 }
 0x2f0   : > { %v2354_v48 = vsel %vm946_vm5, %v2349_v27, 0.0  ;;  %v2377_v51 = vadd.f32 %v2376_v3, %v2375_v49  ;;  %v2378_v8 = vsel %vm946_vm5, %v2373_v38, 0.0 }
 0x2f1   : > { %v2325_v59 = vadd.f32 %v2324_v26, %v2323_v28  ;;  %v2355_v32 = vadd.f32 %v2354_v48, %v2353_v52 }
 0x2f2   : > { %v2379_v29 = vadd.f32 %v2378_v8, %v2377_v51 }
 0x2f3   : > { %2326 = vadd.xlane.f32.xlu0 %v2325_v59  ;;  %v2357_v31 = vadd.f32 %v2356_v9, %v2355_v32 }
 0x2f4   : > { %v2381_v25 = vadd.f32 %v2380_v24, %v2379_v29 }
 0x2f5   : > { %2358 = vadd.xlane.f32.xlu1 %v2357_v31 }
 0x2f7   : > { %2382 = vadd.xlane.f32.xlu0 %v2381_v25 }
 0x2fa   : > { %v971_v46 = vpop.xlane.xlu0 %970 }
 0x2fb   : > { %v972_v36 = vrot.slane %v971_v46, 4 }
 0x2fc   : > { %v1007_v12 = vpop.xlane.xlu1 %1006 }
 0x2fd   : > { %v973_v47 = vadd.f32 %v972_v36, %v971_v46  ;;  %v1008_v56 = vrot.slane %v1007_v12, 4 }
 0x2fe   : > { %v1060_v6 = vpop.xlane.xlu0 %1059 }
 0x2ff   : > { %v974_v54 = vrot.slane %v973_v47, 2  ;;  %v1009_v10 = vadd.f32 %v1008_v56, %v1007_v12  ;;  %v1061_v17 = vrot.slane %v1060_v6, 4 }
 0x301   : > { %v1010_v33 = vrot.slane %v1009_v10, 2  ;;  %v975_v63 = vadd.f32 %v974_v54, %v973_v47  ;;  %v1062_v44 = vadd.f32 %v1061_v17, %v1060_v6 }
 0x303   : > { %v1031_v18 = vpop.xlane.xlu1 %1030  ;;  %v976_v37 = vrot.slane %v975_v63, 1  ;;  %v1011_v30 = vadd.f32 %v1010_v33, %v1009_v10  ;;  %v1063_v62 = vrot.slane %v1062_v44, 2 }
 0x304   : > { %v1032_v55 = vrot.slane %v1031_v18, 4 }
 0x305   : > { %v977_v15 = vadd.f32 %v976_v37, %v975_v63  ;;  %v1012_v4 = vrot.slane %v1011_v30, 1  ;;  %v1064_v35 = vadd.f32 %v1063_v62, %v1062_v44  ;;  %v6134_v37 = vld [vmem:[#allocation19_spill] sm:$0xff] }
 0x306   : > { %v1033_v58 = vadd.f32 %v1032_v55, %v1031_v18  ;;  %v1116_v39 = vpop.xlane.xlu0 %1115  ;;  %vm2407_vm12 = vcmp.eq.s32.totalorder %v6134_v37, 0  ;;  %vm2410_vm10 = vcmp.eq.s32.totalorder %v6134_v37, 1  ;;  %vm2414_vm0 = vcmp.eq.s32.totalorder %v6134_v37, 2 }
 0x307   : > { %3712 = vpush %v977_v15  ;;  %v1013_v57 = vadd.f32 %v1012_v4, %v1011_v30  ;;  %v1117_v34 = vrot.slane %v1116_v39, 4  ;;  %v1065_v14 = vrot.slane %v1064_v35, 1  ;;  %vm2418_vm5 = vcmp.eq.s32.totalorder %v6134_v37, 3 }
 0x308   : > { %v1034_v0 = vrot.slane %v1033_v58, 2  ;;  %vm2422_vm8 = vcmp.eq.s32.totalorder %v6134_v37, 4 }
 0x309   : > { %3714 = vpush %v1013_v57  ;;  %v1092_v42 = vpop.xlane.xlu1 %1091  ;;  %v1118_v7 = vadd.f32 %v1117_v34, %v1116_v39  ;;  %v1066_v40 = vadd.f32 %v1065_v14, %v1064_v35 }
 0x30a   : > { %v1035_v13 = vadd.f32 %v1034_v0, %v1033_v58  ;;  %v1093_v41 = vrot.slane %v1092_v42, 4  ;;  %v1424_v53 = vpop.xlane.xlu0 %1423 }
 0x30b   : > { %v1119_v2 = vrot.slane %v1118_v7, 2  ;;  %v1425_v16 = vrot.slane %v1424_v53, 4 }
 0x30c   : > { %v1036_v60 = vrot.slane %v1035_v13, 1  ;;  %v1094_v45 = vadd.f32 %v1093_v41, %v1092_v42 }
 0x30d   : > { %v1120_v61 = vadd.f32 %v1119_v2, %v1118_v7  ;;  %v1426_v19 = vadd.f32 %v1425_v16, %v1424_v53 }
 0x30e   : > { %v1037_v5 = vadd.f32 %v1036_v60, %v1035_v13  ;;  %v1095_v1 = vrot.slane %v1094_v45, 2 }
 0x30f   : > { %v1121_v22 = vrot.slane %v1120_v61, 1  ;;  %v1427_v8 = vrot.slane %v1426_v19, 2 }
 0x310   : > { %3716 = vpush %v1037_v5  ;;  %v1096_v20 = vadd.f32 %v1095_v1, %v1094_v45 }
 0x311   : > { %v1122_v26 = vadd.f32 %v1121_v22, %v1120_v61  ;;  %v1428_v9 = vadd.f32 %v1427_v8, %v1426_v19 }
 0x312   : > { %v1097_v50 = vrot.slane %v1096_v20, 1 }
 0x313   : > { %v1429_v24 = vrot.slane %v1428_v9, 1 }
 0x314   : > { %v1098_v23 = vadd.f32 %v1097_v50, %v1096_v20 }
 0x315   : > { %v1430_v47 = vadd.f32 %v1429_v24, %v1428_v9 }
 0x318   : > { %s5912_s28 = spop %3710 }
 0x31c   : > { %v1400_v21 = vpop.xlane.xlu1 %1399 }
 0x31d   : > { %v1401_v49 = vrot.slane %v1400_v21, 4 }
 0x31f   : > { %v1402_v52 = vadd.f32 %v1401_v49, %v1400_v21 }
 0x320   : > { %v1445_v27 = vpop.xlane.xlu1 %1444 }
 0x321   : > { %v1446_v38 = vrot.slane %v1445_v27, 4  ;;  %v1403_v51 = vrot.slane %v1402_v52, 2 }
 0x323   : > { %v1447_v48 = vadd.f32 %v1446_v38, %v1445_v27  ;;  %v1404_v32 = vadd.f32 %v1403_v51, %v1402_v52 }
 0x324   : > { %v1750_v10 = vpop.xlane.xlu1 %1749 }
 0x325   : > { %v1448_v59 = vrot.slane %v1447_v48, 2  ;;  %v1405_v31 = vrot.slane %v1404_v32, 1  ;;  %v1751_v63 = vrot.slane %v1750_v10, 4 }
 0x327   : > { %v1449_v29 = vadd.f32 %v1448_v59, %v1447_v48  ;;  %v1406_v12 = vadd.f32 %v1405_v31, %v1404_v32  ;;  %v1752_v4 = vadd.f32 %v1751_v63, %v1750_v10 }
 0x329   : > { %v1450_v46 = vrot.slane %v1449_v29, 1  ;;  %v1753_v42 = vrot.slane %v1752_v4, 2 }
 0x32b   : > { %v1451_v56 = vadd.f32 %v1450_v46, %v1449_v29  ;;  %v1754_v41 = vadd.f32 %v1753_v42, %v1752_v4 }
 0x32d   : > { %v1755_v45 = vrot.slane %v1754_v41, 1 }
 0x32f   : > { %v1756_v1 = vadd.f32 %v1755_v45, %v1754_v41 }
 0x338   : > { %s5914_s25 = spop %3712 }
 0x339   : > { %s1040_s8 = sadd.f32 1e-06, %s5914_s25 }
 0x33a   : > { %s5916_s11 = spop %3714 }
 0x33b   : > { %s1041_s17 = smul.f32 2.0, %s5916_s11 }
 0x33c   : > { %v1726_v54 = vpop.xlane.xlu0 %1725 }
 0x33d   : > { %v1727_v33 = vrot.slane %v1726_v54, 4 }
 0x33f   : > { %v1728_v58 = vadd.f32 %v1727_v33, %v1726_v54 }
 0x340   : > { %v1771_v18 = vpop.xlane.xlu0 %1770 }
 0x341   : > { %s3717_s2 = spop %3716  ;;  %v1772_v55 = vrot.slane %v1771_v18, 4  ;;  %v1729_v6 = vrot.slane %v1728_v58, 2 }
 0x342   : > { %s1039_s12 = sadd.f32 1e-06, %s3717_s2 }
 0x343   : > { %v1773_v13 = vadd.f32 %v1772_v55, %v1771_v18  ;;  %v1730_v17 = vadd.f32 %v1729_v6, %v1728_v58 }
 0x344   : > { %s1042_s15 = sadd.f32 %s1040_s8, %s1039_s12  ;;  %v2076_v20 = vpop.xlane.xlu0 %2075 }
 0x345   : > { %v1774_v39 = vrot.slane %v1773_v13, 2  ;;  %v1731_v44 = vrot.slane %v1730_v17, 1  ;;  %v2077_v14 = vrot.slane %v2076_v20, 4 }
 0x346   : > { %v1043_v43 = vstv %s1042_s15 }
 0x347   : > { %3896 = vrcp.f32 %v1043_v43  ;;  %v1775_v34 = vadd.f32 %v1774_v39, %v1773_v13  ;;  %v1732_v62 = vadd.f32 %v1731_v44, %v1730_v17 }
 0x349   : > { %v1776_v7 = vrot.slane %v1775_v34, 1 }
 0x34b   : > { %v1777_v2 = vadd.f32 %v1776_v7, %v1775_v34 }
 0x354   : > { %v3897_v11 = vpop.eup %3896 }
 0x355   : > { %3718 = vpush %v3897_v11 }
 0x356   : > { %3720 = vpush %v1066_v40  ;;  %v2078_v40 = vadd.f32 %v2077_v14, %v2076_v20 }
 0x357   : > { %3722 = vpush %v1098_v23 }
 0x358   : > { %3724 = vpush %v1122_v26  ;;  %v2079_v53 = vrot.slane %v2078_v40, 2 }
 0x35a   : > { %v2080_v27 = vadd.f32 %v2079_v53, %v2078_v40 }
 0x35c   : > { %v2052_v35 = vpop.xlane.xlu1 %2051 }
 0x35d   : > { %v2053_v61 = vrot.slane %v2052_v35, 4 }
 0x35f   : > { %v2054_v11 = vadd.f32 %v2053_v61, %v2052_v35 }
 0x360   : > { %v2097_v50 = vpop.xlane.xlu1 %2096 }
 0x361   : > { %v2098_v22 = vrot.slane %v2097_v50, 4  ;;  %v2055_v21 = vrot.slane %v2054_v11, 2 }
 0x363   : > { %v2099_v23 = vadd.f32 %v2098_v22, %v2097_v50  ;;  %v2056_v16 = vadd.f32 %v2055_v21, %v2054_v11 }
 0x365   : > { %v2100_v49 = vrot.slane %v2099_v23, 2  ;;  %v2057_v52 = vrot.slane %v2056_v16, 1 }
 0x367   : > { %v2101_v38 = vadd.f32 %v2100_v49, %v2099_v23  ;;  %v2058_v48 = vadd.f32 %v2057_v52, %v2056_v16 }
 0x369   : > { %v2102_v19 = vrot.slane %v2101_v38, 1 }
 0x36b   : > { %v2103_v8 = vadd.f32 %v2102_v19, %v2101_v38 }
 0x37c   : > { %v2327_v59 = vpop.xlane.xlu0 %2326 }
 0x37d   : > { %v2328_v29 = vrot.slane %v2327_v59, 4 }
 0x37e   : > { %v2359_v32 = vpop.xlane.xlu1 %2358 }
 0x37f   : > { %v2360_v31 = vrot.slane %v2359_v32, 4 }
 0x380   : > { %v2383_v9 = vpop.xlane.xlu0 %2382 }
 0x381   : > { %v2384_v24 = vrot.slane %v2383_v9, 4  ;;  %v2361_v46 = vadd.f32 %v2360_v31, %v2359_v32 }
 0x386   : > { %s3719_s14 = spop %3718 }
 0x387   : > { %s5920_s18 = smul.f32 %s3719_s14, %s1041_s17  ;;  %s5922_s9 = spop %3720 }
 0x388   : > { %s1124_s10 = ssub.f32 %s5912_s28, %s5922_s9  ;;  %s3723_s1 = spop %3722 }
 0x389   : > { %s1125_s27 = sadd.f32 1e-06, %s3723_s1  ;;  %s3725_s19 = spop %3724 }
 0x38a   : > { %s1130_s29 = sadd.f32 1e-06, %s1124_s10 }
 0x38b   : > { %v1126_v3 = vstv %s1125_s27  ;;  %s1047_s16 = ssub.f32 1.0, %s5920_s18 }
 0x38c   : > { %v1131_v28 = vstv %s1130_s29 }
 0x38d   : > { %3898 = vrcp.f32 %v1131_v28  ;;  %v2408_v30 = vstv %s1047_s16  ;;  %v2081_v28 = vrot.slane %v2080_v27, 1 }
 0x38e   : > { %3900 = vrcp.f32 %v1126_v3  ;;  %v2409_v0 = vsel %vm2407_vm12, %v2408_v30, 0.0 }
 0x38f   : > { %v2082_v51 = vadd.f32 %v2081_v28, %v2080_v27 }
 0x39a   : > { %v3899_v25 = vpop.eup %3898 }
 0x39b   : > { %v3901_v36 = vpop.eup %3900 }
 0x39c   : > { %3726 = vpush %v3901_v36  ;;  %v2385_v36 = vadd.f32 %v2384_v24, %v2383_v9 }
 0x39d   : > { %3728 = vpush %v3899_v25  ;;  %v2329_v25 = vadd.f32 %v2328_v29, %v2327_v59 }
 0x39e   : > { %3730 = vpush %v1406_v12  ;;  %v2386_v54 = vrot.slane %v2385_v36, 2 }
 0x39f   : > { %3732 = vpush %v1430_v47  ;;  %v2330_v47 = vrot.slane %v2329_v25, 2 }
 0x3a0   : > { %3734 = vpush %v1451_v56  ;;  %v2362_v56 = vrot.slane %v2361_v46, 2  ;;  %v2387_v63 = vadd.f32 %v2386_v54, %v2385_v36 }
 0x3a1   : > { %v2331_v10 = vadd.f32 %v2330_v47, %v2329_v25 }
 0x3a2   : > { %v2363_v33 = vadd.f32 %v2362_v56, %v2361_v46  ;;  %v2388_v30 = vrot.slane %v2387_v63, 1 }
 0x3a3   : > { %v2332_v18 = vrot.slane %v2331_v10, 1 }
 0x3a4   : > { %v2364_v55 = vrot.slane %v2363_v33, 1 }
 0x3a6   : > { %v2365_v4 = vadd.f32 %v2364_v55, %v2363_v33 }
 0x3cd   : > { %s3727_s13 = spop %3726 }
 0x3ce   : > { %s1129_s30 = smul.f32 %s3727_s13, %s5922_s9  ;;  %s3729_s28 = spop %3728 }
 0x3cf   : > { %s1134_s11 = smul.f32 %s3729_s28, %s3725_s19  ;;  %s5928_s8 = spop %3730 }
 0x3d0   : > { %s3733_s2 = spop %3732  ;;  %s1454_s1 = smul.f32 2.0, %s5928_s8 }
 0x3d1   : > { %s1135_s12 = sadd.f32 %s1134_s11, %s1129_s30  ;;  %s3735_s15 = spop %3734 }
 0x3d2   : > { %s1432_s17 = sadd.f32 1e-06, %s3733_s2 }
 0x3d3   : > { %s1136_s14 = smul.f32 0.5, %s1135_s12  ;;  %s1453_s9 = sadd.f32 1e-06, %s3735_s15 }
 0x3d5   : > { %v2411_v15 = vstv %s1136_s14  ;;  %s1455_s10 = sadd.f32 %s1453_s9, %s1432_s17 }
 0x3d6   : > { %v2412_v57 = vsel %vm2410_vm10, %v2411_v15, 0.0  ;;  %v2333_v15 = vadd.f32 %v2332_v18, %v2331_v10 }
 0x3d7   : > { %v5934_v60 = vadd.f32 %v2412_v57, %v2409_v0  ;;  %v1456_v5 = vstv %s1455_s10  ;;  %v2389_v0 = vadd.f32 %v2388_v30, %v2387_v63 }
 0x3d8   : > { %3902 = vrcp.f32 %v1456_v5 }
 0x3e5   : > { %v3903_v43 = vpop.eup %3902 }
 0x3e6   : > { %3736 = vpush %v3903_v43 }
 0x3e7   : > { %3738 = vpush %v1732_v62 }
 0x3e8   : > { %3740 = vpush %v1756_v1 }
 0x3e9   : > { %3742 = vpush %v1777_v2 }
 0x417   : > { %s3737_s29 = spop %3736 }
 0x418   : > { %s5937_s27 = smul.f32 %s3737_s29, %s1454_s1  ;;  %s5939_s19 = spop %3738 }
 0x419   : > { %s3741_s13 = spop %3740  ;;  %s1780_s8 = smul.f32 2.0, %s5939_s19 }
 0x41a   : > { %s3743_s30 = spop %3742  ;;  %s1758_s28 = sadd.f32 1e-06, %s3741_s13 }
 0x41b   : > { %s1779_s11 = sadd.f32 1e-06, %s3743_s30 }
 0x41c   : > { %s1460_s14 = ssub.f32 1.0, %s5937_s27 }
 0x41d   : > { %s1781_s2 = sadd.f32 %s1779_s11, %s1758_s28 }
 0x41f   : > { %v1782_v26 = vstv %s1781_s2 }
 0x420   : > { %3904 = vrcp.f32 %v1782_v26 }
 0x42d   : > { %v3905_v3 = vpop.eup %3904 }
 0x42e   : > { %3744 = vpush %v3905_v3 }
 0x42f   : > { %3746 = vpush %v2058_v48 }
 0x430   : > { %3748 = vpush %v2082_v51 }
 0x431   : > { %3750 = vpush %v2103_v8 }
 0x45f   : > { %s3745_s12 = spop %3744 }
 0x460   : > { %s1785_s15 = smul.f32 %s3745_s12, %s1780_s8  ;;  %s5942_s17 = spop %3746 }
 0x461   : > { %s3749_s9 = spop %3748  ;;  %s2106_s27 = smul.f32 2.0, %s5942_s17 }
 0x462   : > { %s1786_s10 = ssub.f32 1.0, %s1785_s15  ;;  %s3751_s1 = spop %3750 }
 0x463   : > { %s2084_s29 = sadd.f32 1e-06, %s3749_s9 }
 0x464   : > { %s5945_s13 = sadd.f32 %s1786_s10, %s1460_s14 }
 0x465   : > { %s2105_s30 = sadd.f32 1e-06, %s3751_s1 }
 0x467   : > { %s2107_s28 = sadd.f32 %s2105_s30, %s2084_s29  ;;  %s2404_s29 = smul.f32 0.7, %s1047_s16 }
 0x469   : > { %v2108_v12 = vstv %s2107_s28 }
 0x46a   : > { %3906 = vrcp.f32 %v2108_v12 }
 0x477   : > { %v3907_v58 = vpop.eup %3906 }
 0x478   : > { %3752 = vpush %v3907_v58 }
 0x479   : > { %3754 = vpush %v2333_v15 }
 0x47a   : > { %3756 = vpush %v2365_v4 }
 0x47b   : > { %3758 = vpush %v2389_v0 }
 0x4a9   : > { %s3753_s19 = spop %3752 }
 0x4aa   : > { %s2111_s11 = smul.f32 %s3753_s19, %s2106_s27  ;;  %s5948_s2 = spop %3754 }
 0x4ab   : > { %s2391_s8 = ssub.f32 %s5914_s25, %s5948_s2  ;;  %s3757_s15 = spop %3756 }
 0x4ac   : > { %s2112_s12 = ssub.f32 1.0, %s2111_s11  ;;  %s2594_s27 = sshll.u32 %s4367_s20, 3 }
 0x4ad   : > { %s2397_s14 = sadd.f32 1e-06, %s2391_s8  ;;  %s2808_s8 = sshll.u32 %s4174_s0, 7 }
 0x4ae   : > { %s2113_s9 = sadd.f32 %s2112_s12, %s5945_s13  ;;  %s3759_s13 = spop %3758 }
 0x4af   : > { %v2398_v57 = vstv %s2397_s14  ;;  %s2392_s10 = sadd.f32 1e-06, %s3757_s15  ;;  %s337_s12 = scalar_lea.vmem [#allocation12], %s2594_s27 }
 0x4b0   : > { %s2116_s1 = smul.f32 0.33333334, %s2113_s9  ;;  %3908 = vrcp.f32 %v2398_v57  ;;  %s2441_s15 = sshll.u32 %s337_s12, 4  ;;  %s2442_s15 = int_to_ptr.vmem [resolvable:$true] %s2441_s15 }
 0x4b1   : > { %v2393_v13 = vstv %s2392_s10  ;;  %s2439_s9 = scalar_lea.hbm %s6001_s5, %s2808_s8  ;;  %s2428_s10 = scalar_lea.sflag [#allocation6], %s4367_s20 }
 0x4b2   : > { %s2405_s17 = smul.f32 0.3, %s2116_s1  ;;  %v2415_v5 = vstv %s2116_s1  ;;  %3910 = vrcp.f32 %v2393_v13  ;;  %s4032_s1 = scalar_lea.vmem %s2442_s15, 128 }
 0x4b3   : > { %v2416_v6 = vsel %vm2414_vm0, %v2415_v5, 0.0  ;;  %p4033_p13 = scmp.ne.s32.totalorder %s2442_s15, %s4032_s1 }
 0x4b4   : > { %s2406_s25 = sadd.f32 %s2405_s17, %s2404_s29  ;;  %v2417_v42 = vadd.f32 %v2416_v6, %v5934_v60  ;;  %s4119_s29 = smov [#allocation12]  }
 0x4b5   : > { %p4034_p1 = pnand %p4033_p13, %p6135_p10  ;;  %s4036_s17 = sshll.u32 %s4119_s29, 4  ;;  %s4037_s17 = int_to_ptr.vmem [resolvable:$false] %s4036_s17 }
 0x4b6   : > { %v2423_v41 = vstv %s2406_s25  ;;  %s4038_s0 = scalar_lea.vmem %s4037_s17, 256  ;;  %p4039_p9 = scmp.lt.s32.totalorder %s2442_s15, %s4037_s17 }
 0x4b7   : > { %v2424_v45 = vsel %vm2422_vm8, %v2423_v41, 0.0  ;;  %p4035_p3 = pneg %p4034_p1  ;;  %p4040_p6 = scmp.lt.s32.totalorder %s4038_s0, %s4032_s1 }
 0x4b9   : > { %p4041_p12 = por %p4040_p6, %p4039_p9 }
 0x4bb   : > { %p4042_p0 = pnand %p4041_p12, %p4035_p3 }
 0x4bd   : > { %v3909_v39 = vpop.eup %3908 }
 0x4bf   : > { %v3911_v17 = vpop.eup %3910 }
 0x4c0   : > { %3760 = vpush %v3911_v17 }
 0x4c1   : > { %3762 = vpush %v3909_v39 }
 0x4f1   : > { %s3761_s30 = spop %3760 }
 0x4f2   : > { %s2396_s18 = smul.f32 %s3761_s30, %s5948_s2  ;;  %s3763_s28 = spop %3762 }
 0x4f3   : > { %s2401_s16 = smul.f32 %s3763_s28, %s3759_s13 }
 0x4f5   : > { %s2402_s19 = sadd.f32 %s2401_s16, %s2396_s18 }
 0x4f7   : > { %s2403_s11 = smul.f32 0.5, %s2402_s19 }
 0x4f9   : > { %v2419_v34 = vstv %s2403_s11 }
 0x4fa   : > { %v2420_v60 = vsel %vm2418_vm5, %v2419_v34, 0.0 }
 0x4fb   : > { %v2421_v44 = vadd.f32 %v2420_v60, %v2417_v42 }
 0x4fd   : > { %v2425_v7 = vadd.f32 %v2424_v45, %v2421_v44 }
 0x4ff   : > { %2426 = vst [vmem:[%s337_s12] sm:$0xff] %v2425_v7 }
 0x500   : > { %4045 = shalt.err (!%p4042_p0)
}
 0x501   : > { %s4046_s25 = scalar_lea.hbm %s2439_s9, 128  ;;  %s4050_s30 = scalar_lea.hbm %s6001_s5, 256 }
 0x502   : > { %p4047_p11 = scmp.ne.s32.totalorder %s2439_s9, %s4046_s25  ;;  %p4051_p7 = scmp.lt.s32.totalorder %s2439_s9, %s6001_s5 }
 0x503   : > { %p4052_p2 = scmp.lt.s32.totalorder %s4050_s30, %s4046_s25 }
 0x504   : > { %p4048_p4 = pnand %p4047_p11, %p6135_p10 }
 0x505   : > { %p4053_p8 = por %p4052_p2, %p4051_p7 }
 0x506   : > { %p4049_p5 = pneg %p4048_p4 }
 0x508   : > { %p4054_p13 = pnand %p4053_p8, %p4049_p5 }
 0x50a   : > { %4057 = shalt.err (!%p4054_p13)
}
 0x50b   : > { %3772 = dma.vmem_to_hbm [thread:$0]  (%p6135_p10), %s2442_s15, 128, %s2439_s9, %s2428_s10  }
 0x50c PF: > { %s2453_s16 = sand.u32 1, %s4094_s21   ;;  %p6136_p1 = scmp.ne.s32.totalorder %s6047_s7, 0 }
 0x50d   : > { %p6137_p3 = scmp.ge.s32.totalorder %s4106_s24, 2  ;;  %s2454_s27 = scalar_lea.sflag [#allocation6], %s2453_s16 }
 0x50f   : > { %p3788_p9 = pnand %p6137_p3, %p6136_p1 }
 0x511   : > { %p3789_p6 = pneg %p3788_p9 }
 0x513   : > { %4089 = dma.done.wait (%p3789_p6), %s2454_s27, 128  }
 0x514   : > { %4091 = vsyncadd (%p3789_p6), %s2454_s27, 4294967168  ;;  %s6138_s19 = sld [smem:[#allocation18_spill]]  ;;  %p28_p12 = scmp.ge.s32.totalorder %s4178_s26, 4  }
 0x515   : > { %s6139_s21 = smov %s4098_s22  ;;  %s6140_s22 = smov %s4102_s23 }
 0x516   : > { %s6142_s24 = smov %s4178_s26  ;;  %30 = sbr.rel (!%p28_p12) target bundleno = 16 (0x10), region = 123 }
 0x51a   : > { %s6141_s23 = smov %s6138_s19 }
 0x51b   :  { %2459 = vsyncpa [#allocation5], 1 }
 0x51c   :  { %2461 = vsyncpa [#allocation5 + $0x1], 1 }
 0x51d   :  { %2462 = vsyncpa [#allocation8], 1 }
 0x51e   :  { %2464 = vsyncpa [#allocation8 + $0x1], 1 }
 0x51f   :  { %2465 = vsyncpa [#allocation11], 1 }
 0x520   :  { %2467 = vsyncpa [#allocation11 + $0x1], 1 }
 0x521   :  { %2468 = vsyncpa [#allocation6], 1 }
 0x522   :  { %2470 = vsyncpa [#allocation6 + $0x1], 1 }

</bundles_post_ra>
